<compile_context>
chip_gen: v6e
topology: v6e:2x2x1
jax: 0.10.0
libtpu: 0.0.40
codegen_flags: <defaults>
</compile_context>

<pallas_src>
import functools
import math

import jax
import jax.numpy as jnp
from jax import lax
from jax.experimental import pallas as pl
from jax.experimental.pallas import tpu as pltpu

HEAD_DIM = 64
_VMEM_LIMIT = 48 * 1024 * 1024          # <= v7x's 64 MiB physical VMEM, raises 16/32 MiB default


def _round_up(x, m):
    return ((x + m - 1) // m) * m


def _pick_tile(dim, cap, align):
    """Whole (padded-to-align) dim if it fits under cap, else the largest multiple of `align`
    <= cap; callers pad the dim up to a multiple of the returned tile (pad-up, don't shrink
    tiles to 128)."""
    r = _round_up(dim, align)
    if r <= cap:
        return r
    return cap - (cap % align)


# ----------------------- tiled matmul (bf16 MXU, f32 acc) -----------------------

def _matmul_kernel(x_ref, w_ref, o_ref, acc_ref):
    @pl.when(pl.program_id(2) == 0)
    def _():
        acc_ref[...] = jnp.zeros_like(acc_ref)

    acc_ref[...] += jnp.dot(x_ref[...], w_ref[...],
                            preferred_element_type=jnp.float32)

    @pl.when(pl.program_id(2) == pl.num_programs(2) - 1)
    def _():
        o_ref[...] = acc_ref[...]


def pallas_matmul(x, w):
    """Tiled (M,K)@(K,N) matmul: bf16 MXU inputs, f32 accumulation, f32 output."""
    M, K = x.shape
    K2, N = w.shape
    assert K == K2
    xb = x.astype(jnp.bfloat16)
    wb = w.astype(jnp.bfloat16)          # no-op for pre-packed bf16 weights

    tm = _pick_tile(M, 256, 16)          # bf16 sublane tile = 16
    tn = _pick_tile(N, 1024, 128)        # big lane-dense tiles; pad up instead of shrinking
    tk = _pick_tile(K, 1024, 128)
    Mp, Np, Kp = _round_up(M, tm), _round_up(N, tn), _round_up(K, tk)
    if (Mp, Kp) != (M, K):
        xb = jnp.pad(xb, ((0, Mp - M), (0, Kp - K)))
    if (Kp, Np) != (K, N):
        wb = jnp.pad(wb, ((0, Kp - K), (0, Np - N)))

    out = pl.pallas_call(
        _matmul_kernel,
        out_shape=jax.ShapeDtypeStruct((Mp, Np), jnp.float32),
        grid=(Mp // tm, Np // tn, Kp // tk),
        in_specs=[pl.BlockSpec((tm, tk), lambda i, j, k: (i, k)),
                  pl.BlockSpec((tk, tn), lambda i, j, k: (k, j))],
        out_specs=pl.BlockSpec((tm, tn), lambda i, j, k: (i, j)),
        scratch_shapes=[pltpu.VMEM((tm, tn), jnp.float32)],
        compiler_params=pltpu.CompilerParams(
            dimension_semantics=("parallel", "parallel", "arbitrary"),
            vmem_limit_bytes=_VMEM_LIMIT),
    )(xb, wb)
    if (Mp, Np) != (M, N):
        out = out[:M, :N]
    return out


# ---------------- fused LoRA-B stage (no zero blocks, f32, one launch) ----------------

def _lora_stage2_kernel(hw_ref, ha_ref, hg_ref, wB_ref, aB_ref, gB_ref,
                        wb_ref, ab_ref, w_ref, a_ref, g_ref):
    hw = jnp.tanh(hw_ref[...])
    ha = ha_ref[...]
    hg = jax.nn.sigmoid(hg_ref[...])
    # Kept in f32: tiny, accuracy-sensitive (decay / in-context-lr path).
    w_lin = jnp.dot(hw, wB_ref[...], preferred_element_type=jnp.float32) + wb_ref[...]
    a_lin = jnp.dot(ha, aB_ref[...], preferred_element_type=jnp.float32) + ab_ref[...]
    w_ref[...] = (-math.exp(-0.5)) * jax.nn.sigmoid(w_lin)
    a_ref[...] = jax.nn.sigmoid(a_lin)
    g_ref[...] = jnp.dot(hg, gB_ref[...], preferred_element_type=jnp.float32)


def lora_stage2(h_w, h_a, h_g, wB, aB, gB, wb_row, ab_row):
    M, dw = h_w.shape
    da, dg = h_a.shape[1], h_g.shape[1]
    C = wB.shape[1]
    tm = _pick_tile(M, 256, 8)
    Mp = _round_up(M, tm)
    if Mp != M:
        h_w = jnp.pad(h_w, ((0, Mp - M), (0, 0)))
        h_a = jnp.pad(h_a, ((0, Mp - M), (0, 0)))
        h_g = jnp.pad(h_g, ((0, Mp - M), (0, 0)))

    row = lambda d: pl.BlockSpec((tm, d), lambda i: (i, 0))
    full = lambda r, c: pl.BlockSpec((r, c), lambda i: (0, 0))
    w, a, g = pl.pallas_call(
        _lora_stage2_kernel,
        out_shape=[jax.ShapeDtypeStruct((Mp, C), jnp.float32)] * 3,
        grid=(Mp // tm,),
        in_specs=[row(dw), row(da), row(dg),
                  full(dw, C), full(da, C), full(dg, C),
                  full(1, C), full(1, C)],
        out_specs=[row(C), row(C), row(C)],
        compiler_params=pltpu.CompilerParams(
            dimension_semantics=("parallel",),
            vmem_limit_bytes=_VMEM_LIMIT),
    )(h_w, h_a, h_g, wB, aB, gB, wb_row, ab_row)
    if Mp != M:
        w, a, g = w[:M], a[:M], g[:M]
    return w, a, g


# ----------- RWKV7 delta-rule recurrence + fused prologue/epilogue (per batch) -----------

def _rwkv7_kernel(r_ref, w_ref, k_ref, v_ref, vT_ref, a_ref, g_ref,
                  kk_ref, ka_ref, gnw_ref, gnb_ref, rk_ref, o_ref):
    """One batch element, all heads, on the (T, C) layout.

       Prologue (fused): kk = l2norm_head(k * k_k),  k <- k * (1 + (a-1)*k_a)
       Recurrence:       S_t = S_{t-1} diag(exp(w_t)) + (S_{t-1} (-kk_t)) (kk_t*a_t)^T + v_t k_t^T
                         o_t = S_t r_t
       Epilogue (fused): per-head group-norm, + (r*k*r_k).sum(-1)*v residual, * g gate,
                         single lane-dense (T, C) store.
    """
    T, C = r_ref.shape
    D = HEAD_DIM
    H = C // D

    r = r_ref[...]
    k_raw = k_ref[...]
    v = v_ref[...]
    vT = vT_ref[...]                         # (C, T) value columns
    a_lr = a_ref[...]
    g = g_ref[...]
    w_exp = jnp.exp(w_ref[...])              # hoisted: one EUP pass over (T, C)

    k_k = kk_ref[...]
    k_a = ka_ref[...]
    gn_w = gnw_ref[...]
    gn_b = gnb_ref[...]
    r_k = rk_ref[...]

    # full-width (128-lane) elementwise before the head split
    kk = k_raw * k_k
    k_mod = k_raw * (1.0 + (a_lr - 1.0) * k_a)
    eps_gn = D * 1e-5                        # RWKV convention: GroupNorm eps = head_dim * 1e-5

    o_heads = []
    res_heads = []
    for h in range(H):                       # static unroll over heads
        sl = slice(h * D, (h + 1) * D)
        r_h, v_h, a_h = r[:, sl], v[:, sl], a_lr[:, sl]
        k_h = k_mod[:, sl]
        wexp_h = w_exp[:, sl]
        kk_h = kk[:, sl]
        # NOTE: torch F.normalize clamps the norm; this is x * rsqrt(|x|^2 + eps).
        kk_h = kk_h * lax.rsqrt(jnp.sum(kk_h * kk_h, axis=-1, keepdims=True) + 1e-6)
        aa = -kk_h                           # delta-rule "a"
        bb = kk_h * a_h                      # delta-rule "b"
        vT_h = vT[sl, :]                     # (D, T) value columns for this head

        S = jnp.zeros((D, D), jnp.float32)   # register/VMEM-resident state (no scratch I/O)
        rows, chunks = [], []
        # TODO(synk): for long sequences (T >> 64) switch to lax.fori_loop(unroll=8).
        for t in range(T):                   # T small & static -> fully unrolled
            w_t = wexp_h[t:t + 1, :]
            k_t = k_h[t:t + 1, :]
            a_t = aa[t:t + 1, :]
            b_t = bb[t:t + 1, :]
            v_c = vT_h[:, t:t + 1]
            Sa = jnp.sum(S * a_t, axis=1, keepdims=True)          # (D,1) = S @ a_t^T
            S = S * w_t + Sa * b_t + v_c * k_t                    # decay + delta + write
            # o_t = r_t @ S^T : off the S->S critical path; MXU is otherwise idle here.
            # TODO(synk): on v5e prefer the VPU form jnp.sum(S * r_t, axis=1) (FIFO MXU).
            rows.append(lax.dot_general(r_h[t:t + 1, :], S, (((1,), (1,)), ((), ())),
                                        preferred_element_type=jnp.float32))
            if len(rows) == 8 or t == T - 1:                      # bound live row values
                chunks.append(jnp.concatenate(rows, axis=0))
                rows = []
        o_h = chunks[0] if len(chunks) == 1 else jnp.concatenate(chunks, axis=0)

        # fused epilogue, per head: group-norm stats + r*k*r_k residual
        mu = jnp.mean(o_h, axis=-1, keepdims=True)
        var = jnp.mean((o_h - mu) ** 2, axis=-1, keepdims=True)
        o_heads.append((o_h - mu) * lax.rsqrt(var + eps_gn))
        res_heads.append(jnp.sum(r_h * k_h * r_k[:, sl], axis=-1, keepdims=True) * v_h)

    o_full = o_heads[0] if H == 1 else jnp.concatenate(o_heads, axis=1)       # (T, C)
    res_full = res_heads[0] if H == 1 else jnp.concatenate(res_heads, axis=1)
    # group-norm affine + residual + output gate, one lane-dense (T, C) store
    o_ref[...] = (o_full * gn_w + gn_b + res_full) * g


def rwkv7_recurrence(r, w, k, v, vT, a, g, k_k, k_a, gn_w, gn_b, r_k):
    """All activation inputs/outputs stay in the natural (B, T, C) layout (no transposes);
    vT is the single transposed (B, C, T) view of v."""
    B, T, C = r.shape
    act = pl.BlockSpec((None, T, C), lambda i: (i, 0, 0))
    vts = pl.BlockSpec((None, C, T), lambda i: (i, 0, 0))
    par = pl.BlockSpec((1, C), lambda i: (0, 0))
    return pl.pallas_call(
        _rwkv7_kernel,
        out_shape=jax.ShapeDtypeStruct((B, T, C), jnp.float32),
        grid=(B,),
        in_specs=[act, act, act, act, vts, act, act, par, par, par, par, par],
        out_specs=act,
        compiler_params=pltpu.CompilerParams(
            dimension_semantics=("parallel",),
            vmem_limit_bytes=_VMEM_LIMIT),
    )(r, w, k, v, vT, a, g, k_k, k_a, gn_w, gn_b, r_k)


# ----------------- fused tail: W_o proj -> max-pool -> ReLU -> Linear -----------------

def _tail_kernel(og_ref, wo_ref, wc_ref, bc_ref, out_ref, *, seq_len):
    o = jnp.dot(og_ref[...].astype(jnp.bfloat16), wo_ref[...],
                preferred_element_type=jnp.float32)                 # (bg*L, C)
    nb = o.shape[0] // seq_len
    h = jnp.max(o.reshape(nb, seq_len, o.shape[-1]), axis=1)        # max over sequence
    h = jnp.maximum(h, 0.0)                                         # ReLU
    # TODO(synk): dropout is identity in eval mode; training-mode dropout not implemented.
    out_ref[...] = jnp.dot(h, wc_ref[...],
                           preferred_element_type=jnp.float32) + bc_ref[...]


def classifier_tail(og2d, batch, seq_len, W_o_bf16, Wc_pad, bc_pad, n_cls):
    C = og2d.shape[1]
    bg = batch if batch * seq_len <= 1024 else 8        # batch elements per block
    Bp = _round_up(batch, bg)
    if Bp != batch:
        og2d = jnp.pad(og2d, ((0, (Bp - batch) * seq_len), (0, 0)))

    # TODO(synk): for very large C, also block the K dim of W_o with an f32 accumulator.
    out = pl.pallas_call(
        functools.partial(_tail_kernel, seq_len=seq_len),
        out_shape=jax.ShapeDtypeStruct((Bp, 128), jnp.float32),
        grid=(Bp // bg,),
        in_specs=[pl.BlockSpec((bg * seq_len, C), lambda i: (i, 0)),
                  pl.BlockSpec((C, C), lambda i: (0, 0)),
                  pl.BlockSpec((C, 128), lambda i: (0, 0)),
                  pl.BlockSpec((1, 128), lambda i: (0, 0))],
        out_specs=pl.BlockSpec((bg, 128), lambda i: (i, 0)),
        compiler_params=pltpu.CompilerParams(
            dimension_semantics=("parallel",),
            vmem_limit_bytes=_VMEM_LIMIT),
    )(og2d, W_o_bf16, Wc_pad, bc_pad)
    return out[:batch, :n_cls]


# ----------------------------------- JAX glue -----------------------------------

def prepare_params(p):
    """One-time weight fusion / packing (hoisted out of the per-call forward)."""
    C = p["W_r"].shape[0]
    W_list = [p["W_r"], p["W_k"], p["W_v"], p["w_lora_A"], p["a_lora_A"], p["g_lora_A"]]
    mix_list = [p["x_r"], p["x_k"], p["x_v"], p["x_w"], p["x_a"], p["x_g"]]
    W_top = jnp.concatenate(W_list, axis=1)
    W_bot = jnp.concatenate([m[:, None] * Wm for m, Wm in zip(mix_list, W_list)], axis=1)

    q = dict(p)
    # (x + delta*mix) @ W  ==  [x | delta] @ [W ; diag(mix) W]   (single bf16 MXU matmul)
    q["W_stage1_bf16"] = jnp.concatenate([W_top, W_bot], axis=0).astype(jnp.bfloat16)
    q["W_o_bf16"] = p["W_o"].astype(jnp.bfloat16)

    n_cls = p["cls_W"].shape[1]
    q["cls_W_pad"] = jnp.zeros((C, 128), jnp.float32).at[:, :n_cls].set(
        p["cls_W"].astype(jnp.float32))
    q["cls_b_pad"] = jnp.zeros((1, 128), jnp.float32).at[:, :n_cls].set(
        p["cls_b"].astype(jnp.float32))

    for name in ("k_k", "k_a", "gn_w", "gn_b", "w_lora_b", "a_lora_b"):
        q[name + "_row"] = p[name].reshape(1, C).astype(jnp.float32)
    q["r_k_row"] = p["r_k"].reshape(1, C).astype(jnp.float32)
    return q


def text_rwkv_forward(params, token_ids):
    B, L = token_ids.shape
    C = params["embed"].shape[1]

    # --- embedding ---
    # TODO(synk): real ELMo biLM needs pretrained options/weight files; substituted with a
    # deterministic embedding table producing the same (B, L, C) output shape.
    x = params["embed"][token_ids]                                  # (B, L, C)

    # --- RWKV7Attention stage 1: token shift + fused r/k/v/LoRA-A projections ---
    shifted = jnp.pad(x, ((0, 0), (1, 0), (0, 0)))[:, :L, :]
    delta = shifted - x
    M = B * L
    x2 = jnp.concatenate([x.reshape(M, C), delta.reshape(M, C)], axis=1)     # (M, 2C)

    dw = params["w_lora_A"].shape[1]
    da = params["a_lora_A"].shape[1]
    dg = params["g_lora_A"].shape[1]
    proj = pallas_matmul(x2, params["W_stage1_bf16"])               # (M, 3C + dw + da + dg)
    r = proj[:, :C]
    k = proj[:, C:2 * C]
    v = proj[:, 2 * C:3 * C]
    h_w = proj[:, 3 * C:3 * C + dw]
    h_a = proj[:, 3 * C + dw:3 * C + dw + da]
    h_g = proj[:, 3 * C + dw + da:]

    # --- stage 2: fused LoRA-B matmuls + decay / lr / gate nonlinearities ---
    w, a, g = lora_stage2(h_w, h_a, h_g,
                          params["w_lora_B"], params["a_lora_B"], params["g_lora_B"],
                          params["w_lora_b_row"], params["a_lora_b_row"])

    # --- stage 3: delta-rule recurrence + fused kk/k_a prologue, group-norm/residual/gate ---
    # (layer 0: v_first = v, no v-lora)
    to3 = lambda t: t.reshape(B, L, C)
    v3 = to3(v)
    vT = jnp.swapaxes(v3, 1, 2)                                     # only wrapper-side transpose
    o = rwkv7_recurrence(to3(r), to3(w), to3(k), v3, vT, to3(a), to3(g),
                         params["k_k_row"], params["k_a_row"],
                         params["gn_w_row"], params["gn_b_row"], params["r_k_row"])
    og = o.reshape(M, C)

    # --- tail: W_o projection -> max over sequence -> ReLU -> Linear(C, 2) ---
    return classifier_tail(og, B, L, params["W_o_bf16"],
                           params["cls_W_pad"], params["cls_b_pad"],
                           params["cls_W"].shape[1])


def init_params(key, vocab, hidden):
    n_heads = hidden // HEAD_DIM
    ki = iter(jax.random.split(key, 32))

    def nrm(shape, scale=0.05):
        return (scale * jax.random.normal(next(ki), shape)).astype(jnp.float32)

    return dict(
        embed=nrm((vocab, hidden), 1.0),
        x_r=nrm((hidden,), 0.5), x_w=nrm((hidden,), 0.5), x_k=nrm((hidden,), 0.5),
        x_v=nrm((hidden,), 0.5), x_a=nrm((hidden,), 0.5), x_g=nrm((hidden,), 0.5),
        W_r=nrm((hidden, hidden)), W_k=nrm((hidden, hidden)), W_v=nrm((hidden, hidden)),
        w_lora_A=nrm((hidden, 64)), w_lora_B=nrm((64, hidden)), w_lora_b=nrm((hidden,), 0.1),
        a_lora_A=nrm((hidden, 64)), a_lora_B=nrm((64, hidden)), a_lora_b=nrm((hidden,), 0.1),
        g_lora_A=nrm((hidden, 128)), g_lora_B=nrm((128, hidden)),
        k_k=1.0 + nrm((hidden,), 0.1),
        k_a=1.0 + nrm((hidden,), 0.1),
        r_k=nrm((n_heads, HEAD_DIM), 0.1),
        gn_w=1.0 + nrm((hidden,), 0.1),
        gn_b=nrm((hidden,), 0.1),
        W_o=nrm((hidden, hidden)),
        cls_W=nrm((hidden, 2), 0.1),
        cls_b=nrm((2,), 0.1),
    )


if __name__ == "__main__":
    key = jax.random.PRNGKey(0)
    B, L = 2, 8                 # batch, sequence length
    C = 128                     # vector_size (multiple of head_dim=64)
    VOCAB = 50

    params = prepare_params(init_params(key, VOCAB, C))   # one-time weight fusion / packing
    tokens = jax.random.randint(jax.random.fold_in(key, 123), (B, L), 0, VOCAB)

    logits = jax.jit(text_rwkv_forward)(params, tokens)
    logits = jax.block_until_ready(logits)
    assert logits.shape == (B, 2) and logits.dtype == jnp.float32
    assert bool(jnp.all(jnp.isfinite(logits)))
    print("KERNEL_OK")
</pallas_src>

<mosaic_0001>
module attributes {stable_mosaic.version = 11 : i64} {
  func.func @_matmul_kernel(%arg0: i32, %arg1: i32, %arg2: i32, %arg3: memref<16x256xbf16, #tpu.memory_space<vmem>>, %arg4: memref<256x640xbf16, #tpu.memory_space<vmem>>, %arg5: memref<16x640xf32, #tpu.memory_space<vmem>>, %arg6: memref<16x640xf32, #tpu.memory_space<vmem>>) attributes {dimension_semantics = [#tpu.dimension_semantics<parallel>, #tpu.dimension_semantics<parallel>, #tpu.dimension_semantics<arbitrary>], iteration_bounds = array<i64: 1, 1, 1>, scalar_prefetch = 0 : i64, scratch_operands = 1 : i64, tpu.core_type = #tpu.core_type<tc>, window_params = [{transform_indices = @transform_0, window_bounds = array<i64: 16, 256>}, {transform_indices = @transform_1, window_bounds = array<i64: 256, 640>}, {transform_indices = @transform_2, window_bounds = array<i64: 16, 640>}]} {
    %c0_i32 = arith.constant 0 : i32
    %0 = arith.cmpi eq, %arg2, %c0_i32 : i32
    %1 = arith.extui %0 : i1 to i32
    %c0_i32_0 = arith.constant 0 : i32
    %2 = arith.cmpi ne, %1, %c0_i32_0 : i32
    scf.if %2 {
      %cst_10 = arith.constant 0.000000e+00 : f32
      %12 = vector.broadcast %cst_10 : f32 to vector<16x640xf32>
      %c0_11 = arith.constant 0 : index
      %c0_12 = arith.constant 0 : index
      %13 = vector.load %arg6[%c0_11, %c0_12] : memref<16x640xf32, #tpu.memory_space<vmem>>, vector<16x640xf32>
      tpu.vector_store %arg6[%c0_11, %c0_12], %12 {strides = array<i32>} : memref<16x640xf32, #tpu.memory_space<vmem>>, vector<16x640xf32>,
    } else {
    }
    %c0 = arith.constant 0 : index
    %c0_1 = arith.constant 0 : index
    %3 = vector.load %arg6[%c0, %c0_1] : memref<16x640xf32, #tpu.memory_space<vmem>>, vector<16x640xf32>
    %c0_2 = arith.constant 0 : index
    %c0_3 = arith.constant 0 : index
    %4 = vector.load %arg3[%c0_2, %c0_3] : memref<16x256xbf16, #tpu.memory_space<vmem>>, vector<16x256xbf16>
    %c0_4 = arith.constant 0 : index
    %c0_5 = arith.constant 0 : index
    %5 = vector.load %arg4[%c0_4, %c0_5] : memref<256x640xbf16, #tpu.memory_space<vmem>>, vector<256x640xbf16>
    %cst = arith.constant dense<0.000000e+00> : vector<16x640xf32>
    %6 = tpu.matmul %4, %5, %cst {dimension_numbers = #tpu.dot_dimension_numbers<[1], [0], [0], [1], [0, 0, 1, 1], [], []>} : vector<16x256xbf16>, vector<256x640xbf16>, vector<16x640xf32> -> vector<16x640xf32>
    %7 = arith.addf %3, %6 : vector<16x640xf32>
    %c0_6 = arith.constant 0 : index
    %c0_7 = arith.constant 0 : index
    %8 = vector.load %arg6[%c0_6, %c0_7] : memref<16x640xf32, #tpu.memory_space<vmem>>, vector<16x640xf32>
    tpu.vector_store %arg6[%c0_6, %c0_7], %7 {strides = array<i32>} : memref<16x640xf32, #tpu.memory_space<vmem>>, vector<16x640xf32>,
    %c0_i32_8 = arith.constant 0 : i32
    %9 = arith.cmpi eq, %arg2, %c0_i32_8 : i32
    %10 = arith.extui %9 : i1 to i32
    %c0_i32_9 = arith.constant 0 : i32
    %11 = arith.cmpi ne, %10, %c0_i32_9 : i32
    scf.if %11 {
      %c0_10 = arith.constant 0 : index
      %c0_11 = arith.constant 0 : index
      %12 = vector.load %arg6[%c0_10, %c0_11] : memref<16x640xf32, #tpu.memory_space<vmem>>, vector<16x640xf32>
      %c0_12 = arith.constant 0 : index
      %c0_13 = arith.constant 0 : index
      %13 = vector.load %arg5[%c0_12, %c0_13] : memref<16x640xf32, #tpu.memory_space<vmem>>, vector<16x640xf32>
      tpu.vector_store %arg5[%c0_12, %c0_13], %12 {strides = array<i32>} : memref<16x640xf32, #tpu.memory_space<vmem>>, vector<16x640xf32>,
    } else {
    }
    return
  }
  func.func @transform_0(%arg0: i32, %arg1: i32, %arg2: i32) -> (i32, i32) {
    %c0_i32 = arith.constant 0 : i32
    return %arg0, %arg2 : i32, i32
  }
  func.func @transform_1(%arg0: i32, %arg1: i32, %arg2: i32) -> (i32, i32) {
    %c0_i32 = arith.constant 0 : i32
    return %arg2, %arg1 : i32, i32
  }
  func.func @transform_2(%arg0: i32, %arg1: i32, %arg2: i32) -> (i32, i32) {
    %c0_i32 = arith.constant 0 : i32
    return %arg0, %arg1 : i32, i32
  }
}

module attributes {stable_mosaic.version = 11 : i64} {
  func.func @_tail_kernel(%arg0: i32, %arg1: memref<16x128xf32, #tpu.memory_space<vmem>>, %arg2: memref<128x128xbf16, #tpu.memory_space<vmem>>, %arg3: memref<128x128xf32, #tpu.memory_space<vmem>>, %arg4: memref<1x128xf32, #tpu.memory_space<vmem>>, %arg5: memref<2x128xf32, #tpu.memory_space<vmem>>) attributes {dimension_semantics = [#tpu.dimension_semantics<parallel>], iteration_bounds = array<i64: 1>, scalar_prefetch = 0 : i64, scratch_operands = 0 : i64, tpu.core_type = #tpu.core_type<tc>, window_params = [{transform_indices = @transform_0, window_bounds = array<i64: 16, 128>}, {pipeline_mode = #tpu.pipeline_mode<synchronous>, transform_indices = @transform_1, window_bounds = array<i64: 128, 128>}, {pipeline_mode = #tpu.pipeline_mode<synchronous>, transform_indices = @transform_2, window_bounds = array<i64: 128, 128>}, {pipeline_mode = #tpu.pipeline_mode<synchronous>, transform_indices = @transform_3, window_bounds = array<i64: 1, 128>}, {transform_indices = @transform_4, window_bounds = array<i64: 2, 128>}]} {
    %c0 = arith.constant 0 : index
    %c0_0 = arith.constant 0 : index
    %0 = vector.load %arg1[%c0, %c0_0] : memref<16x128xf32, #tpu.memory_space<vmem>>, vector<16x128xf32>
    %1 = arith.truncf %0 : vector<16x128xf32> to vector<16x128xbf16>
    %c0_1 = arith.constant 0 : index
    %c0_2 = arith.constant 0 : index
    %2 = vector.load %arg2[%c0_1, %c0_2] : memref<128x128xbf16, #tpu.memory_space<vmem>>, vector<128x128xbf16>
    %cst = arith.constant dense<0.000000e+00> : vector<16x128xf32>
    %3 = tpu.matmul %1, %2, %cst {dimension_numbers = #tpu.dot_dimension_numbers<[1], [0], [0], [1], [0, 0, 1, 1], [], []>} : vector<16x128xbf16>, vector<128x128xbf16>, vector<16x128xf32> -> vector<16x128xf32>
    %4 = vector.shape_cast %3 : vector<16x128xf32> to vector<2x8x128xf32>
    %cst_3 = arith.constant dense<0xFF800000> : vector<2x128xf32>
    %5 = vector.multi_reduction <maximumf>, %4, %cst_3 [1] : vector<2x8x128xf32> to vector<2x128xf32>
    %cst_4 = arith.constant 0.000000e+00 : f32
    %6 = vector.broadcast %cst_4 : f32 to vector<2x128xf32>
    %7 = arith.maximumf %5, %6 : vector<2x128xf32>
    %c0_5 = arith.constant 0 : index
    %c0_6 = arith.constant 0 : index
    %8 = vector.load %arg3[%c0_5, %c0_6] : memref<128x128xf32, #tpu.memory_space<vmem>>, vector<128x128xf32>
    %cst_7 = arith.constant dense<0.000000e+00> : vector<2x128xf32>
    %9 = tpu.matmul %7, %8, %cst_7 {dimension_numbers = #tpu.dot_dimension_numbers<[1], [0], [0], [1], [0, 0, 1, 1], [], []>} : vector<2x128xf32>, vector<128x128xf32>, vector<2x128xf32> -> vector<2x128xf32>
    %c0_8 = arith.constant 0 : index
    %c0_9 = arith.constant 0 : index
    %10 = vector.load %arg4[%c0_8, %c0_9] : memref<1x128xf32, #tpu.memory_space<vmem>>, vector<1x128xf32>
    %11 = vector.broadcast %10 : vector<1x128xf32> to vector<2x128xf32>
    %12 = arith.addf %9, %11 : vector<2x128xf32>
    %c0_10 = arith.constant 0 : index
    %c0_11 = arith.constant 0 : index
    %13 = vector.load %arg5[%c0_10, %c0_11] : memref<2x128xf32, #tpu.memory_space<vmem>>, vector<2x128xf32>
    tpu.vector_store %arg5[%c0_10, %c0_11], %12 {strides = array<i32>} : memref<2x128xf32, #tpu.memory_space<vmem>>, vector<2x128xf32>,
    return
  }
  func.func @transform_0(%arg0: i32) -> (i32, i32) {
    %c0_i32 = arith.constant 0 : i32
    %c0_i32_0 = arith.constant 0 : i32
    return %arg0, %c0_i32 : i32, i32
  }
  func.func @transform_1(%arg0: i32) -> (i32, i32) {
    %c0_i32 = arith.constant 0 : i32
    %c0_i32_0 = arith.constant 0 : i32
    %c0_i32_1 = arith.constant 0 : i32
    return %c0_i32, %c0_i32_0 : i32, i32
  }
  func.func @transform_2(%arg0: i32) -> (i32, i32) {
    %c0_i32 = arith.constant 0 : i32
    %c0_i32_0 = arith.constant 0 : i32
    %c0_i32_1 = arith.constant 0 : i32
    return %c0_i32, %c0_i32_0 : i32, i32
  }
  func.func @transform_3(%arg0: i32) -> (i32, i32) {
    %c0_i32 = arith.constant 0 : i32
    %c0_i32_0 = arith.constant 0 : i32
    %c0_i32_1 = arith.constant 0 : i32
    return %c0_i32, %c0_i32_0 : i32, i32
  }
  func.func @transform_4(%arg0: i32) -> (i32, i32) {
    %c0_i32 = arith.constant 0 : i32
    %c0_i32_0 = arith.constant 0 : i32
    return %arg0, %c0_i32 : i32, i32
  }
}

module attributes {stable_mosaic.version = 11 : i64} {
  func.func @_rwkv7_kernel(%arg0: i32, %arg1: memref<1x8x128xf32, #tpu.memory_space<vmem>>, %arg2: memref<1x8x128xf32, #tpu.memory_space<vmem>>, %arg3: memref<1x8x128xf32, #tpu.memory_space<vmem>>, %arg4: memref<1x8x128xf32, #tpu.memory_space<vmem>>, %arg5: memref<1x128x8xf32, #tpu.memory_space<vmem>>, %arg6: memref<1x8x128xf32, #tpu.memory_space<vmem>>, %arg7: memref<1x8x128xf32, #tpu.memory_space<vmem>>, %arg8: memref<1x128xf32, #tpu.memory_space<vmem>>, %arg9: memref<1x128xf32, #tpu.memory_space<vmem>>, %arg10: memref<1x128xf32, #tpu.memory_space<vmem>>, %arg11: memref<1x128xf32, #tpu.memory_space<vmem>>, %arg12: memref<1x128xf32, #tpu.memory_space<vmem>>, %arg13: memref<1x8x128xf32, #tpu.memory_space<vmem>>) attributes {dimension_semantics = [#tpu.dimension_semantics<parallel>], iteration_bounds = array<i64: 2>, scalar_prefetch = 0 : i64, scratch_operands = 0 : i64, tpu.core_type = #tpu.core_type<tc>, window_params = [{transform_indices = @transform_0, window_bounds = array<i64: 1, 8, 128>}, {transform_indices = @transform_1, window_bounds = array<i64: 1, 8, 128>}, {transform_indices = @transform_2, window_bounds = array<i64: 1, 8, 128>}, {transform_indices = @transform_3, window_bounds = array<i64: 1, 8, 128>}, {transform_indices = @transform_4, window_bounds = array<i64: 1, 128, 8>}, {transform_indices = @transform_5, window_bounds = array<i64: 1, 8, 128>}, {transform_indices = @transform_6, window_bounds = array<i64: 1, 8, 128>}, {pipeline_mode = #tpu.pipeline_mode<synchronous>, transform_indices = @transform_7, window_bounds = array<i64: 1, 128>}, {pipeline_mode = #tpu.pipeline_mode<synchronous>, transform_indices = @transform_8, window_bounds = array<i64: 1, 128>}, {pipeline_mode = #tpu.pipeline_mode<synchronous>, transform_indices = @transform_9, window_bounds = array<i64: 1, 128>}, {pipeline_mode = #tpu.pipeline_mode<synchronous>, transform_indices = @transform_10, window_bounds = array<i64: 1, 128>}, {pipeline_mode = #tpu.pipeline_mode<synchronous>, transform_indices = @transform_11, window_bounds = array<i64: 1, 128>}, {transform_indices = @transform_12, window_bounds = array<i64: 1, 8, 128>}]} {
    %c0 = arith.constant 0 : index
    %c0_0 = arith.constant 0 : index
    %c0_1 = arith.constant 0 : index
    %0 = vector.load %arg1[%c0, %c0_0, %c0_1] : memref<1x8x128xf32, #tpu.memory_space<vmem>>, vector<1x8x128xf32>
    %1 = vector.shape_cast %0 : vector<1x8x128xf32> to vector<8x128xf32>
    %c0_2 = arith.constant 0 : index
    %c0_3 = arith.constant 0 : index
    %c0_4 = arith.constant 0 : index
    %2 = vector.load %arg3[%c0_2, %c0_3, %c0_4] : memref<1x8x128xf32, #tpu.memory_space<vmem>>, vector<1x8x128xf32>
    %3 = vector.shape_cast %2 : vector<1x8x128xf32> to vector<8x128xf32>
    %c0_5 = arith.constant 0 : index
    %c0_6 = arith.constant 0 : index
    %c0_7 = arith.constant 0 : index
    %4 = vector.load %arg4[%c0_5, %c0_6, %c0_7] : memref<1x8x128xf32, #tpu.memory_space<vmem>>, vector<1x8x128xf32>
    %5 = vector.shape_cast %4 : vector<1x8x128xf32> to vector<8x128xf32>
    %c0_8 = arith.constant 0 : index
    %c0_9 = arith.constant 0 : index
    %c0_10 = arith.constant 0 : index
    %6 = vector.load %arg5[%c0_8, %c0_9, %c0_10] : memref<1x128x8xf32, #tpu.memory_space<vmem>>, vector<1x128x8xf32>
    %7 = vector.shape_cast %6 : vector<1x128x8xf32> to vector<128x8xf32>
    %c0_11 = arith.constant 0 : index
    %c0_12 = arith.constant 0 : index
    %c0_13 = arith.constant 0 : index
    %8 = vector.load %arg6[%c0_11, %c0_12, %c0_13] : memref<1x8x128xf32, #tpu.memory_space<vmem>>, vector<1x8x128xf32>
    %9 = vector.shape_cast %8 : vector<1x8x128xf32> to vector<8x128xf32>
    %c0_14 = arith.constant 0 : index
    %c0_15 = arith.constant 0 : index
    %c0_16 = arith.constant 0 : index
    %10 = vector.load %arg7[%c0_14, %c0_15, %c0_16] : memref<1x8x128xf32, #tpu.memory_space<vmem>>, vector<1x8x128xf32>
    %11 = vector.shape_cast %10 : vector<1x8x128xf32> to vector<8x128xf32>
    %c0_17 = arith.constant 0 : index
    %c0_18 = arith.constant 0 : index
    %c0_19 = arith.constant 0 : index
    %12 = vector.load %arg2[%c0_17, %c0_18, %c0_19] : memref<1x8x128xf32, #tpu.memory_space<vmem>>, vector<1x8x128xf32>
    %13 = vector.shape_cast %12 : vector<1x8x128xf32> to vector<8x128xf32>
    %14 = math.exp %13 : vector<8x128xf32>
    %c0_20 = arith.constant 0 : index
    %c0_21 = arith.constant 0 : index
    %15 = vector.load %arg8[%c0_20, %c0_21] : memref<1x128xf32, #tpu.memory_space<vmem>>, vector<1x128xf32>
    %c0_22 = arith.constant 0 : index
    %c0_23 = arith.constant 0 : index
    %16 = vector.load %arg9[%c0_22, %c0_23] : memref<1x128xf32, #tpu.memory_space<vmem>>, vector<1x128xf32>
    %c0_24 = arith.constant 0 : index
    %c0_25 = arith.constant 0 : index
    %17 = vector.load %arg10[%c0_24, %c0_25] : memref<1x128xf32, #tpu.memory_space<vmem>>, vector<1x128xf32>
    %c0_26 = arith.constant 0 : index
    %c0_27 = arith.constant 0 : index
    %18 = vector.load %arg11[%c0_26, %c0_27] : memref<1x128xf32, #tpu.memory_space<vmem>>, vector<1x128xf32>
    %c0_28 = arith.constant 0 : index
    %c0_29 = arith.constant 0 : index
    %19 = vector.load %arg12[%c0_28, %c0_29] : memref<1x128xf32, #tpu.memory_space<vmem>>, vector<1x128xf32>
    %20 = vector.broadcast %15 : vector<1x128xf32> to vector<8x128xf32>
    %21 = arith.mulf %3, %20 : vector<8x128xf32>
    %cst = arith.constant 1.000000e+00 : f32
    %22 = vector.broadcast %cst : f32 to vector<8x128xf32>
    %23 = arith.subf %9, %22 : vector<8x128xf32>
    %24 = vector.broadcast %16 : vector<1x128xf32> to vector<8x128xf32>
    %25 = arith.mulf %23, %24 : vector<8x128xf32>
    %cst_30 = arith.constant 1.000000e+00 : f32
    %26 = vector.broadcast %cst_30 : f32 to vector<8x128xf32>
    %27 = arith.addf %26, %25 : vector<8x128xf32>
    %28 = arith.mulf %3, %27 : vector<8x128xf32>
    %29 = vector.extract_strided_slice %1 {offsets = [0, 0], sizes = [8, 64], strides = [1, 1]} : vector<8x128xf32> to vector<8x64xf32>
    %30 = vector.extract_strided_slice %5 {offsets = [0, 0], sizes = [8, 64], strides = [1, 1]} : vector<8x128xf32> to vector<8x64xf32>
    %31 = vector.extract_strided_slice %9 {offsets = [0, 0], sizes = [8, 64], strides = [1, 1]} : vector<8x128xf32> to vector<8x64xf32>
    %32 = vector.extract_strided_slice %28 {offsets = [0, 0], sizes = [8, 64], strides = [1, 1]} : vector<8x128xf32> to vector<8x64xf32>
    %33 = vector.extract_strided_slice %14 {offsets = [0, 0], sizes = [8, 64], strides = [1, 1]} : vector<8x128xf32> to vector<8x64xf32>
    %34 = vector.extract_strided_slice %21 {offsets = [0, 0], sizes = [8, 64], strides = [1, 1]} : vector<8x128xf32> to vector<8x64xf32>
    %35 = arith.mulf %34, %34 : vector<8x64xf32>
    %cst_31 = arith.constant dense<0.000000e+00> : vector<8xf32>
    %36 = vector.multi_reduction <add>, %35, %cst_31 [1] : vector<8x64xf32> to vector<8xf32>
    %37 = vector.shape_cast %36 : vector<8xf32> to vector<8x1xf32>
    %cst_32 = arith.constant 9.99999997E-7 : f32
    %38 = vector.broadcast %cst_32 : f32 to vector<8x1xf32>
    %39 = arith.addf %37, %38 : vector<8x1xf32>
    %40 = math.rsqrt %39 : vector<8x1xf32>
    %41 = vector.broadcast %40 : vector<8x1xf32> to vector<8x64xf32>
    %42 = arith.mulf %34, %41 : vector<8x64xf32>
    %cst_33 = arith.constant 0.000000e+00 : f32
    %43 = vector.broadcast %cst_33 : f32 to vector<8x64xf32>
    %44 = arith.subf %43, %42 : vector<8x64xf32>
    %45 = arith.mulf %42, %31 : vector<8x64xf32>
    %46 = vector.extract_strided_slice %7 {offsets = [0, 0], sizes = [64, 8], strides = [1, 1]} : vector<128x8xf32> to vector<64x8xf32>
    %cst_34 = arith.constant 0.000000e+00 : f32
    %47 = vector.broadcast %cst_34 : f32 to vector<64x64xf32>
    %48 = vector.extract_strided_slice %33 {offsets = [0, 0], sizes = [1, 64], strides = [1, 1]} : vector<8x64xf32> to vector<1x64xf32>
    %49 = vector.extract_strided_slice %32 {offsets = [0, 0], sizes = [1, 64], strides = [1, 1]} : vector<8x64xf32> to vector<1x64xf32>
    %50 = vector.extract_strided_slice %44 {offsets = [0, 0], sizes = [1, 64], strides = [1, 1]} : vector<8x64xf32> to vector<1x64xf32>
    %51 = vector.extract_strided_slice %45 {offsets = [0, 0], sizes = [1, 64], strides = [1, 1]} : vector<8x64xf32> to vector<1x64xf32>
    %52 = vector.extract_strided_slice %46 {offsets = [0, 0], sizes = [64, 1], strides = [1, 1]} : vector<64x8xf32> to vector<64x1xf32>
    %53 = vector.broadcast %50 : vector<1x64xf32> to vector<64x64xf32>
    %54 = arith.mulf %47, %53 : vector<64x64xf32>
    %cst_35 = arith.constant dense<0.000000e+00> : vector<64xf32>
    %55 = vector.multi_reduction <add>, %54, %cst_35 [1] : vector<64x64xf32> to vector<64xf32>
    %56 = vector.shape_cast %55 : vector<64xf32> to vector<64x1xf32>
    %57 = vector.broadcast %48 : vector<1x64xf32> to vector<64x64xf32>
    %58 = arith.mulf %47, %57 : vector<64x64xf32>
    %59 = vector.broadcast %56 : vector<64x1xf32> to vector<64x64xf32>
    %60 = vector.broadcast %51 : vector<1x64xf32> to vector<64x64xf32>
    %61 = arith.mulf %59, %60 : vector<64x64xf32>
    %62 = arith.addf %58, %61 : vector<64x64xf32>
    %63 = vector.broadcast %52 : vector<64x1xf32> to vector<64x64xf32>
    %64 = vector.broadcast %49 : vector<1x64xf32> to vector<64x64xf32>
    %65 = arith.mulf %63, %64 : vector<64x64xf32>
    %66 = arith.addf %62, %65 : vector<64x64xf32>
    %67 = vector.extract_strided_slice %29 {offsets = [0, 0], sizes = [1, 64], strides = [1, 1]} : vector<8x64xf32> to vector<1x64xf32>
    %cst_36 = arith.constant dense<0.000000e+00> : vector<1x64xf32>
    %68 = tpu.matmul %67, %66, %cst_36 {dimension_numbers = #tpu.dot_dimension_numbers<[1], [1], [0], [0], [0, 0, 1, 0], [], []>} : vector<1x64xf32>, vector<64x64xf32>, vector<1x64xf32> -> vector<1x64xf32>
    %69 = vector.extract_strided_slice %33 {offsets = [1, 0], sizes = [1, 64], strides = [1, 1]} : vector<8x64xf32> to vector<1x64xf32>
    %70 = vector.extract_strided_slice %32 {offsets = [1, 0], sizes = [1, 64], strides = [1, 1]} : vector<8x64xf32> to vector<1x64xf32>
    %71 = vector.extract_strided_slice %44 {offsets = [1, 0], sizes = [1, 64], strides = [1, 1]} : vector<8x64xf32> to vector<1x64xf32>
    %72 = vector.extract_strided_slice %45 {offsets = [1, 0], sizes = [1, 64], strides = [1, 1]} : vector<8x64xf32> to vector<1x64xf32>
    %73 = vector.extract_strided_slice %46 {offsets = [0, 1], sizes = [64, 1], strides = [1, 1]} : vector<64x8xf32> to vector<64x1xf32>
    %74 = vector.broadcast %71 : vector<1x64xf32> to vector<64x64xf32>
    %75 = arith.mulf %66, %74 : vector<64x64xf32>
    %cst_37 = arith.constant dense<0.000000e+00> : vector<64xf32>
    %76 = vector.multi_reduction <add>, %75, %cst_37 [1] : vector<64x64xf32> to vector<64xf32>
    %77 = vector.shape_cast %76 : vector<64xf32> to vector<64x1xf32>
    %78 = vector.broadcast %69 : vector<1x64xf32> to vector<64x64xf32>
    %79 = arith.mulf %66, %78 : vector<64x64xf32>
    %80 = vector.broadcast %77 : vector<64x1xf32> to vector<64x64xf32>
    %81 = vector.broadcast %72 : vector<1x64xf32> to vector<64x64xf32>
    %82 = arith.mulf %80, %81 : vector<64x64xf32>
    %83 = arith.addf %79, %82 : vector<64x64xf32>
    %84 = vector.broadcast %73 : vector<64x1xf32> to vector<64x64xf32>
    %85 = vector.broadcast %70 : vector<1x64xf32> to vector<64x64xf32>
    %86 = arith.mulf %84, %85 : vector<64x64xf32>
    %87 = arith.addf %83, %86 : vector<64x64xf32>
    %88 = vector.extract_strided_slice %29 {offsets = [1, 0], sizes = [1, 64], strides = [1, 1]} : vector<8x64xf32> to vector<1x64xf32>
    %cst_38 = arith.constant dense<0.000000e+00> : vector<1x64xf32>
    %89 = tpu.matmul %88, %87, %cst_38 {dimension_numbers = #tpu.dot_dimension_numbers<[1], [1], [0], [0], [0, 0, 1, 0], [], []>} : vector<1x64xf32>, vector<64x64xf32>, vector<1x64xf32> -> vector<1x64xf32>
    %90 = vector.extract_strided_slice %33 {offsets = [2, 0], sizes = [1, 64], strides = [1, 1]} : vector<8x64xf32> to vector<1x64xf32>
    %91 = vector.extract_strided_slice %32 {offsets = [2, 0], sizes = [1, 64], strides = [1, 1]} : vector<8x64xf32> to vector<1x64xf32>
    %92 = vector.extract_strided_slice %44 {offsets = [2, 0], sizes = [1, 64], strides = [1, 1]} : vector<8x64xf32> to vector<1x64xf32>
    %93 = vector.extract_strided_slice %45 {offsets = [2, 0], sizes = [1, 64], strides = [1, 1]} : vector<8x64xf32> to vector<1x64xf32>
    %94 = vector.extract_strided_slice %46 {offsets = [0, 2], sizes = [64, 1], strides = [1, 1]} : vector<64x8xf32> to vector<64x1xf32>
    %95 = vector.broadcast %92 : vector<1x64xf32> to vector<64x64xf32>
    %96 = arith.mulf %87, %95 : vector<64x64xf32>
    %cst_39 = arith.constant dense<0.000000e+00> : vector<64xf32>
    %97 = vector.multi_reduction <add>, %96, %cst_39 [1] : vector<64x64xf32> to vector<64xf32>
    %98 = vector.shape_cast %97 : vector<64xf32> to vector<64x1xf32>
    %99 = vector.broadcast %90 : vector<1x64xf32> to vector<64x64xf32>
    %100 = arith.mulf %87, %99 : vector<64x64xf32>
    %101 = vector.broadcast %98 : vector<64x1xf32> to vector<64x64xf32>
    %102 = vector.broadcast %93 : vector<1x64xf32> to vector<64x64xf32>
    %103 = arith.mulf %101, %102 : vector<64x64xf32>
    %104 = arith.addf %100, %103 : vector<64x64xf32>
    %105 = vector.broadcast %94 : vector<64x1xf32> to vector<64x64xf32>
    %106 = vector.broadcast %91 : vector<1x64xf32> to vector<64x64xf32>
    %107 = arith.mulf %105, %106 : vector<64x64xf32>
    %108 = arith.addf %104, %107 : vector<64x64xf32>
    %109 = vector.extract_strided_slice %29 {offsets = [2, 0], sizes = [1, 64], strides = [1, 1]} : vector<8x64xf32> to vector<1x64xf32>
    %cst_40 = arith.constant dense<0.000000e+00> : vector<1x64xf32>
    %110 = tpu.matmul %109, %108, %cst_40 {dimension_numbers = #tpu.dot_dimension_numbers<[1], [1], [0], [0], [0, 0, 1, 0], [], []>} : vector<1x64xf32>, vector<64x64xf32>, vector<1x64xf32> -> vector<1x64xf32>
    %111 = vector.extract_strided_slice %33 {offsets = [3, 0], sizes = [1, 64], strides = [1, 1]} : vector<8x64xf32> to vector<1x64xf32>
    %112 = vector.extract_strided_slice %32 {offsets = [3, 0], sizes = [1, 64], strides = [1, 1]} : vector<8x64xf32> to vector<1x64xf32>
    %113 = vector.extract_strided_slice %44 {offsets = [3, 0], sizes = [1, 64], strides = [1, 1]} : vector<8x64xf32> to vector<1x64xf32>
    %114 = vector.extract_strided_slice %45 {offsets = [3, 0], sizes = [1, 64], strides = [1, 1]} : vector<8x64xf32> to vector<1x64xf32>
    %115 = vector.extract_strided_slice %46 {offsets = [0, 3], sizes = [64, 1], strides = [1, 1]} : vector<64x8xf32> to vector<64x1xf32>
    %116 = vector.broadcast %113 : vector<1x64xf32> to vector<64x64xf32>
    %117 = arith.mulf %108, %116 : vector<64x64xf32>
    %cst_41 = arith.constant dense<0.000000e+00> : vector<64xf32>
    %118 = vector.multi_reduction <add>, %117, %cst_41 [1] : vector<64x64xf32> to vector<64xf32>
    %119 = vector.shape_cast %118 : vector<64xf32> to vector<64x1xf32>
    %120 = vector.broadcast %111 : vector<1x64xf32> to vector<64x64xf32>
    %121 = arith.mulf %108, %120 : vector<64x64xf32>
    %122 = vector.broadcast %119 : vector<64x1xf32> to vector<64x64xf32>
    %123 = vector.broadcast %114 : vector<1x64xf32> to vector<64x64xf32>
    %124 = arith.mulf %122, %123 : vector<64x64xf32>
    %125 = arith.addf %121, %124 : vector<64x64xf32>
    %126 = vector.broadcast %115 : vector<64x1xf32> to vector<64x64xf32>
    %127 = vector.broadcast %112 : vector<1x64xf32> to vector<64x64xf32>
    %128 = arith.mulf %126, %127 : vector<64x64xf32>
    %129 = arith.addf %125, %128 : vector<64x64xf32>
    %130 = vector.extract_strided_slice %29 {offsets = [3, 0], sizes = [1, 64], strides = [1, 1]} : vector<8x64xf32> to vector<1x64xf32>
    %cst_42 = arith.constant dense<0.000000e+00> : vector<1x64xf32>
    %131 = tpu.matmul %130, %129, %cst_42 {dimension_numbers = #tpu.dot_dimension_numbers<[1], [1], [0], [0], [0, 0, 1, 0], [], []>} : vector<1x64xf32>, vector<64x64xf32>, vector<1x64xf32> -> vector<1x64xf32>
    %132 = vector.extract_strided_slice %33 {offsets = [4, 0], sizes = [1, 64], strides = [1, 1]} : vector<8x64xf32> to vector<1x64xf32>
    %133 = vector.extract_strided_slice %32 {offsets = [4, 0], sizes = [1, 64], strides = [1, 1]} : vector<8x64xf32> to vector<1x64xf32>
    %134 = vector.extract_strided_slice %44 {offsets = [4, 0], sizes = [1, 64], strides = [1, 1]} : vector<8x64xf32> to vector<1x64xf32>
    %135 = vector.extract_strided_slice %45 {offsets = [4, 0], sizes = [1, 64], strides = [1, 1]} : vector<8x64xf32> to vector<1x64xf32>
    %136 = vector.extract_strided_slice %46 {offsets = [0, 4], sizes = [64, 1], strides = [1, 1]} : vector<64x8xf32> to vector<64x1xf32>
    %137 = vector.broadcast %134 : vector<1x64xf32> to vector<64x64xf32>
    %138 = arith.mulf %129, %137 : vector<64x64xf32>
    %cst_43 = arith.constant dense<0.000000e+00> : vector<64xf32>
    %139 = vector.multi_reduction <add>, %138, %cst_43 [1] : vector<64x64xf32> to vector<64xf32>
    %140 = vector.shape_cast %139 : vector<64xf32> to vector<64x1xf32>
    %141 = vector.broadcast %132 : vector<1x64xf32> to vector<64x64xf32>
    %142 = arith.mulf %129, %141 : vector<64x64xf32>
    %143 = vector.broadcast %140 : vector<64x1xf32> to vector<64x64xf32>
    %144 = vector.broadcast %135 : vector<1x64xf32> to vector<64x64xf32>
    %145 = arith.mulf %143, %144 : vector<64x64xf32>
    %146 = arith.addf %142, %145 : vector<64x64xf32>
    %147 = vector.broadcast %136 : vector<64x1xf32> to vector<64x64xf32>
    %148 = vector.broadcast %133 : vector<1x64xf32> to vector<64x64xf32>
    %149 = arith.mulf %147, %148 : vector<64x64xf32>
    %150 = arith.addf %146, %149 : vector<64x64xf32>
    %151 = vector.extract_strided_slice %29 {offsets = [4, 0], sizes = [1, 64], strides = [1, 1]} : vector<8x64xf32> to vector<1x64xf32>
    %cst_44 = arith.constant dense<0.000000e+00> : vector<1x64xf32>
    %152 = tpu.matmul %151, %150, %cst_44 {dimension_numbers = #tpu.dot_dimension_numbers<[1], [1], [0], [0], [0, 0, 1, 0], [], []>} : vector<1x64xf32>, vector<64x64xf32>, vector<1x64xf32> -> vector<1x64xf32>
    %153 = vector.extract_strided_slice %33 {offsets = [5, 0], sizes = [1, 64], strides = [1, 1]} : vector<8x64xf32> to vector<1x64xf32>
    %154 = vector.extract_strided_slice %32 {offsets = [5, 0], sizes = [1, 64], strides = [1, 1]} : vector<8x64xf32> to vector<1x64xf32>
    %155 = vector.extract_strided_slice %44 {offsets = [5, 0], sizes = [1, 64], strides = [1, 1]} : vector<8x64xf32> to vector<1x64xf32>
    %156 = vector.extract_strided_slice %45 {offsets = [5, 0], sizes = [1, 64], strides = [1, 1]} : vector<8x64xf32> to vector<1x64xf32>
    %157 = vector.extract_strided_slice %46 {offsets = [0, 5], sizes = [64, 1], strides = [1, 1]} : vector<64x8xf32> to vector<64x1xf32>
    %158 = vector.broadcast %155 : vector<1x64xf32> to vector<64x64xf32>
    %159 = arith.mulf %150, %158 : vector<64x64xf32>
    %cst_45 = arith.constant dense<0.000000e+00> : vector<64xf32>
    %160 = vector.multi_reduction <add>, %159, %cst_45 [1] : vector<64x64xf32> to vector<64xf32>
    %161 = vector.shape_cast %160 : vector<64xf32> to vector<64x1xf32>
    %162 = vector.broadcast %153 : vector<1x64xf32> to vector<64x64xf32>
    %163 = arith.mulf %150, %162 : vector<64x64xf32>
    %164 = vector.broadcast %161 : vector<64x1xf32> to vector<64x64xf32>
    %165 = vector.broadcast %156 : vector<1x64xf32> to vector<64x64xf32>
    %166 = arith.mulf %164, %165 : vector<64x64xf32>
    %167 = arith.addf %163, %166 : vector<64x64xf32>
    %168 = vector.broadcast %157 : vector<64x1xf32> to vector<64x64xf32>
    %169 = vector.broadcast %154 : vector<1x64xf32> to vector<64x64xf32>
    %170 = arith.mulf %168, %169 : vector<64x64xf32>
    %171 = arith.addf %167, %170 : vector<64x64xf32>
    %172 = vector.extract_strided_slice %29 {offsets = [5, 0], sizes = [1, 64], strides = [1, 1]} : vector<8x64xf32> to vector<1x64xf32>
    %cst_46 = arith.constant dense<0.000000e+00> : vector<1x64xf32>
    %173 = tpu.matmul %172, %171, %cst_46 {dimension_numbers = #tpu.dot_dimension_numbers<[1], [1], [0], [0], [0, 0, 1, 0], [], []>} : vector<1x64xf32>, vector<64x64xf32>, vector<1x64xf32> -> vector<1x64xf32>
    %174 = vector.extract_strided_slice %33 {offsets = [6, 0], sizes = [1, 64], strides = [1, 1]} : vector<8x64xf32> to vector<1x64xf32>
    %175 = vector.extract_strided_slice %32 {offsets = [6, 0], sizes = [1, 64], strides = [1, 1]} : vector<8x64xf32> to vector<1x64xf32>
    %176 = vector.extract_strided_slice %44 {offsets = [6, 0], sizes = [1, 64], strides = [1, 1]} : vector<8x64xf32> to vector<1x64xf32>
    %177 = vector.extract_strided_slice %45 {offsets = [6, 0], sizes = [1, 64], strides = [1, 1]} : vector<8x64xf32> to vector<1x64xf32>
    %178 = vector.extract_strided_slice %46 {offsets = [0, 6], sizes = [64, 1], strides = [1, 1]} : vector<64x8xf32> to vector<64x1xf32>
    %179 = vector.broadcast %176 : vector<1x64xf32> to vector<64x64xf32>
    %180 = arith.mulf %171, %179 : vector<64x64xf32>
    %cst_47 = arith.constant dense<0.000000e+00> : vector<64xf32>
    %181 = vector.multi_reduction <add>, %180, %cst_47 [1] : vector<64x64xf32> to vector<64xf32>
    %182 = vector.shape_cast %181 : vector<64xf32> to vector<64x1xf32>
    %183 = vector.broadcast %174 : vector<1x64xf32> to vector<64x64xf32>
    %184 = arith.mulf %171, %183 : vector<64x64xf32>
    %185 = vector.broadcast %182 : vector<64x1xf32> to vector<64x64xf32>
    %186 = vector.broadcast %177 : vector<1x64xf32> to vector<64x64xf32>
    %187 = arith.mulf %185, %186 : vector<64x64xf32>
    %188 = arith.addf %184, %187 : vector<64x64xf32>
    %189 = vector.broadcast %178 : vector<64x1xf32> to vector<64x64xf32>
    %190 = vector.broadcast %175 : vector<1x64xf32> to vector<64x64xf32>
    %191 = arith.mulf %189, %190 : vector<64x64xf32>
    %192 = arith.addf %188, %191 : vector<64x64xf32>
    %193 = vector.extract_strided_slice %29 {offsets = [6, 0], sizes = [1, 64], strides = [1, 1]} : vector<8x64xf32> to vector<1x64xf32>
    %cst_48 = arith.constant dense<0.000000e+00> : vector<1x64xf32>
    %194 = tpu.matmul %193, %192, %cst_48 {dimension_numbers = #tpu.dot_dimension_numbers<[1], [1], [0], [0], [0, 0, 1, 0], [], []>} : vector<1x64xf32>, vector<64x64xf32>, vector<1x64xf32> -> vector<1x64xf32>
    %195 = vector.extract_strided_slice %33 {offsets = [7, 0], sizes = [1, 64], strides = [1, 1]} : vector<8x64xf32> to vector<1x64xf32>
    %196 = vector.extract_strided_slice %32 {offsets = [7, 0], sizes = [1, 64], strides = [1, 1]} : vector<8x64xf32> to vector<1x64xf32>
    %197 = vector.extract_strided_slice %44 {offsets = [7, 0], sizes = [1, 64], strides = [1, 1]} : vector<8x64xf32> to vector<1x64xf32>
    %198 = vector.extract_strided_slice %45 {offsets = [7, 0], sizes = [1, 64], strides = [1, 1]} : vector<8x64xf32> to vector<1x64xf32>
    %199 = vector.extract_strided_slice %46 {offsets = [0, 7], sizes = [64, 1], strides = [1, 1]} : vector<64x8xf32> to vector<64x1xf32>
    %200 = vector.broadcast %197 : vector<1x64xf32> to vector<64x64xf32>
    %201 = arith.mulf %192, %200 : vector<64x64xf32>
    %cst_49 = arith.constant dense<0.000000e+00> : vector<64xf32>
    %202 = vector.multi_reduction <add>, %201, %cst_49 [1] : vector<64x64xf32> to vector<64xf32>
    %203 = vector.shape_cast %202 : vector<64xf32> to vector<64x1xf32>
    %204 = vector.broadcast %195 : vector<1x64xf32> to vector<64x64xf32>
    %205 = arith.mulf %192, %204 : vector<64x64xf32>
    %206 = vector.broadcast %203 : vector<64x1xf32> to vector<64x64xf32>
    %207 = vector.broadcast %198 : vector<1x64xf32> to vector<64x64xf32>
    %208 = arith.mulf %206, %207 : vector<64x64xf32>
    %209 = arith.addf %205, %208 : vector<64x64xf32>
    %210 = vector.broadcast %199 : vector<64x1xf32> to vector<64x64xf32>
    %211 = vector.broadcast %196 : vector<1x64xf32> to vector<64x64xf32>
    %212 = arith.mulf %210, %211 : vector<64x64xf32>
    %213 = arith.addf %209, %212 : vector<64x64xf32>
    %214 = vector.extract_strided_slice %29 {offsets = [7, 0], sizes = [1, 64], strides = [1, 1]} : vector<8x64xf32> to vector<1x64xf32>
    %cst_50 = arith.constant dense<0.000000e+00> : vector<1x64xf32>
    %215 = tpu.matmul %214, %213, %cst_50 {dimension_numbers = #tpu.dot_dimension_numbers<[1], [1], [0], [0], [0, 0, 1, 0], [], []>} : vector<1x64xf32>, vector<64x64xf32>, vector<1x64xf32> -> vector<1x64xf32>
    %216 = tpu.concatenate %68, %89, %110, %131, %152, %173, %194, %215 in 0 : vector<1x64xf32>, vector<1x64xf32>, vector<1x64xf32>, vector<1x64xf32>, vector<1x64xf32>, vector<1x64xf32>, vector<1x64xf32>, vector<1x64xf32> -> vector<8x64xf32>
    %cst_51 = arith.constant dense<0.000000e+00> : vector<8xf32>
    %217 = vector.multi_reduction <add>, %216, %cst_51 [1] : vector<8x64xf32> to vector<8xf32>
    %218 = vector.shape_cast %217 : vector<8xf32> to vector<8x1xf32>
    %cst_52 = arith.constant 6.400000e+01 : f32
    %219 = vector.broadcast %cst_52 : f32 to vector<8x1xf32>
    %220 = arith.divf %218, %219 : vector<8x1xf32>
    %221 = vector.broadcast %220 : vector<8x1xf32> to vector<8x64xf32>
    %222 = arith.subf %216, %221 : vector<8x64xf32>
    %223 = arith.mulf %222, %222 : vector<8x64xf32>
    %cst_53 = arith.constant dense<0.000000e+00> : vector<8xf32>
    %224 = vector.multi_reduction <add>, %223, %cst_53 [1] : vector<8x64xf32> to vector<8xf32>
    %225 = vector.shape_cast %224 : vector<8xf32> to vector<8x1xf32>
    %cst_54 = arith.constant 6.400000e+01 : f32
    %226 = vector.broadcast %cst_54 : f32 to vector<8x1xf32>
    %227 = arith.divf %225, %226 : vector<8x1xf32>
    %228 = vector.broadcast %220 : vector<8x1xf32> to vector<8x64xf32>
    %229 = arith.subf %216, %228 : vector<8x64xf32>
    %cst_55 = arith.constant 6.400000e-04 : f32
    %230 = vector.broadcast %cst_55 : f32 to vector<8x1xf32>
    %231 = arith.addf %227, %230 : vector<8x1xf32>
    %232 = math.rsqrt %231 : vector<8x1xf32>
    %233 = vector.broadcast %232 : vector<8x1xf32> to vector<8x64xf32>
    %234 = arith.mulf %229, %233 : vector<8x64xf32>
    %235 = arith.mulf %29, %32 : vector<8x64xf32>
    %236 = vector.extract_strided_slice %19 {offsets = [0, 0], sizes = [1, 64], strides = [1, 1]} : vector<1x128xf32> to vector<1x64xf32>
    %237 = vector.broadcast %236 : vector<1x64xf32> to vector<8x64xf32>
    %238 = arith.mulf %235, %237 : vector<8x64xf32>
    %cst_56 = arith.constant dense<0.000000e+00> : vector<8xf32>
    %239 = vector.multi_reduction <add>, %238, %cst_56 [1] : vector<8x64xf32> to vector<8xf32>
    %240 = vector.shape_cast %239 : vector<8xf32> to vector<8x1xf32>
    %241 = vector.broadcast %240 : vector<8x1xf32> to vector<8x64xf32>
    %242 = arith.mulf %241, %30 : vector<8x64xf32>
    %243 = vector.extract_strided_slice %1 {offsets = [0, 64], sizes = [8, 64], strides = [1, 1]} : vector<8x128xf32> to vector<8x64xf32>
    %244 = vector.extract_strided_slice %5 {offsets = [0, 64], sizes = [8, 64], strides = [1, 1]} : vector<8x128xf32> to vector<8x64xf32>
    %245 = vector.extract_strided_slice %9 {offsets = [0, 64], sizes = [8, 64], strides = [1, 1]} : vector<8x128xf32> to vector<8x64xf32>
    %246 = vector.extract_strided_slice %28 {offsets = [0, 64], sizes = [8, 64], strides = [1, 1]} : vector<8x128xf32> to vector<8x64xf32>
    %247 = vector.extract_strided_slice %14 {offsets = [0, 64], sizes = [8, 64], strides = [1, 1]} : vector<8x128xf32> to vector<8x64xf32>
    %248 = vector.extract_strided_slice %21 {offsets = [0, 64], sizes = [8, 64], strides = [1, 1]} : vector<8x128xf32> to vector<8x64xf32>
    %249 = arith.mulf %248, %248 : vector<8x64xf32>
    %cst_57 = arith.constant dense<0.000000e+00> : vector<8xf32>
    %250 = vector.multi_reduction <add>, %249, %cst_57 [1] : vector<8x64xf32> to vector<8xf32>
    %251 = vector.shape_cast %250 : vector<8xf32> to vector<8x1xf32>
    %cst_58 = arith.constant 9.99999997E-7 : f32
    %252 = vector.broadcast %cst_58 : f32 to vector<8x1xf32>
    %253 = arith.addf %251, %252 : vector<8x1xf32>
    %254 = math.rsqrt %253 : vector<8x1xf32>
    %255 = vector.broadcast %254 : vector<8x1xf32> to vector<8x64xf32>
    %256 = arith.mulf %248, %255 : vector<8x64xf32>
    %cst_59 = arith.constant 0.000000e+00 : f32
    %257 = vector.broadcast %cst_59 : f32 to vector<8x64xf32>
    %258 = arith.subf %257, %256 : vector<8x64xf32>
    %259 = arith.mulf %256, %245 : vector<8x64xf32>
    %260 = vector.extract_strided_slice %7 {offsets = [64, 0], sizes = [64, 8], strides = [1, 1]} : vector<128x8xf32> to vector<64x8xf32>
    %cst_60 = arith.constant 0.000000e+00 : f32
    %261 = vector.broadcast %cst_60 : f32 to vector<64x64xf32>
    %262 = vector.extract_strided_slice %247 {offsets = [0, 0], sizes = [1, 64], strides = [1, 1]} : vector<8x64xf32> to vector<1x64xf32>
    %263 = vector.extract_strided_slice %246 {offsets = [0, 0], sizes = [1, 64], strides = [1, 1]} : vector<8x64xf32> to vector<1x64xf32>
    %264 = vector.extract_strided_slice %258 {offsets = [0, 0], sizes = [1, 64], strides = [1, 1]} : vector<8x64xf32> to vector<1x64xf32>
    %265 = vector.extract_strided_slice %259 {offsets = [0, 0], sizes = [1, 64], strides = [1, 1]} : vector<8x64xf32> to vector<1x64xf32>
    %266 = vector.extract_strided_slice %260 {offsets = [0, 0], sizes = [64, 1], strides = [1, 1]} : vector<64x8xf32> to vector<64x1xf32>
    %267 = vector.broadcast %264 : vector<1x64xf32> to vector<64x64xf32>
    %268 = arith.mulf %261, %267 : vector<64x64xf32>
    %cst_61 = arith.constant dense<0.000000e+00> : vector<64xf32>
    %269 = vector.multi_reduction <add>, %268, %cst_61 [1] : vector<64x64xf32> to vector<64xf32>
    %270 = vector.shape_cast %269 : vector<64xf32> to vector<64x1xf32>
    %271 = vector.broadcast %262 : vector<1x64xf32> to vector<64x64xf32>
    %272 = arith.mulf %261, %271 : vector<64x64xf32>
    %273 = vector.broadcast %270 : vector<64x1xf32> to vector<64x64xf32>
    %274 = vector.broadcast %265 : vector<1x64xf32> to vector<64x64xf32>
    %275 = arith.mulf %273, %274 : vector<64x64xf32>
    %276 = arith.addf %272, %275 : vector<64x64xf32>
    %277 = vector.broadcast %266 : vector<64x1xf32> to vector<64x64xf32>
    %278 = vector.broadcast %263 : vector<1x64xf32> to vector<64x64xf32>
    %279 = arith.mulf %277, %278 : vector<64x64xf32>
    %280 = arith.addf %276, %279 : vector<64x64xf32>
    %281 = vector.extract_strided_slice %243 {offsets = [0, 0], sizes = [1, 64], strides = [1, 1]} : vector<8x64xf32> to vector<1x64xf32>
    %cst_62 = arith.constant dense<0.000000e+00> : vector<1x64xf32>
    %282 = tpu.matmul %281, %280, %cst_62 {dimension_numbers = #tpu.dot_dimension_numbers<[1], [1], [0], [0], [0, 0, 1, 0], [], []>} : vector<1x64xf32>, vector<64x64xf32>, vector<1x64xf32> -> vector<1x64xf32>
    %283 = vector.extract_strided_slice %247 {offsets = [1, 0], sizes = [1, 64], strides = [1, 1]} : vector<8x64xf32> to vector<1x64xf32>
    %284 = vector.extract_strided_slice %246 {offsets = [1, 0], sizes = [1, 64], strides = [1, 1]} : vector<8x64xf32> to vector<1x64xf32>
    %285 = vector.extract_strided_slice %258 {offsets = [1, 0], sizes = [1, 64], strides = [1, 1]} : vector<8x64xf32> to vector<1x64xf32>
    %286 = vector.extract_strided_slice %259 {offsets = [1, 0], sizes = [1, 64], strides = [1, 1]} : vector<8x64xf32> to vector<1x64xf32>
    %287 = vector.extract_strided_slice %260 {offsets = [0, 1], sizes = [64, 1], strides = [1, 1]} : vector<64x8xf32> to vector<64x1xf32>
    %288 = vector.broadcast %285 : vector<1x64xf32> to vector<64x64xf32>
    %289 = arith.mulf %280, %288 : vector<64x64xf32>
    %cst_63 = arith.constant dense<0.000000e+00> : vector<64xf32>
    %290 = vector.multi_reduction <add>, %289, %cst_63 [1] : vector<64x64xf32> to vector<64xf32>
    %291 = vector.shape_cast %290 : vector<64xf32> to vector<64x1xf32>
    %292 = vector.broadcast %283 : vector<1x64xf32> to vector<64x64xf32>
    %293 = arith.mulf %280, %292 : vector<64x64xf32>
    %294 = vector.broadcast %291 : vector<64x1xf32> to vector<64x64xf32>
    %295 = vector.broadcast %286 : vector<1x64xf32> to vector<64x64xf32>
    %296 = arith.mulf %294, %295 : vector<64x64xf32>
    %297 = arith.addf %293, %296 : vector<64x64xf32>
    %298 = vector.broadcast %287 : vector<64x1xf32> to vector<64x64xf32>
    %299 = vector.broadcast %284 : vector<1x64xf32> to vector<64x64xf32>
    %300 = arith.mulf %298, %299 : vector<64x64xf32>
    %301 = arith.addf %297, %300 : vector<64x64xf32>
    %302 = vector.extract_strided_slice %243 {offsets = [1, 0], sizes = [1, 64], strides = [1, 1]} : vector<8x64xf32> to vector<1x64xf32>
    %cst_64 = arith.constant dense<0.000000e+00> : vector<1x64xf32>
    %303 = tpu.matmul %302, %301, %cst_64 {dimension_numbers = #tpu.dot_dimension_numbers<[1], [1], [0], [0], [0, 0, 1, 0], [], []>} : vector<1x64xf32>, vector<64x64xf32>, vector<1x64xf32> -> vector<1x64xf32>
    %304 = vector.extract_strided_slice %247 {offsets = [2, 0], sizes = [1, 64], strides = [1, 1]} : vector<8x64xf32> to vector<1x64xf32>
    %305 = vector.extract_strided_slice %246 {offsets = [2, 0], sizes = [1, 64], strides = [1, 1]} : vector<8x64xf32> to vector<1x64xf32>
    %306 = vector.extract_strided_slice %258 {offsets = [2, 0], sizes = [1, 64], strides = [1, 1]} : vector<8x64xf32> to vector<1x64xf32>
    %307 = vector.extract_strided_slice %259 {offsets = [2, 0], sizes = [1, 64], strides = [1, 1]} : vector<8x64xf32> to vector<1x64xf32>
    %308 = vector.extract_strided_slice %260 {offsets = [0, 2], sizes = [64, 1], strides = [1, 1]} : vector<64x8xf32> to vector<64x1xf32>
    %309 = vector.broadcast %306 : vector<1x64xf32> to vector<64x64xf32>
    %310 = arith.mulf %301, %309 : vector<64x64xf32>
    %cst_65 = arith.constant dense<0.000000e+00> : vector<64xf32>
    %311 = vector.multi_reduction <add>, %310, %cst_65 [1] : vector<64x64xf32> to vector<64xf32>
    %312 = vector.shape_cast %311 : vector<64xf32> to vector<64x1xf32>
    %313 = vector.broadcast %304 : vector<1x64xf32> to vector<64x64xf32>
    %314 = arith.mulf %301, %313 : vector<64x64xf32>
    %315 = vector.broadcast %312 : vector<64x1xf32> to vector<64x64xf32>
    %316 = vector.broadcast %307 : vector<1x64xf32> to vector<64x64xf32>
    %317 = arith.mulf %315, %316 : vector<64x64xf32>
    %318 = arith.addf %314, %317 : vector<64x64xf32>
    %319 = vector.broadcast %308 : vector<64x1xf32> to vector<64x64xf32>
    %320 = vector.broadcast %305 : vector<1x64xf32> to vector<64x64xf32>
    %321 = arith.mulf %319, %320 : vector<64x64xf32>
    %322 = arith.addf %318, %321 : vector<64x64xf32>
    %323 = vector.extract_strided_slice %243 {offsets = [2, 0], sizes = [1, 64], strides = [1, 1]} : vector<8x64xf32> to vector<1x64xf32>
    %cst_66 = arith.constant dense<0.000000e+00> : vector<1x64xf32>
    %324 = tpu.matmul %323, %322, %cst_66 {dimension_numbers = #tpu.dot_dimension_numbers<[1], [1], [0], [0], [0, 0, 1, 0], [], []>} : vector<1x64xf32>, vector<64x64xf32>, vector<1x64xf32> -> vector<1x64xf32>
    %325 = vector.extract_strided_slice %247 {offsets = [3, 0], sizes = [1, 64], strides = [1, 1]} : vector<8x64xf32> to vector<1x64xf32>
    %326 = vector.extract_strided_slice %246 {offsets = [3, 0], sizes = [1, 64], strides = [1, 1]} : vector<8x64xf32> to vector<1x64xf32>
    %327 = vector.extract_strided_slice %258 {offsets = [3, 0], sizes = [1, 64], strides = [1, 1]} : vector<8x64xf32> to vector<1x64xf32>
    %328 = vector.extract_strided_slice %259 {offsets = [3, 0], sizes = [1, 64], strides = [1, 1]} : vector<8x64xf32> to vector<1x64xf32>
    %329 = vector.extract_strided_slice %260 {offsets = [0, 3], sizes = [64, 1], strides = [1, 1]} : vector<64x8xf32> to vector<64x1xf32>
    %330 = vector.broadcast %327 : vector<1x64xf32> to vector<64x64xf32>
    %331 = arith.mulf %322, %330 : vector<64x64xf32>
    %cst_67 = arith.constant dense<0.000000e+00> : vector<64xf32>
    %332 = vector.multi_reduction <add>, %331, %cst_67 [1] : vector<64x64xf32> to vector<64xf32>
    %333 = vector.shape_cast %332 : vector<64xf32> to vector<64x1xf32>
    %334 = vector.broadcast %325 : vector<1x64xf32> to vector<64x64xf32>
    %335 = arith.mulf %322, %334 : vector<64x64xf32>
    %336 = vector.broadcast %333 : vector<64x1xf32> to vector<64x64xf32>
    %337 = vector.broadcast %328 : vector<1x64xf32> to vector<64x64xf32>
    %338 = arith.mulf %336, %337 : vector<64x64xf32>
    %339 = arith.addf %335, %338 : vector<64x64xf32>
    %340 = vector.broadcast %329 : vector<64x1xf32> to vector<64x64xf32>
    %341 = vector.broadcast %326 : vector<1x64xf32> to vector<64x64xf32>
    %342 = arith.mulf %340, %341 : vector<64x64xf32>
    %343 = arith.addf %339, %342 : vector<64x64xf32>
    %344 = vector.extract_strided_slice %243 {offsets = [3, 0], sizes = [1, 64], strides = [1, 1]} : vector<8x64xf32> to vector<1x64xf32>
    %cst_68 = arith.constant dense<0.000000e+00> : vector<1x64xf32>
    %345 = tpu.matmul %344, %343, %cst_68 {dimension_numbers = #tpu.dot_dimension_numbers<[1], [1], [0], [0], [0, 0, 1, 0], [], []>} : vector<1x64xf32>, vector<64x64xf32>, vector<1x64xf32> -> vector<1x64xf32>
    %346 = vector.extract_strided_slice %247 {offsets = [4, 0], sizes = [1, 64], strides = [1, 1]} : vector<8x64xf32> to vector<1x64xf32>
    %347 = vector.extract_strided_slice %246 {offsets = [4, 0], sizes = [1, 64], strides = [1, 1]} : vector<8x64xf32> to vector<1x64xf32>
    %348 = vector.extract_strided_slice %258 {offsets = [4, 0], sizes = [1, 64], strides = [1, 1]} : vector<8x64xf32> to vector<1x64xf32>
    %349 = vector.extract_strided_slice %259 {offsets = [4, 0], sizes = [1, 64], strides = [1, 1]} : vector<8x64xf32> to vector<1x64xf32>
    %350 = vector.extract_strided_slice %260 {offsets = [0, 4], sizes = [64, 1], strides = [1, 1]} : vector<64x8xf32> to vector<64x1xf32>
    %351 = vector.broadcast %348 : vector<1x64xf32> to vector<64x64xf32>
    %352 = arith.mulf %343, %351 : vector<64x64xf32>
    %cst_69 = arith.constant dense<0.000000e+00> : vector<64xf32>
    %353 = vector.multi_reduction <add>, %352, %cst_69 [1] : vector<64x64xf32> to vector<64xf32>
    %354 = vector.shape_cast %353 : vector<64xf32> to vector<64x1xf32>
    %355 = vector.broadcast %346 : vector<1x64xf32> to vector<64x64xf32>
    %356 = arith.mulf %343, %355 : vector<64x64xf32>
    %357 = vector.broadcast %354 : vector<64x1xf32> to vector<64x64xf32>
    %358 = vector.broadcast %349 : vector<1x64xf32> to vector<64x64xf32>
    %359 = arith.mulf %357, %358 : vector<64x64xf32>
    %360 = arith.addf %356, %359 : vector<64x64xf32>
    %361 = vector.broadcast %350 : vector<64x1xf32> to vector<64x64xf32>
    %362 = vector.broadcast %347 : vector<1x64xf32> to vector<64x64xf32>
    %363 = arith.mulf %361, %362 : vector<64x64xf32>
    %364 = arith.addf %360, %363 : vector<64x64xf32>
    %365 = vector.extract_strided_slice %243 {offsets = [4, 0], sizes = [1, 64], strides = [1, 1]} : vector<8x64xf32> to vector<1x64xf32>
    %cst_70 = arith.constant dense<0.000000e+00> : vector<1x64xf32>
    %366 = tpu.matmul %365, %364, %cst_70 {dimension_numbers = #tpu.dot_dimension_numbers<[1], [1], [0], [0], [0, 0, 1, 0], [], []>} : vector<1x64xf32>, vector<64x64xf32>, vector<1x64xf32> -> vector<1x64xf32>
    %367 = vector.extract_strided_slice %247 {offsets = [5, 0], sizes = [1, 64], strides = [1, 1]} : vector<8x64xf32> to vector<1x64xf32>
    %368 = vector.extract_strided_slice %246 {offsets = [5, 0], sizes = [1, 64], strides = [1, 1]} : vector<8x64xf32> to vector<1x64xf32>
    %369 = vector.extract_strided_slice %258 {offsets = [5, 0], sizes = [1, 64], strides = [1, 1]} : vector<8x64xf32> to vector<1x64xf32>
    %370 = vector.extract_strided_slice %259 {offsets = [5, 0], sizes = [1, 64], strides = [1, 1]} : vector<8x64xf32> to vector<1x64xf32>
    %371 = vector.extract_strided_slice %260 {offsets = [0, 5], sizes = [64, 1], strides = [1, 1]} : vector<64x8xf32> to vector<64x1xf32>
    %372 = vector.broadcast %369 : vector<1x64xf32> to vector<64x64xf32>
    %373 = arith.mulf %364, %372 : vector<64x64xf32>
    %cst_71 = arith.constant dense<0.000000e+00> : vector<64xf32>
    %374 = vector.multi_reduction <add>, %373, %cst_71 [1] : vector<64x64xf32> to vector<64xf32>
    %375 = vector.shape_cast %374 : vector<64xf32> to vector<64x1xf32>
    %376 = vector.broadcast %367 : vector<1x64xf32> to vector<64x64xf32>
    %377 = arith.mulf %364, %376 : vector<64x64xf32>
    %378 = vector.broadcast %375 : vector<64x1xf32> to vector<64x64xf32>
    %379 = vector.broadcast %370 : vector<1x64xf32> to vector<64x64xf32>
    %380 = arith.mulf %378, %379 : vector<64x64xf32>
    %381 = arith.addf %377, %380 : vector<64x64xf32>
    %382 = vector.broadcast %371 : vector<64x1xf32> to vector<64x64xf32>
    %383 = vector.broadcast %368 : vector<1x64xf32> to vector<64x64xf32>
    %384 = arith.mulf %382, %383 : vector<64x64xf32>
    %385 = arith.addf %381, %384 : vector<64x64xf32>
    %386 = vector.extract_strided_slice %243 {offsets = [5, 0], sizes = [1, 64], strides = [1, 1]} : vector<8x64xf32> to vector<1x64xf32>
    %cst_72 = arith.constant dense<0.000000e+00> : vector<1x64xf32>
    %387 = tpu.matmul %386, %385, %cst_72 {dimension_numbers = #tpu.dot_dimension_numbers<[1], [1], [0], [0], [0, 0, 1, 0], [], []>} : vector<1x64xf32>, vector<64x64xf32>, vector<1x64xf32> -> vector<1x64xf32>
    %388 = vector.extract_strided_slice %247 {offsets = [6, 0], sizes = [1, 64], strides = [1, 1]} : vector<8x64xf32> to vector<1x64xf32>
    %389 = vector.extract_strided_slice %246 {offsets = [6, 0], sizes = [1, 64], strides = [1, 1]} : vector<8x64xf32> to vector<1x64xf32>
    %390 = vector.extract_strided_slice %258 {offsets = [6, 0], sizes = [1, 64], strides = [1, 1]} : vector<8x64xf32> to vector<1x64xf32>
    %391 = vector.extract_strided_slice %259 {offsets = [6, 0], sizes = [1, 64], strides = [1, 1]} : vector<8x64xf32> to vector<1x64xf32>
    %392 = vector.extract_strided_slice %260 {offsets = [0, 6], sizes = [64, 1], strides = [1, 1]} : vector<64x8xf32> to vector<64x1xf32>
    %393 = vector.broadcast %390 : vector<1x64xf32> to vector<64x64xf32>
    %394 = arith.mulf %385, %393 : vector<64x64xf32>
    %cst_73 = arith.constant dense<0.000000e+00> : vector<64xf32>
    %395 = vector.multi_reduction <add>, %394, %cst_73 [1] : vector<64x64xf32> to vector<64xf32>
    %396 = vector.shape_cast %395 : vector<64xf32> to vector<64x1xf32>
    %397 = vector.broadcast %388 : vector<1x64xf32> to vector<64x64xf32>
    %398 = arith.mulf %385, %397 : vector<64x64xf32>
    %399 = vector.broadcast %396 : vector<64x1xf32> to vector<64x64xf32>
    %400 = vector.broadcast %391 : vector<1x64xf32> to vector<64x64xf32>
    %401 = arith.mulf %399, %400 : vector<64x64xf32>
    %402 = arith.addf %398, %401 : vector<64x64xf32>
    %403 = vector.broadcast %392 : vector<64x1xf32> to vector<64x64xf32>
    %404 = vector.broadcast %389 : vector<1x64xf32> to vector<64x64xf32>
    %405 = arith.mulf %403, %404 : vector<64x64xf32>
    %406 = arith.addf %402, %405 : vector<64x64xf32>
    %407 = vector.extract_strided_slice %243 {offsets = [6, 0], sizes = [1, 64], strides = [1, 1]} : vector<8x64xf32> to vector<1x64xf32>
    %cst_74 = arith.constant dense<0.000000e+00> : vector<1x64xf32>
    %408 = tpu.matmul %407, %406, %cst_74 {dimension_numbers = #tpu.dot_dimension_numbers<[1], [1], [0], [0], [0, 0, 1, 0], [], []>} : vector<1x64xf32>, vector<64x64xf32>, vector<1x64xf32> -> vector<1x64xf32>
    %409 = vector.extract_strided_slice %247 {offsets = [7, 0], sizes = [1, 64], strides = [1, 1]} : vector<8x64xf32> to vector<1x64xf32>
    %410 = vector.extract_strided_slice %246 {offsets = [7, 0], sizes = [1, 64], strides = [1, 1]} : vector<8x64xf32> to vector<1x64xf32>
    %411 = vector.extract_strided_slice %258 {offsets = [7, 0], sizes = [1, 64], strides = [1, 1]} : vector<8x64xf32> to vector<1x64xf32>
    %412 = vector.extract_strided_slice %259 {offsets = [7, 0], sizes = [1, 64], strides = [1, 1]} : vector<8x64xf32> to vector<1x64xf32>
    %413 = vector.extract_strided_slice %260 {offsets = [0, 7], sizes = [64, 1], strides = [1, 1]} : vector<64x8xf32> to vector<64x1xf32>
    %414 = vector.broadcast %411 : vector<1x64xf32> to vector<64x64xf32>
    %415 = arith.mulf %406, %414 : vector<64x64xf32>
    %cst_75 = arith.constant dense<0.000000e+00> : vector<64xf32>
    %416 = vector.multi_reduction <add>, %415, %cst_75 [1] : vector<64x64xf32> to vector<64xf32>
    %417 = vector.shape_cast %416 : vector<64xf32> to vector<64x1xf32>
    %418 = vector.broadcast %409 : vector<1x64xf32> to vector<64x64xf32>
    %419 = arith.mulf %406, %418 : vector<64x64xf32>
    %420 = vector.broadcast %417 : vector<64x1xf32> to vector<64x64xf32>
    %421 = vector.broadcast %412 : vector<1x64xf32> to vector<64x64xf32>
    %422 = arith.mulf %420, %421 : vector<64x64xf32>
    %423 = arith.addf %419, %422 : vector<64x64xf32>
    %424 = vector.broadcast %413 : vector<64x1xf32> to vector<64x64xf32>
    %425 = vector.broadcast %410 : vector<1x64xf32> to vector<64x64xf32>
    %426 = arith.mulf %424, %425 : vector<64x64xf32>
    %427 = arith.addf %423, %426 : vector<64x64xf32>
    %428 = vector.extract_strided_slice %243 {offsets = [7, 0], sizes = [1, 64], strides = [1, 1]} : vector<8x64xf32> to vector<1x64xf32>
    %cst_76 = arith.constant dense<0.000000e+00> : vector<1x64xf32>
    %429 = tpu.matmul %428, %427, %cst_76 {dimension_numbers = #tpu.dot_dimension_numbers<[1], [1], [0], [0], [0, 0, 1, 0], [], []>} : vector<1x64xf32>, vector<64x64xf32>, vector<1x64xf32> -> vector<1x64xf32>
    %430 = tpu.concatenate %282, %303, %324, %345, %366, %387, %408, %429 in 0 : vector<1x64xf32>, vector<1x64xf32>, vector<1x64xf32>, vector<1x64xf32>, vector<1x64xf32>, vector<1x64xf32>, vector<1x64xf32>, vector<1x64xf32> -> vector<8x64xf32>
    %cst_77 = arith.constant dense<0.000000e+00> : vector<8xf32>
    %431 = vector.multi_reduction <add>, %430, %cst_77 [1] : vector<8x64xf32> to vector<8xf32>
    %432 = vector.shape_cast %431 : vector<8xf32> to vector<8x1xf32>
    %cst_78 = arith.constant 6.400000e+01 : f32
    %433 = vector.broadcast %cst_78 : f32 to vector<8x1xf32>
    %434 = arith.divf %432, %433 : vector<8x1xf32>
    %435 = vector.broadcast %434 : vector<8x1xf32> to vector<8x64xf32>
    %436 = arith.subf %430, %435 : vector<8x64xf32>
    %437 = arith.mulf %436, %436 : vector<8x64xf32>
    %cst_79 = arith.constant dense<0.000000e+00> : vector<8xf32>
    %438 = vector.multi_reduction <add>, %437, %cst_79 [1] : vector<8x64xf32> to vector<8xf32>
    %439 = vector.shape_cast %438 : vector<8xf32> to vector<8x1xf32>
    %cst_80 = arith.constant 6.400000e+01 : f32
    %440 = vector.broadcast %cst_80 : f32 to vector<8x1xf32>
    %441 = arith.divf %439, %440 : vector<8x1xf32>
    %442 = vector.broadcast %434 : vector<8x1xf32> to vector<8x64xf32>
    %443 = arith.subf %430, %442 : vector<8x64xf32>
    %cst_81 = arith.constant 6.400000e-04 : f32
    %444 = vector.broadcast %cst_81 : f32 to vector<8x1xf32>
    %445 = arith.addf %441, %444 : vector<8x1xf32>
    %446 = math.rsqrt %445 : vector<8x1xf32>
    %447 = vector.broadcast %446 : vector<8x1xf32> to vector<8x64xf32>
    %448 = arith.mulf %443, %447 : vector<8x64xf32>
    %449 = arith.mulf %243, %246 : vector<8x64xf32>
    %450 = vector.extract_strided_slice %19 {offsets = [0, 64], sizes = [1, 64], strides = [1, 1]} : vector<1x128xf32> to vector<1x64xf32>
    %451 = vector.broadcast %450 : vector<1x64xf32> to vector<8x64xf32>
    %452 = arith.mulf %449, %451 : vector<8x64xf32>
    %cst_82 = arith.constant dense<0.000000e+00> : vector<8xf32>
    %453 = vector.multi_reduction <add>, %452, %cst_82 [1] : vector<8x64xf32> to vector<8xf32>
    %454 = vector.shape_cast %453 : vector<8xf32> to vector<8x1xf32>
    %455 = vector.broadcast %454 : vector<8x1xf32> to vector<8x64xf32>
    %456 = arith.mulf %455, %244 : vector<8x64xf32>
    %457 = tpu.concatenate %234, %448 in 1 : vector<8x64xf32>, vector<8x64xf32> -> vector<8x128xf32>
    %458 = tpu.concatenate %242, %456 in 1 : vector<8x64xf32>, vector<8x64xf32> -> vector<8x128xf32>
    %459 = vector.broadcast %17 : vector<1x128xf32> to vector<8x128xf32>
    %460 = arith.mulf %457, %459 : vector<8x128xf32>
    %461 = vector.broadcast %18 : vector<1x128xf32> to vector<8x128xf32>
    %462 = arith.addf %460, %461 : vector<8x128xf32>
    %463 = arith.addf %462, %458 : vector<8x128xf32>
    %464 = arith.mulf %463, %11 : vector<8x128xf32>
    %c0_83 = arith.constant 0 : index
    %c0_84 = arith.constant 0 : index
    %c0_85 = arith.constant 0 : index
    %465 = vector.load %arg13[%c0_83, %c0_84, %c0_85] : memref<1x8x128xf32, #tpu.memory_space<vmem>>, vector<1x8x128xf32>
    %466 = vector.shape_cast %465 : vector<1x8x128xf32> to vector<8x128xf32>
    %467 = vector.shape_cast %464 : vector<8x128xf32> to vector<1x8x128xf32>
    tpu.vector_store %arg13[%c0_83, %c0_84, %c0_85], %467 {strides = array<i32>} : memref<1x8x128xf32, #tpu.memory_space<vmem>>, vector<1x8x128xf32>,
    return
  }
  func.func @transform_0(%arg0: i32) -> (i32, i32, i32) {
    %c0_i32 = arith.constant 0 : i32
    %c0_i32_0 = arith.constant 0 : i32
    %c0_i32_1 = arith.constant 0 : i32
    return %arg0, %c0_i32, %c0_i32_0 : i32, i32, i32
  }
  func.func @transform_1(%arg0: i32) -> (i32, i32, i32) {
    %c0_i32 = arith.constant 0 : i32
    %c0_i32_0 = arith.constant 0 : i32
    %c0_i32_1 = arith.constant 0 : i32
    return %arg0, %c0_i32, %c0_i32_0 : i32, i32, i32
  }
  func.func @transform_2(%arg0: i32) -> (i32, i32, i32) {
    %c0_i32 = arith.constant 0 : i32
    %c0_i32_0 = arith.constant 0 : i32
    %c0_i32_1 = arith.constant 0 : i32
    return %arg0, %c0_i32, %c0_i32_0 : i32, i32, i32
  }
  func.func @transform_3(%arg0: i32) -> (i32, i32, i32) {
    %c0_i32 = arith.constant 0 : i32
    %c0_i32_0 = arith.constant 0 : i32
    %c0_i32_1 = arith.constant 0 : i32
    return %arg0, %c0_i32, %c0_i32_0 : i32, i32, i32
  }
  func.func @transform_4(%arg0: i32) -> (i32, i32, i32) {
    %c0_i32 = arith.constant 0 : i32
    %c0_i32_0 = arith.constant 0 : i32
    %c0_i32_1 = arith.constant 0 : i32
    return %arg0, %c0_i32, %c0_i32_0 : i32, i32, i32
  }
  func.func @transform_5(%arg0: i32) -> (i32, i32, i32) {
    %c0_i32 = arith.constant 0 : i32
    %c0_i32_0 = arith.constant 0 : i32
    %c0_i32_1 = arith.constant 0 : i32
    return %arg0, %c0_i32, %c0_i32_0 : i32, i32, i32
  }
  func.func @transform_6(%arg0: i32) -> (i32, i32, i32) {
    %c0_i32 = arith.constant 0 : i32
    %c0_i32_0 = arith.constant 0 : i32
    %c0_i32_1 = arith.constant 0 : i32
    return %arg0, %c0_i32, %c0_i32_0 : i32, i32, i32
  }
  func.func @transform_7(%arg0: i32) -> (i32, i32) {
    %c0_i32 = arith.constant 0 : i32
    %c0_i32_0 = arith.constant 0 : i32
    %c0_i32_1 = arith.constant 0 : i32
    return %c0_i32, %c0_i32_0 : i32, i32
  }
  func.func @transform_8(%arg0: i32) -> (i32, i32) {
    %c0_i32 = arith.constant 0 : i32
    %c0_i32_0 = arith.constant 0 : i32
    %c0_i32_1 = arith.constant 0 : i32
    return %c0_i32, %c0_i32_0 : i32, i32
  }
  func.func @transform_9(%arg0: i32) -> (i32, i32) {
    %c0_i32 = arith.constant 0 : i32
    %c0_i32_0 = arith.constant 0 : i32
    %c0_i32_1 = arith.constant 0 : i32
    return %c0_i32, %c0_i32_0 : i32, i32
  }
  func.func @transform_10(%arg0: i32) -> (i32, i32) {
    %c0_i32 = arith.constant 0 : i32
    %c0_i32_0 = arith.constant 0 : i32
    %c0_i32_1 = arith.constant 0 : i32
    return %c0_i32, %c0_i32_0 : i32, i32
  }
  func.func @transform_11(%arg0: i32) -> (i32, i32) {
    %c0_i32 = arith.constant 0 : i32
    %c0_i32_0 = arith.constant 0 : i32
    %c0_i32_1 = arith.constant 0 : i32
    return %c0_i32, %c0_i32_0 : i32, i32
  }
  func.func @transform_12(%arg0: i32) -> (i32, i32, i32) {
    %c0_i32 = arith.constant 0 : i32
    %c0_i32_0 = arith.constant 0 : i32
    %c0_i32_1 = arith.constant 0 : i32
    return %arg0, %c0_i32, %c0_i32_0 : i32, i32, i32
  }
}

module attributes {stable_mosaic.version = 11 : i64} {
  func.func @_lora_stage2_kernel(%arg0: i32, %arg1: memref<16x64xf32, #tpu.memory_space<vmem>>, %arg2: memref<16x64xf32, #tpu.memory_space<vmem>>, %arg3: memref<16x128xf32, #tpu.memory_space<vmem>>, %arg4: memref<64x128xf32, #tpu.memory_space<vmem>>, %arg5: memref<64x128xf32, #tpu.memory_space<vmem>>, %arg6: memref<128x128xf32, #tpu.memory_space<vmem>>, %arg7: memref<1x128xf32, #tpu.memory_space<vmem>>, %arg8: memref<1x128xf32, #tpu.memory_space<vmem>>, %arg9: memref<16x128xf32, #tpu.memory_space<vmem>>, %arg10: memref<16x128xf32, #tpu.memory_space<vmem>>, %arg11: memref<16x128xf32, #tpu.memory_space<vmem>>) attributes {dimension_semantics = [#tpu.dimension_semantics<parallel>], iteration_bounds = array<i64: 1>, scalar_prefetch = 0 : i64, scratch_operands = 0 : i64, tpu.core_type = #tpu.core_type<tc>, window_params = [{transform_indices = @transform_0, window_bounds = array<i64: 16, 64>}, {transform_indices = @transform_1, window_bounds = array<i64: 16, 64>}, {transform_indices = @transform_2, window_bounds = array<i64: 16, 128>}, {pipeline_mode = #tpu.pipeline_mode<synchronous>, transform_indices = @transform_3, window_bounds = array<i64: 64, 128>}, {pipeline_mode = #tpu.pipeline_mode<synchronous>, transform_indices = @transform_4, window_bounds = array<i64: 64, 128>}, {pipeline_mode = #tpu.pipeline_mode<synchronous>, transform_indices = @transform_5, window_bounds = array<i64: 128, 128>}, {pipeline_mode = #tpu.pipeline_mode<synchronous>, transform_indices = @transform_6, window_bounds = array<i64: 1, 128>}, {pipeline_mode = #tpu.pipeline_mode<synchronous>, transform_indices = @transform_7, window_bounds = array<i64: 1, 128>}, {transform_indices = @transform_8, window_bounds = array<i64: 16, 128>}, {transform_indices = @transform_9, window_bounds = array<i64: 16, 128>}, {transform_indices = @transform_10, window_bounds = array<i64: 16, 128>}]} {
    %c0 = arith.constant 0 : index
    %c0_0 = arith.constant 0 : index
    %0 = vector.load %arg1[%c0, %c0_0] : memref<16x64xf32, #tpu.memory_space<vmem>>, vector<16x64xf32>
    %1 = math.tanh %0 : vector<16x64xf32>
    %c0_1 = arith.constant 0 : index
    %c0_2 = arith.constant 0 : index
    %2 = vector.load %arg2[%c0_1, %c0_2] : memref<16x64xf32, #tpu.memory_space<vmem>>, vector<16x64xf32>
    %c0_3 = arith.constant 0 : index
    %c0_4 = arith.constant 0 : index
    %3 = vector.load %arg3[%c0_3, %c0_4] : memref<16x128xf32, #tpu.memory_space<vmem>>, vector<16x128xf32>
    %4 = arith.negf %3 : vector<16x128xf32>
    %5 = math.exp %4 : vector<16x128xf32>
    %cst = arith.constant 1.000000e+00 : f32
    %6 = vector.broadcast %cst : f32 to vector<16x128xf32>
    %7 = arith.addf %6, %5 : vector<16x128xf32>
    %8 = arith.divf %6, %7 : vector<16x128xf32>
    %c0_5 = arith.constant 0 : index
    %c0_6 = arith.constant 0 : index
    %9 = vector.load %arg4[%c0_5, %c0_6] : memref<64x128xf32, #tpu.memory_space<vmem>>, vector<64x128xf32>
    %cst_7 = arith.constant dense<0.000000e+00> : vector<16x128xf32>
    %10 = tpu.matmul %1, %9, %cst_7 {dimension_numbers = #tpu.dot_dimension_numbers<[1], [0], [0], [1], [0, 0, 1, 1], [], []>} : vector<16x64xf32>, vector<64x128xf32>, vector<16x128xf32> -> vector<16x128xf32>
    %c0_8 = arith.constant 0 : index
    %c0_9 = arith.constant 0 : index
    %11 = vector.load %arg7[%c0_8, %c0_9] : memref<1x128xf32, #tpu.memory_space<vmem>>, vector<1x128xf32>
    %12 = vector.broadcast %11 : vector<1x128xf32> to vector<16x128xf32>
    %13 = arith.addf %10, %12 : vector<16x128xf32>
    %c0_10 = arith.constant 0 : index
    %c0_11 = arith.constant 0 : index
    %14 = vector.load %arg5[%c0_10, %c0_11] : memref<64x128xf32, #tpu.memory_space<vmem>>, vector<64x128xf32>
    %cst_12 = arith.constant dense<0.000000e+00> : vector<16x128xf32>
    %15 = tpu.matmul %2, %14, %cst_12 {dimension_numbers = #tpu.dot_dimension_numbers<[1], [0], [0], [1], [0, 0, 1, 1], [], []>} : vector<16x64xf32>, vector<64x128xf32>, vector<16x128xf32> -> vector<16x128xf32>
    %c0_13 = arith.constant 0 : index
    %c0_14 = arith.constant 0 : index
    %16 = vector.load %arg8[%c0_13, %c0_14] : memref<1x128xf32, #tpu.memory_space<vmem>>, vector<1x128xf32>
    %17 = vector.broadcast %16 : vector<1x128xf32> to vector<16x128xf32>
    %18 = arith.addf %15, %17 : vector<16x128xf32>
    %19 = arith.negf %13 : vector<16x128xf32>
    %20 = math.exp %19 : vector<16x128xf32>
    %cst_15 = arith.constant 1.000000e+00 : f32
    %21 = vector.broadcast %cst_15 : f32 to vector<16x128xf32>
    %22 = arith.addf %21, %20 : vector<16x128xf32>
    %23 = arith.divf %21, %22 : vector<16x128xf32>
    %cst_16 = arith.constant -0.606530666 : f32
    %24 = vector.broadcast %cst_16 : f32 to vector<16x128xf32>
    %25 = arith.mulf %24, %23 : vector<16x128xf32>
    %c0_17 = arith.constant 0 : index
    %c0_18 = arith.constant 0 : index
    %26 = vector.load %arg9[%c0_17, %c0_18] : memref<16x128xf32, #tpu.memory_space<vmem>>, vector<16x128xf32>
    tpu.vector_store %arg9[%c0_17, %c0_18], %25 {strides = array<i32>} : memref<16x128xf32, #tpu.memory_space<vmem>>, vector<16x128xf32>,
    %27 = arith.negf %18 : vector<16x128xf32>
    %28 = math.exp %27 : vector<16x128xf32>
    %cst_19 = arith.constant 1.000000e+00 : f32
    %29 = vector.broadcast %cst_19 : f32 to vector<16x128xf32>
    %30 = arith.addf %29, %28 : vector<16x128xf32>
    %31 = arith.divf %29, %30 : vector<16x128xf32>
    %c0_20 = arith.constant 0 : index
    %c0_21 = arith.constant 0 : index
    %32 = vector.load %arg10[%c0_20, %c0_21] : memref<16x128xf32, #tpu.memory_space<vmem>>, vector<16x128xf32>
    tpu.vector_store %arg10[%c0_20, %c0_21], %31 {strides = array<i32>} : memref<16x128xf32, #tpu.memory_space<vmem>>, vector<16x128xf32>,
    %c0_22 = arith.constant 0 : index
    %c0_23 = arith.constant 0 : index
    %33 = vector.load %arg6[%c0_22, %c0_23] : memref<128x128xf32, #tpu.memory_space<vmem>>, vector<128x128xf32>
    %cst_24 = arith.constant dense<0.000000e+00> : vector<16x128xf32>
    %34 = tpu.matmul %8, %33, %cst_24 {dimension_numbers = #tpu.dot_dimension_numbers<[1], [0], [0], [1], [0, 0, 1, 1], [], []>} : vector<16x128xf32>, vector<128x128xf32>, vector<16x128xf32> -> vector<16x128xf32>
    %c0_25 = arith.constant 0 : index
    %c0_26 = arith.constant 0 : index
    %35 = vector.load %arg11[%c0_25, %c0_26] : memref<16x128xf32, #tpu.memory_space<vmem>>, vector<16x128xf32>
    tpu.vector_store %arg11[%c0_25, %c0_26], %34 {strides = array<i32>} : memref<16x128xf32, #tpu.memory_space<vmem>>, vector<16x128xf32>,
    return
  }
  func.func @transform_0(%arg0: i32) -> (i32, i32) {
    %c0_i32 = arith.constant 0 : i32
    %c0_i32_0 = arith.constant 0 : i32
    return %arg0, %c0_i32 : i32, i32
  }
  func.func @transform_1(%arg0: i32) -> (i32, i32) {
    %c0_i32 = arith.constant 0 : i32
    %c0_i32_0 = arith.constant 0 : i32
    return %arg0, %c0_i32 : i32, i32
  }
  func.func @transform_2(%arg0: i32) -> (i32, i32) {
    %c0_i32 = arith.constant 0 : i32
    %c0_i32_0 = arith.constant 0 : i32
    return %arg0, %c0_i32 : i32, i32
  }
  func.func @transform_3(%arg0: i32) -> (i32, i32) {
    %c0_i32 = arith.constant 0 : i32
    %c0_i32_0 = arith.constant 0 : i32
    %c0_i32_1 = arith.constant 0 : i32
    return %c0_i32, %c0_i32_0 : i32, i32
  }
  func.func @transform_4(%arg0: i32) -> (i32, i32) {
    %c0_i32 = arith.constant 0 : i32
    %c0_i32_0 = arith.constant 0 : i32
    %c0_i32_1 = arith.constant 0 : i32
    return %c0_i32, %c0_i32_0 : i32, i32
  }
  func.func @transform_5(%arg0: i32) -> (i32, i32) {
    %c0_i32 = arith.constant 0 : i32
    %c0_i32_0 = arith.constant 0 : i32
    %c0_i32_1 = arith.constant 0 : i32
    return %c0_i32, %c0_i32_0 : i32, i32
  }
  func.func @transform_6(%arg0: i32) -> (i32, i32) {
    %c0_i32 = arith.constant 0 : i32
    %c0_i32_0 = arith.constant 0 : i32
    %c0_i32_1 = arith.constant 0 : i32
    return %c0_i32, %c0_i32_0 : i32, i32
  }
  func.func @transform_7(%arg0: i32) -> (i32, i32) {
    %c0_i32 = arith.constant 0 : i32
    %c0_i32_0 = arith.constant 0 : i32
    %c0_i32_1 = arith.constant 0 : i32
    return %c0_i32, %c0_i32_0 : i32, i32
  }
  func.func @transform_8(%arg0: i32) -> (i32, i32) {
    %c0_i32 = arith.constant 0 : i32
    %c0_i32_0 = arith.constant 0 : i32
    return %arg0, %c0_i32 : i32, i32
  }
  func.func @transform_9(%arg0: i32) -> (i32, i32) {
    %c0_i32 = arith.constant 0 : i32
    %c0_i32_0 = arith.constant 0 : i32
    return %arg0, %c0_i32 : i32, i32
  }
  func.func @transform_10(%arg0: i32) -> (i32, i32) {
    %c0_i32 = arith.constant 0 : i32
    %c0_i32_0 = arith.constant 0 : i32
    return %arg0, %c0_i32 : i32, i32
  }
}

</mosaic_0001>

<bundles_post_ra>
// kernel: text_rwkv_forward.7
= control target key start
LH: loop header
LB: loop body
LE: loop exit
PB: predicated region body
PF: predicated region fallthrough
CT: control target
= control target key end

     0   :  { %v377_v1 = vmov 0.0   ;;  %vm378_vm0 = vmmov 0   ;;  %s515_s0 = inlined_call_operand.vmem [shape: f32[16,128], index: 0, kind: input, shape index: {}]   ;;  %s516_s1 = inlined_call_operand.vmem [shape: bf16[128,128], index: 1, kind: input, shape index: {}]   ;;  %s517_s2 = inlined_call_operand.vmem [shape: f32[128,128], index: 2, kind: input, shape index: {}]   ;;  %s518_s3 = inlined_call_operand.vmem [shape: f32[1,128], index: 3, kind: input, shape index: {}]   ;;  %s519_s4 = inlined_call_operand.hbm [shape: f32[2,128], index: 4, kind: output, shape index: {}]  }
   0x1   :  { %v347_v0 = vld [vmem:[%s516_s1 + $0x38] sm:$0xff]   ;;  %289 = vmatprep.subr.bf16.mxu0 %v377_v1  ;;  %309 = vmatprep.subr.mxu1 %v377_v1  ;;  %v348_v2 = vld [vmem:[%s516_s1 + $0x30] sm:$0xff]   ;;  %v349_v3 = vld [vmem:[%s516_s1 + $0x28] sm:$0xff]  }
   0x2   :  { %290 = vmatpush3.bf16.msra.mxu0 %v347_v0  ;;  %305 = vmatprep.mubr.msk.bf16.mxu0 %vm378_vm0, %v377_v1  ;;  %v156_v4 = vld [vmem:[%s517_s2 + $0x78] sm:$0xff]  ;;  %v155_v5 = vld [vmem:[%s517_s2 + $0x70] sm:$0xff]  ;;  %v350_v6 = vld [vmem:[%s516_s1 + $0x20] sm:$0xff]  }
   0x3   :  { %291 = vmatprep.subr.bf16.mxu0 %v377_v1  ;;  %341 = vmatprep.mubr.msk.f32.mxu1 %vm378_vm0, %v377_v1  ;;  %v154_v7 = vld [vmem:[%s517_s2 + $0x68] sm:$0xff] }
   0x4   :  { %310 = vmatpush3.msra.mxu1 %v156_v4 }
   0x5   :  { %311 = vmatprep.subr.mxu1 %v377_v1 }
   0x6   :  { %292 = vmatpush3.bf16.msra.mxu0 %v348_v2 }
   0x7   :  { %293 = vmatprep.subr.bf16.mxu0 %v377_v1 }
   0xa   :  { %294 = vmatpush3.bf16.msra.mxu0 %v349_v3 }
   0xb   :  { %9 = vsyncpa [#allocation3], 0  ;;  %295 = vmatprep.subr.bf16.mxu0 %v377_v1  ;;  %312 = vmatpush3.msra.mxu1 %v155_v5  ;;  %v153_v8 = vld [vmem:[%s517_s2 + $0x60] sm:$0xff]  ;;  %v351_v9 = vld [vmem:[%s516_s1 + $0x18] sm:$0xff]   ;;  %vm166_vm1 = vcmask 1041409   ;;  %s379_s14 = smov [#allocation2]  }
   0xc   :  { %313 = vmatprep.subr.mxu1 %v377_v1  ;;  %v152_v10 = vld [vmem:[%s517_s2 + $0x58] sm:$0xff]  ;;  %v151_v11 = vld [vmem:[%s517_s2 + $0x50] sm:$0xff]  ;;  %v353_v13 = vld [vmem:[%s516_s1 + $0x8] sm:$0xff]   ;;  %s246_s15 = sshll.u32 %s379_s14, 4  ;;  %s247_s15 = int_to_ptr.vmem [resolvable:$true] %s246_s15 }
   0xd   :  { %314 = vmatpush3.msra.mxu1 %v154_v7  ;;  %v352_v12 = vld [vmem:[%s516_s1 + $0x10] sm:$0xff]   ;;  %v354_v14 = vld [vmem:[%s516_s1] sm:$0xff]   ;;  %v20_v16 = vld [vmem:[%s515_s0 + $0x8] sm:$0xff]  ;;  %s355_s16 = scalar_lea.vmem %s247_s15, 32  ;;  %p360_p1 = scmp.lt.s32.totalorder %s247_s15, %s247_s15 }
   0xe   :  { %296 = vmatpush3.bf16.msra.mxu0 %v350_v6  ;;  %315 = vmatprep.subr.mxu1 %v377_v1  ;;  %v19_v15 = vld [vmem:[%s515_s0] sm:$0xff]  ;;  %v150_v18 = vld [vmem:[%s517_s2 + $0x48] sm:$0xff]  ;;  %v148_v20 = vld [vmem:[%s517_s2 + $0x38] sm:$0xff]  ;;  %p356_p0 = scmp.ne.s32.totalorder %s247_s15, %s355_s16  ;;  %p361_p2 = scmp.lt.s32.totalorder %s355_s16, %s355_s16 }
   0xf   :  { %297 = vmatprep.subr.bf16.mxu0 %v377_v1  ;;  %316 = vmatpush3.msra.mxu1 %v153_v8  ;;  %v21_v17 = vpack.c.bf16 %v20_v16, %v19_v15  ;;  %v149_v19 = vld [vmem:[%s517_s2 + $0x40] sm:$0xff]  ;;  %v147_v21 = vld [vmem:[%s517_s2 + $0x30] sm:$0xff]  ;;  %v146_v22 = vld [vmem:[%s517_s2 + $0x28] sm:$0xff] }
  0x10   :  { %317 = vmatprep.subr.mxu1 %v377_v1  ;;  %v145_v23 = vld [vmem:[%s517_s2 + $0x20] sm:$0xff]  ;;  %v144_v24 = vld [vmem:[%s517_s2 + $0x18] sm:$0xff]  ;;  %v143_v25 = vld [vmem:[%s517_s2 + $0x10] sm:$0xff]  ;;  %p362_p3 = por %p361_p2, %p360_p1 }
  0x11   :  { %318 = vmatpush3.msra.mxu1 %v152_v10  ;;  %v142_v26 = vld [vmem:[%s517_s2 + $0x8] sm:$0xff]  ;;  %v141_v27 = vld [vmem:[%s517_s2] sm:$0xff] }
  0x12   :  { %298 = vmatpush3.bf16.msra.mxu0 %v351_v9  ;;  %319 = vmatprep.subr.mxu1 %v377_v1  ;;  %v262_v47 = vld [vmem:[%s518_s3] ss:$0 sm:$0xff]  ;;  %p363_p4 = pnand %p362_p3, %p356_p0 }
  0x13   :  { %299 = vmatprep.subr.bf16.mxu0 %v377_v1  ;;  %320 = vmatpush3.msra.mxu1 %v151_v11 }
  0x14   :  { %321 = vmatprep.subr.mxu1 %v377_v1 }
  0x15   :  { %322 = vmatpush3.msra.mxu1 %v150_v18 }
  0x16   :  { %300 = vmatpush3.bf16.msra.mxu0 %v352_v12  ;;  %323 = vmatprep.subr.mxu1 %v377_v1 }
  0x17   :  { %301 = vmatprep.subr.bf16.mxu0 %v377_v1  ;;  %324 = vmatpush3.msra.mxu1 %v149_v19 }
  0x18   :  { %325 = vmatprep.subr.mxu1 %v377_v1 }
  0x19   :  { %326 = vmatpush3.msra.mxu1 %v148_v20 }
  0x1a   :  { %302 = vmatpush3.bf16.msra.mxu0 %v353_v13  ;;  %327 = vmatprep.subr.mxu1 %v377_v1 }
  0x1b   :  { %303 = vmatprep.subr.bf16.mxu0 %v377_v1  ;;  %328 = vmatpush3.msra.mxu1 %v147_v21 }
  0x1c   :  { %329 = vmatprep.subr.mxu1 %v377_v1 }
  0x1d   :  { %330 = vmatpush3.msra.mxu1 %v146_v22 }
  0x1e   :  { %304 = vmatpush3.bf16.msra.mxu0 %v354_v14  ;;  %331 = vmatprep.subr.mxu1 %v377_v1 }
  0x1f   :  { %332 = vmatpush3.msra.mxu1 %v145_v23 }
  0x20   :  { %333 = vmatprep.subr.mxu1 %v377_v1 }
  0x21   :  { %306 = vmatmul.mubr.bf16.vlgmr.msra.gmra.mxu0 %v21_v17  ;;  %334 = vmatpush3.msra.mxu1 %v144_v24 }
  0x22   :  { %335 = vmatprep.subr.mxu1 %v377_v1 }
  0x23   :  { %336 = vmatpush3.msra.mxu1 %v143_v25 }
  0x24   :  { %337 = vmatprep.subr.mxu1 %v377_v1 }
  0x25   :  { %338 = vmatpush3.msra.mxu1 %v142_v26 }
  0x26   :  { %339 = vmatprep.subr.mxu1 %v377_v1 }
  0x27   :  { %340 = vmatpush3.msra.mxu1 %v141_v27 }
  0xe1   :  { %v120_v28 = vpop.f32.mrf.mxu0 }
  0xe2   :  { %v127_v29 = vrot.slane %v120_v28, 4 }
  0xe3   :  { %v307_v30 = vpop.f32.mrf.mxu0 }
  0xe4   :  { %v128_v31 = vmax.f32 %v120_v28, %v127_v29 }
  0xe5   :  { %v123_v32 = vpop.f32.mrf.mxu0 }
  0xe6   :  { %v129_v33 = vrot.slane %v128_v31, 2  ;;  %v133_v34 = vrot.slane %v123_v32, 4 }
  0xe7   :  { %v308_v35 = vpop.f32.mrf.mxu0 }
  0xe8   :  { %v130_v36 = vmax.f32 %v128_v31, %v129_v33  ;;  %v134_v37 = vmax.f32 %v123_v32, %v133_v34 }
  0xea   :  { %v131_v38 = vrot.slane %v130_v36, 1  ;;  %v135_v39 = vrot.slane %v134_v37, 2 }
  0xec   :  { %v136_v40 = vmax.f32 %v134_v37, %v135_v39  ;;  %v132_v41 = vmax.f32 %v130_v36, %v131_v38 }
  0xee   :  { %v137_v42 = vrot.slane %v136_v40, 1  ;;  %v139_v44 = vmax.f32 %v132_v41, 0.0 }
  0xf0   :  { %v138_v43 = vmax.f32 %v136_v40, %v137_v42 }
  0xf2   :  { %v140_v45 = vmax.f32 %v138_v43, 0.0 }
  0xf4   :  { %v167_v46 = vsel %vm166_vm1, %v140_v45, %v139_v44 }
  0xf5   :  { %342 = vmatmul.mubr.f32.vlgmr.msra.gmra.mxu1 %v167_v46 }
 0x1b5   :  { %v235_v48 = vpop.f32.mrf.mxu1 }
 0x1b6   :  { %v236_v49 = vadd.f32 %v262_v47, %v235_v48 }
 0x1b7   :  { %v343_v50 = vpop.f32.mrf.mxu1 }
 0x1b8   :  { %239 = vst [vmem:[#allocation2] sm:$0x3] %v236_v49 }
 0x1b9   :  { %366 = shalt.err (!%p363_p4)
}
 0x1ba   :  { %249 = dma.vmem_to_hbm [thread:$0]  %s247_s15, 32, %s519_s4, [#allocation3]  }
 0x1bb   :  { %375 = dma.done.wait [#allocation3], 32  }
 0x1bc   :  { %376 = vsyncadd [#allocation3], 4294967264 }
 0x1bd   :  { %253 = vsyncpa [#allocation3], 1 }

// kernel: text_rwkv_forward.5
= control target key start
LH: loop header
LB: loop body
LE: loop exit
PB: predicated region body
PF: predicated region fallthrough
CT: control target
= control target key end

     0   :  { %vm67_vm0 = vcmask 523264   ;;  %s728_s3 = inlined_call_operand.vmem [shape: f32[64,128], index: 3, kind: input, shape index: {}]   ;;  %s729_s0 = inlined_call_operand.vmem [shape: f32[16,64], index: 0, kind: input, shape index: {}]   ;;  %s730_s5 = inlined_call_operand.vmem [shape: f32[128,128], index: 5, kind: input, shape index: {}]   ;;  %s731_s2 = inlined_call_operand.vmem [shape: f32[16,128], index: 2, kind: input, shape index: {}]   ;;  %s732_s4 = inlined_call_operand.vmem [shape: f32[64,128], index: 4, kind: input, shape index: {}]   ;;  %s733_s1 = inlined_call_operand.vmem [shape: f32[16,64], index: 1, kind: input, shape index: {}]   ;;  %s734_s6 = inlined_call_operand.vmem [shape: f32[1,128], index: 6, kind: input, shape index: {}]   ;;  %s735_s7 = inlined_call_operand.vmem [shape: f32[1,128], index: 7, kind: input, shape index: {}]   ;;  %s736_s10 = inlined_call_operand.vmem [shape: f32[16,128], index: 10, kind: output, shape index: {2}]   ;;  %s737_s8 = inlined_call_operand.vmem [shape: f32[16,128], index: 8, kind: output, shape index: {0}]   ;;  %s738_s9 = inlined_call_operand.vmem [shape: f32[16,128], index: 9, kind: output, shape index: {1}]  }
   0x1   :  { %v59_v0 = vld [vmem:[%s728_s3 + $0x38] sm:$0xff]  ;;  %v58_v1 = vld [vmem:[%s728_s3 + $0x30] sm:$0xff]  ;;  %v57_v2 = vld [vmem:[%s728_s3 + $0x28] sm:$0xff] }
   0x2   :  { %430 = vmatprep.subr.mxu1 %v59_v0  ;;  %v32_v3 = vld [vmem:[%s729_s0] sm:$0xff]  ;;  %v33_v4 = vld [vmem:[%s729_s0 + $0x8] sm:$0xff]  ;;  %v55_v6 = vld [vmem:[%s728_s3 + $0x18] sm:$0xff] }
   0x3   :  { %431 = vmatpush3.msra.mxu1 %v59_v0  ;;  %503 = vtanh.f32 %v32_v3  ;;  %v56_v5 = vld [vmem:[%s728_s3 + $0x20] sm:$0xff]  ;;  %v290_v7 = vld [vmem:[%s730_s5 + $0x78] sm:$0xff]  ;;  %v289_v8 = vld [vmem:[%s730_s5 + $0x70] sm:$0xff] }
   0x4   :  { %432 = vmatprep.subr.mxu1 %v58_v1  ;;  %505 = vtanh.f32 %v33_v4  ;;  %468 = vmatprep.subr.mxu0 %v290_v7  ;;  %v54_v9 = vld [vmem:[%s728_s3 + $0x10] sm:$0xff]  ;;  %v288_v10 = vld [vmem:[%s730_s5 + $0x68] sm:$0xff]  ;;  %v287_v12 = vld [vmem:[%s730_s5 + $0x60] sm:$0xff] }
   0x5   :  { %433 = vmatpush3.msra.mxu1 %v58_v1  ;;  %469 = vmatpush3.msra.mxu0 %v290_v7  ;;  %v53_v11 = vld [vmem:[%s728_s3 + $0x8] sm:$0xff]  ;;  %v52_v13 = vld [vmem:[%s728_s3] sm:$0xff]  ;;  %v286_v14 = vld [vmem:[%s730_s5 + $0x58] sm:$0xff] }
   0x6   :  { %434 = vmatprep.subr.mxu1 %v57_v2  ;;  %470 = vmatprep.subr.mxu0 %v289_v8  ;;  %v38_v15 = vld [vmem:[%s731_s2] sm:$0xff]  ;;  %v39_v16 = vld [vmem:[%s731_s2 + $0x8] sm:$0xff]  ;;  %v156_v19 = vld [vmem:[%s732_s4 + $0x38] sm:$0xff] }
   0x7   :  { %435 = vmatpush3.msra.mxu1 %v57_v2  ;;  %471 = vmatpush3.msra.mxu0 %v289_v8  ;;  %v380_v17 = vmul.f32 -1.442695, %v38_v15  ;;  %v381_v18 = vmul.f32 -1.442695, %v39_v16  ;;  %v285_v20 = vld [vmem:[%s730_s5 + $0x50] sm:$0xff]  ;;  %v36_v22 = vld [vmem:[%s733_s1] sm:$0xff] }
   0x8   :  { %436 = vmatprep.subr.mxu1 %v56_v5  ;;  %472 = vmatprep.subr.mxu0 %v288_v10  ;;  %v155_v24 = vld [vmem:[%s732_s4 + $0x30] sm:$0xff]  ;;  %v284_v25 = vld [vmem:[%s730_s5 + $0x48] sm:$0xff]  ;;  %v283_v27 = vld [vmem:[%s730_s5 + $0x40] sm:$0xff] }
   0x9   :  { %437 = vmatpush3.msra.mxu1 %v56_v5  ;;  %473 = vmatpush3.msra.mxu0 %v288_v10  ;;  %507 = vpow2.f32 %v380_v17  ;;  %v154_v26 = vld [vmem:[%s732_s4 + $0x28] sm:$0xff]  ;;  %v153_v28 = vld [vmem:[%s732_s4 + $0x20] sm:$0xff]  ;;  %v282_v29 = vld [vmem:[%s730_s5 + $0x38] sm:$0xff] }
   0xa   :  { %438 = vmatprep.subr.mxu1 %v55_v6  ;;  %474 = vmatprep.subr.mxu0 %v287_v12  ;;  %509 = vpow2.f32 %v381_v18  ;;  %v152_v30 = vld [vmem:[%s732_s4 + $0x18] sm:$0xff]  ;;  %v281_v31 = vld [vmem:[%s730_s5 + $0x30] sm:$0xff]  ;;  %v280_v33 = vld [vmem:[%s730_s5 + $0x28] sm:$0xff] }
   0xb   :  { %439 = vmatpush3.msra.mxu1 %v55_v6  ;;  %475 = vmatpush3.msra.mxu0 %v287_v12  ;;  %v151_v32 = vld [vmem:[%s732_s4 + $0x10] sm:$0xff]  ;;  %v150_v34 = vld [vmem:[%s732_s4 + $0x8] sm:$0xff]  ;;  %v279_v36 = vld [vmem:[%s730_s5 + $0x20] sm:$0xff] }
   0xc   :  { %440 = vmatprep.subr.mxu1 %v54_v9  ;;  %476 = vmatprep.subr.mxu0 %v286_v14  ;;  %v149_v38 = vld [vmem:[%s732_s4] sm:$0xff]  ;;  %v278_v40 = vld [vmem:[%s730_s5 + $0x18] sm:$0xff]  ;;  %v37_v42 = vld [vmem:[%s733_s1 + $0x8] sm:$0xff] }
   0xd   :  { %441 = vmatpush3.msra.mxu1 %v54_v9  ;;  %477 = vmatpush3.msra.mxu0 %v286_v14  ;;  %v277_v43 = vld [vmem:[%s730_s5 + $0x10] sm:$0xff]  ;;  %v276_v44 = vld [vmem:[%s730_s5 + $0x8] sm:$0xff]  ;;  %v275_v45 = vld [vmem:[%s730_s5] sm:$0xff] }
   0xe   :  { %442 = vmatprep.subr.mxu1 %v53_v11  ;;  %478 = vmatprep.subr.mxu0 %v285_v20  ;;  %v382_v48 = vld [vmem:[%s734_s6] ss:$0 sm:$0xff] }
   0xf   :  { %443 = vmatpush3.msra.mxu1 %v53_v11  ;;  %479 = vmatpush3.msra.mxu0 %v285_v20  ;;  %v385_v55 = vld [vmem:[%s735_s7] ss:$0 sm:$0xff] }
  0x10   :  { %444 = vmatprep.subr.mxu1 %v52_v13  ;;  %v504_v21 = vpop.eup %503  ;;  %480 = vmatprep.subr.mxu0 %v284_v25 }
  0x11   :  { %445 = vmatpush3.msra.mxu1 %v52_v13  ;;  %v506_v23 = vpop.eup %505  ;;  %446 = vmatprep.mubr.msk.f32.mxu1 %vm67_vm0, %v504_v21 }
  0x12   :  { %449 = vmatprep.subr.mxu1 %v156_v19  ;;  %447 = vmatmul.mubr.msk.f32.vlgmr.msra.gmra.mxu1 %vm67_vm0, %v506_v23 }
  0x13   :  { %450 = vmatpush3.msra.mxu1 %v156_v19  ;;  %465 = vmatprep.mubr.msk.f32.mxu1 %vm67_vm0, %v36_v22 }
  0x14   :  { %451 = vmatprep.subr.mxu1 %v155_v24  ;;  %481 = vmatpush3.msra.mxu0 %v284_v25 }
  0x15   :  { %452 = vmatpush3.msra.mxu1 %v155_v24  ;;  %482 = vmatprep.subr.mxu0 %v283_v27 }
  0x16   :  { %453 = vmatprep.subr.mxu1 %v154_v26  ;;  %483 = vmatpush3.msra.mxu0 %v283_v27  ;;  %v508_v35 = vpop.eup %507 }
  0x17   :  { %454 = vmatpush3.msra.mxu1 %v154_v26  ;;  %484 = vmatprep.subr.mxu0 %v282_v29  ;;  %v510_v37 = vpop.eup %509  ;;  %v46_v39 = vadd.f32 1.0, %v508_v35 }
  0x18   :  { %455 = vmatprep.subr.mxu1 %v153_v28  ;;  %485 = vmatpush3.msra.mxu0 %v282_v29  ;;  %v47_v41 = vadd.f32 1.0, %v510_v37 }
  0x19   :  { %456 = vmatpush3.msra.mxu1 %v153_v28  ;;  %486 = vmatprep.subr.mxu0 %v281_v31  ;;  %511 = vrcp.f32 %v46_v39 }
  0x1a   :  { %457 = vmatprep.subr.mxu1 %v152_v30  ;;  %487 = vmatpush3.msra.mxu0 %v281_v31  ;;  %513 = vrcp.f32 %v47_v41 }
  0x1b   :  { %458 = vmatpush3.msra.mxu1 %v152_v30  ;;  %488 = vmatprep.subr.mxu0 %v280_v33 }
  0x1c   :  { %459 = vmatprep.subr.mxu1 %v151_v32  ;;  %489 = vmatpush3.msra.mxu0 %v280_v33 }
  0x1d   :  { %460 = vmatpush3.msra.mxu1 %v151_v32  ;;  %490 = vmatprep.subr.mxu0 %v279_v36 }
  0x1e   :  { %461 = vmatprep.subr.mxu1 %v150_v34  ;;  %491 = vmatpush3.msra.mxu0 %v279_v36 }
  0x1f   :  { %462 = vmatpush3.msra.mxu1 %v150_v34  ;;  %492 = vmatprep.subr.mxu0 %v278_v40 }
  0x20   :  { %463 = vmatprep.subr.mxu1 %v149_v38  ;;  %493 = vmatpush3.msra.mxu0 %v278_v40 }
  0x21   :  { %464 = vmatpush3.msra.mxu1 %v149_v38  ;;  %494 = vmatprep.subr.mxu0 %v277_v43 }
  0x22   :  { %466 = vmatmul.mubr.msk.f32.vlgmr.msra.gmra.mxu1 %vm67_vm0, %v37_v42  ;;  %495 = vmatpush3.msra.mxu0 %v277_v43 }
  0x23   :  { %496 = vmatprep.subr.mxu0 %v276_v44 }
  0x24   :  { %497 = vmatpush3.msra.mxu0 %v276_v44 }
  0x25   :  { %498 = vmatprep.subr.mxu0 %v275_v45 }
  0x26   :  { %499 = vmatpush3.msra.mxu0 %v275_v45  ;;  %v512_v46 = vpop.eup %511 }
  0x27   :  { %v514_v47 = vpop.eup %513  ;;  %500 = vmatprep.mubr.f32.mxu0 %v512_v46 }
  0x28   :  { %501 = vmatmul.mubr.f32.vlgmr.msra.gmra.mxu0 %v514_v47 }
  0xd2   :  { %v448_v49 = vpop.f32.mrf.mxu1 }
  0xd3   :  { %v146_v50 = vadd.f32 %v448_v49, %v382_v48 }
  0xd4   :  { %v140_v51 = vpop.f32.mrf.mxu1 }
  0xd5   :  { %v389_v52 = vmul.f32 -1.442695, %v146_v50  ;;  %v141_v53 = vadd.f32 %v382_v48, %v140_v51 }
  0xd7   :  { %515 = vpow2.f32 %v389_v52  ;;  %v388_v54 = vmul.f32 -1.442695, %v141_v53 }
  0xd9   :  { %517 = vpow2.f32 %v388_v54 }
  0xe2   :  { %v467_v56 = vpop.f32.mrf.mxu1 }
  0xe3   :  { %v242_v57 = vadd.f32 %v467_v56, %v385_v55 }
  0xe4   :  { %v516_v58 = vpop.eup %515  ;;  %v236_v59 = vpop.f32.mrf.mxu1 }
  0xe5   :  { %v252_v60 = vadd.f32 1.0, %v516_v58  ;;  %v391_v61 = vmul.f32 -1.442695, %v242_v57  ;;  %v237_v62 = vadd.f32 %v385_v55, %v236_v59 }
  0xe6   :  { %v518_v63 = vpop.eup %517 }
  0xe7   :  { %519 = vrcp.f32 %v252_v60  ;;  %v251_v0 = vadd.f32 1.0, %v518_v63  ;;  %v390_v1 = vmul.f32 -1.442695, %v237_v62 }
  0xe8   :  { %521 = vpow2.f32 %v391_v61  ;;  %v502_v2 = vpop.f32.mrf.mxu0 }
  0xe9   :  { %523 = vrcp.f32 %v251_v0  ;;  %367 = vst [vmem:[%s736_s10 + $0x8] sm:$0xff] %v502_v2 }
  0xea   :  { %525 = vpow2.f32 %v390_v1  ;;  %v357_v3 = vpop.f32.mrf.mxu0 }
  0xeb   :  { %366 = vst [vmem:[%s736_s10] sm:$0xff] %v357_v3 }
  0xf4   :  { %v520_v4 = vpop.eup %519 }
  0xf5   :  { %v522_v5 = vpop.eup %521  ;;  %v258_v6 = vmul.f32 -0.60653067, %v520_v4 }
  0xf6   :  { %v524_v7 = vpop.eup %523  ;;  %v268_v8 = vadd.f32 1.0, %v522_v5 }
  0xf7   :  { %v526_v9 = vpop.eup %525  ;;  %260 = vst [vmem:[%s737_s8 + $0x8] sm:$0xff] %v258_v6  ;;  %v257_v10 = vmul.f32 -0.60653067, %v524_v7 }
  0xf8   :  { %527 = vrcp.f32 %v268_v8  ;;  %v267_v11 = vadd.f32 1.0, %v526_v9 }
  0xf9   :  { %259 = vst [vmem:[%s737_s8] sm:$0xff] %v257_v10 }
  0xfa   :  { %529 = vrcp.f32 %v267_v11 }
 0x105   :  { %v528_v12 = vpop.eup %527 }
 0x106   :  { %274 = vst [vmem:[%s738_s9 + $0x8] sm:$0xff] %v528_v12 }
 0x107   :  { %v530_v13 = vpop.eup %529 }
 0x108   :  { %273 = vst [vmem:[%s738_s9] sm:$0xff] %v530_v13 }

// kernel: text_rwkv_forward.4
= control target key start
LH: loop header
LB: loop body
LE: loop exit
PB: predicated region body
PF: predicated region fallthrough
CT: control target
= control target key end

     0   :  { %7 = vsyncpa [#allocation4], 0  ;;  %s993_s9 = smov [#allocation3]   ;;  %s1055_s0 = inlined_call_operand.vmem [shape: bf16[16,256], index: 0, kind: input, shape index: {}]   ;;  %s1056_s1 = inlined_call_operand.hbm [shape: bf16[256,640], index: 1, kind: input, shape index: {}]   ;;  %s1057_s2 = inlined_call_operand.vmem [shape: f32[16,640], index: 2, kind: output, shape index: {}]  }
   0x1   :  { %s15_s10 = sshll.u32 %s993_s9, 4  ;;  %s16_s10 = int_to_ptr.vmem [resolvable:$true] %s15_s10 }
   0x2   :  { %s979_s11 = scalar_lea.vmem %s16_s10, 10240  ;;  %p984_p1 = scmp.lt.s32.totalorder %s16_s10, %s16_s10 }
   0x3   :  { %p980_p0 = scmp.ne.s32.totalorder %s16_s10, %s979_s11  ;;  %p985_p2 = scmp.lt.s32.totalorder %s979_s11, %s979_s11 }
   0x5   :  { %p986_p3 = por %p985_p2, %p984_p1 }
   0x7   :  { %p987_p4 = pnand %p986_p3, %p980_p0 }
   0x9   :  { %990 = shalt.err (!%p987_p4)
}
   0xa   :  { %s994_s12 = smov 320   ;;  %s995_s13 = smov 20  }
   0xb   :  { %21 = dma.hbm_to_vmem [thread:$0]  %s1056_s1, 10240, %s16_s10, [#allocation4], %s994_s12, %s994_s12, %s995_s13  }
   0xc   :  { %991 = dma.done.wait [#allocation4], 10240  }
   0xd   :  { %992 = vsyncadd [#allocation4], 4294957056  ;;  %v856_v0 = vld [vmem:[#allocation3 + $0x11c] ss:$20 sps:$4 sm:$0xff]   ;;  %v858_v1 = vld [vmem:[#allocation3 + $0x118] ss:$20 sps:$4 sm:$0xff]  }
   0xe   :  { %574 = vmatprep.subr.bf16.mxu0 %v856_v0  ;;  %v859_v2 = vld [vmem:[#allocation3 + $0xf4] ss:$20 sps:$4 sm:$0xff]   ;;  %v861_v3 = vld [vmem:[#allocation3 + $0xf0] ss:$20 sps:$4 sm:$0xff]   ;;  %v862_v4 = vld [vmem:[#allocation3 + $0xcc] ss:$20 sps:$4 sm:$0xff]  }
   0xf   :  { %575 = vmatpush1.bf16.msra.mxu0 %v858_v1  ;;  %v864_v5 = vld [vmem:[#allocation3 + $0xc8] ss:$20 sps:$4 sm:$0xff]   ;;  %v865_v6 = vld [vmem:[#allocation3 + $0xa4] ss:$20 sps:$4 sm:$0xff]   ;;  %v867_v7 = vld [vmem:[#allocation3 + $0xa0] ss:$20 sps:$4 sm:$0xff]  }
  0x10   :  { %576 = vmatprep.subr.bf16.mxu0 %v859_v2  ;;  %v879_v8 = vld [vmem:[#allocation3 + $0x124] ss:$20 sps:$4 sm:$0xff]   ;;  %v882_v9 = vld [vmem:[#allocation3 + $0x120] ss:$20 sps:$4 sm:$0xff]   ;;  %v868_v10 = vld [vmem:[#allocation3 + $0x7c] ss:$20 sps:$4 sm:$0xff]  }
  0x11   :  { %617 = vmatprep.subr.bf16.mxu1 %v879_v8  ;;  %v885_v11 = vld [vmem:[#allocation3 + $0xfc] ss:$20 sps:$4 sm:$0xff]   ;;  %v888_v12 = vld [vmem:[#allocation3 + $0xf8] ss:$20 sps:$4 sm:$0xff]   ;;  %v871_v14 = vld [vmem:[#allocation3 + $0x54] ss:$20 sps:$4 sm:$0xff]  }
  0x12   :  { %618 = vmatpush1.bf16.msra.mxu1 %v882_v9  ;;  %v870_v13 = vld [vmem:[#allocation3 + $0x78] ss:$20 sps:$4 sm:$0xff]   ;;  %v891_v15 = vld [vmem:[#allocation3 + $0xd4] ss:$20 sps:$4 sm:$0xff]   ;;  %v894_v16 = vld [vmem:[#allocation3 + $0xd0] ss:$20 sps:$4 sm:$0xff]  }
  0x13   :  { %577 = vmatpush1.bf16.msra.mxu0 %v861_v3  ;;  %619 = vmatprep.subr.bf16.mxu1 %v885_v11  ;;  %v873_v17 = vld [vmem:[#allocation3 + $0x50] ss:$20 sps:$4 sm:$0xff]   ;;  %v897_v18 = vld [vmem:[#allocation3 + $0xac] ss:$20 sps:$4 sm:$0xff]   ;;  %v876_v20 = vld [vmem:[#allocation3 + $0x28] ss:$20 sps:$4 sm:$0xff]  }
  0x14   :  { %578 = vmatprep.subr.bf16.mxu0 %v862_v4  ;;  %v874_v19 = vld [vmem:[#allocation3 + $0x2c] ss:$20 sps:$4 sm:$0xff]   ;;  %v900_v21 = vld [vmem:[#allocation3 + $0xa8] ss:$20 sps:$4 sm:$0xff]   ;;  %v903_v22 = vld [vmem:[#allocation3 + $0x84] ss:$20 sps:$4 sm:$0xff]  }
  0x15   :  { %v877_v23 = vld [vmem:[#allocation3 + $0x4] ss:$20 sps:$4 sm:$0xff]   ;;  %v906_v24 = vld [vmem:[#allocation3 + $0x80] ss:$20 sps:$4 sm:$0xff]   ;;  %v909_v26 = vld [vmem:[#allocation3 + $0x5c] ss:$20 sps:$4 sm:$0xff]  }
  0x16   :  { %620 = vmatpush1.bf16.msra.mxu1 %v888_v12  ;;  %v881_v25 = vld [vmem:[#allocation3] ss:$20 sps:$4 sm:$0xff]   ;;  %v883_v27 = vld [vmem:[#allocation3 + $0x25c] ss:$20 sps:$4 sm:$0xff]   ;;  %v887_v28 = vld [vmem:[#allocation3 + $0x258] ss:$20 sps:$4 sm:$0xff]  }
  0x17   :  { %579 = vmatpush1.bf16.msra.mxu0 %v864_v5  ;;  %621 = vmatprep.subr.bf16.mxu1 %v891_v15  ;;  %v912_v29 = vld [vmem:[#allocation3 + $0x58] ss:$20 sps:$4 sm:$0xff]   ;;  %v915_v30 = vld [vmem:[#allocation3 + $0x34] ss:$20 sps:$4 sm:$0xff]   ;;  %v893_v32 = vld [vmem:[#allocation3 + $0x230] ss:$20 sps:$4 sm:$0xff]  }
  0x18   :  { %580 = vmatprep.subr.bf16.mxu0 %v865_v6  ;;  %v889_v31 = vld [vmem:[#allocation3 + $0x234] ss:$20 sps:$4 sm:$0xff]   ;;  %v918_v33 = vld [vmem:[#allocation3 + $0x30] ss:$20 sps:$4 sm:$0xff]   ;;  %v921_v35 = vld [vmem:[#allocation3 + $0xc] ss:$20 sps:$4 sm:$0xff]  }
  0x19   :  { %v1017_v34 = vld [vmem:[%s1055_s0 + $0x4] ss:$8 sps:$4 sm:$0xff]   ;;  %v899_v37 = vld [vmem:[#allocation3 + $0x208] ss:$20 sps:$4 sm:$0xff]   ;;  %v930_v41 = vld [vmem:[#allocation3 + $0x260] ss:$20 sps:$4 sm:$0xff]  }
  0x1a   :  { %622 = vmatpush1.bf16.msra.mxu1 %v894_v16  ;;  %v895_v36 = vld [vmem:[#allocation3 + $0x20c] ss:$20 sps:$4 sm:$0xff]   ;;  %606 = vmatprep.mubr.bf16.mxu0 %v1017_v34  ;;  %v924_v38 = vld [vmem:[#allocation3 + $0x8] ss:$20 sps:$4 sm:$0xff]   ;;  %v927_v39 = vld [vmem:[#allocation3 + $0x264] ss:$20 sps:$4 sm:$0xff]  }
  0x1b   :  { %581 = vmatpush1.bf16.msra.mxu0 %v867_v7  ;;  %623 = vmatprep.subr.bf16.mxu1 %v897_v18  ;;  %v901_v40 = vld [vmem:[#allocation3 + $0x1e4] ss:$20 sps:$4 sm:$0xff]   ;;  %v905_v42 = vld [vmem:[#allocation3 + $0x1e0] ss:$20 sps:$4 sm:$0xff]   ;;  %v934_v43 = vld [vmem:[#allocation3 + $0x23c] ss:$20 sps:$4 sm:$0xff]  }
  0x1c   :  { %582 = vmatprep.subr.bf16.mxu0 %v868_v10  ;;  %649 = vmatprep.mubr.bf16.mxu1 %v1017_v34  ;;  %v907_v44 = vld [vmem:[#allocation3 + $0x1bc] ss:$20 sps:$4 sm:$0xff]   ;;  %v911_v45 = vld [vmem:[#allocation3 + $0x1b8] ss:$20 sps:$4 sm:$0xff]   ;;  %v939_v47 = vld [vmem:[#allocation3 + $0x214] ss:$20 sps:$4 sm:$0xff]  }
  0x1d   :  { %v937_v46 = vld [vmem:[#allocation3 + $0x238] ss:$20 sps:$4 sm:$0xff]   ;;  %v913_v48 = vld [vmem:[#allocation3 + $0x194] ss:$20 sps:$4 sm:$0xff]   ;;  %v917_v49 = vld [vmem:[#allocation3 + $0x190] ss:$20 sps:$4 sm:$0xff]  }
  0x1e   :  { %624 = vmatpush1.bf16.msra.mxu1 %v900_v21  ;;  %v942_v50 = vld [vmem:[#allocation3 + $0x210] ss:$20 sps:$4 sm:$0xff]   ;;  %v944_v51 = vld [vmem:[#allocation3 + $0x1ec] ss:$20 sps:$4 sm:$0xff]   ;;  %v923_v53 = vld [vmem:[#allocation3 + $0x168] ss:$20 sps:$4 sm:$0xff]  }
  0x1f   :  { %583 = vmatpush1.bf16.msra.mxu0 %v870_v13  ;;  %625 = vmatprep.subr.bf16.mxu1 %v903_v22  ;;  %v919_v52 = vld [vmem:[#allocation3 + $0x16c] ss:$20 sps:$4 sm:$0xff]   ;;  %v947_v54 = vld [vmem:[#allocation3 + $0x1e8] ss:$20 sps:$4 sm:$0xff]   ;;  %v949_v55 = vld [vmem:[#allocation3 + $0x1c4] ss:$20 sps:$4 sm:$0xff]  }
  0x20   :  { %584 = vmatprep.subr.bf16.mxu0 %v871_v14  ;;  %v925_v56 = vld [vmem:[#allocation3 + $0x144] ss:$20 sps:$4 sm:$0xff]   ;;  %v929_v57 = vld [vmem:[#allocation3 + $0x140] ss:$20 sps:$4 sm:$0xff]   ;;  %v954_v59 = vld [vmem:[#allocation3 + $0x19c] ss:$20 sps:$4 sm:$0xff]  }
  0x21   :  { %v952_v58 = vld [vmem:[#allocation3 + $0x1c0] ss:$20 sps:$4 sm:$0xff]   ;;  %v936_v60 = vld [vmem:[#allocation3 + $0x268] ss:$20 sps:$4 sm:$0xff]   ;;  %v957_v62 = vld [vmem:[#allocation3 + $0x198] ss:$20 sps:$4 sm:$0xff]  }
  0x22   :  { %626 = vmatpush1.bf16.msra.mxu1 %v906_v24  ;;  %v933_v61 = vld [vmem:[%s1055_s0] ss:$8 sps:$4 sm:$0xff]   ;;  %v962_v2 = vld [vmem:[#allocation3 + $0x170] ss:$20 sps:$4 sm:$0xff]   ;;  %v946_v5 = vld [vmem:[#allocation3 + $0x218] ss:$20 sps:$4 sm:$0xff]  }
  0x23   :  { %585 = vmatpush1.bf16.msra.mxu0 %v873_v17  ;;  %627 = vmatprep.subr.bf16.mxu1 %v909_v26  ;;  %v938_v63 = vld [vmem:[#allocation3 + $0x128] ss:$20 sps:$4 sm:$0xff]   ;;  %v941_v1 = vld [vmem:[#allocation3 + $0x240] ss:$20 sps:$4 sm:$0xff]   ;;  %v948_v7 = vld [vmem:[#allocation3 + $0xd8] ss:$20 sps:$4 sm:$0xff]  }
  0x24   :  { %586 = vmatprep.subr.bf16.mxu0 %v874_v19  ;;  %v959_v0 = vld [vmem:[#allocation3 + $0x174] ss:$20 sps:$4 sm:$0xff]   ;;  %v964_v4 = vld [vmem:[#allocation3 + $0x14c] ss:$20 sps:$4 sm:$0xff]   ;;  %v951_v8 = vld [vmem:[#allocation3 + $0x1f0] ss:$20 sps:$4 sm:$0xff]  }
  0x25   :  { %v943_v3 = vld [vmem:[#allocation3 + $0x100] ss:$20 sps:$4 sm:$0xff]   ;;  %v967_v6 = vld [vmem:[#allocation3 + $0x148] ss:$20 sps:$4 sm:$0xff]   ;;  %v953_v9 = vld [vmem:[#allocation3 + $0xb0] ss:$20 sps:$4 sm:$0xff]  }
  0x26   :  { %628 = vmatpush1.bf16.msra.mxu1 %v912_v29  ;;  %v956_v10 = vld [vmem:[#allocation3 + $0x1c8] ss:$20 sps:$4 sm:$0xff]   ;;  %v961_v12 = vld [vmem:[#allocation3 + $0x1a0] ss:$20 sps:$4 sm:$0xff]   ;;  %v966_v14 = vld [vmem:[#allocation3 + $0x178] ss:$20 sps:$4 sm:$0xff]  }
  0x27   :  { %587 = vmatpush1.bf16.msra.mxu0 %v876_v20  ;;  %629 = vmatprep.subr.bf16.mxu1 %v915_v30  ;;  %v958_v11 = vld [vmem:[#allocation3 + $0x88] ss:$20 sps:$4 sm:$0xff]   ;;  %v963_v13 = vld [vmem:[#allocation3 + $0x60] ss:$20 sps:$4 sm:$0xff]   ;;  %v968_v15 = vld [vmem:[#allocation3 + $0x38] ss:$20 sps:$4 sm:$0xff]  }
  0x28   :  { %588 = vmatprep.subr.bf16.mxu0 %v877_v23  ;;  %v969_v16 = vld [vmem:[#allocation3 + $0x150] ss:$20 sps:$4 sm:$0xff]  }
  0x29   :  { %v970_v17 = vld [vmem:[#allocation3 + $0x10] ss:$20 sps:$4 sm:$0xff]  }
  0x2a   :  { %630 = vmatpush1.bf16.msra.mxu1 %v918_v33 }
  0x2b   :  { %589 = vmatpush1.bf16.msra.mxu0 %v881_v25  ;;  %631 = vmatprep.subr.bf16.mxu1 %v921_v35 }
  0x2c   :  { %590 = vmatprep.subr.bf16.mxu0 %v883_v27 }
  0x2e   :  { %632 = vmatpush1.bf16.msra.mxu1 %v924_v38 }
  0x2f   :  { %591 = vmatpush2.bf16.msra.mxu0 %v887_v28  ;;  %633 = vmatprep.subr.bf16.mxu1 %v927_v39 }
  0x30   :  { %592 = vmatprep.subr.bf16.mxu0 %v889_v31 }
  0x32   :  { %634 = vmatpush2.bf16.msra.mxu1 %v930_v41 }
  0x33   :  { %593 = vmatpush2.bf16.msra.mxu0 %v893_v32  ;;  %635 = vmatprep.subr.bf16.mxu1 %v934_v43 }
  0x34   :  { %594 = vmatprep.subr.bf16.mxu0 %v895_v36 }
  0x36   :  { %636 = vmatpush2.bf16.msra.mxu1 %v937_v46 }
  0x37   :  { %595 = vmatpush2.bf16.msra.mxu0 %v899_v37  ;;  %637 = vmatprep.subr.bf16.mxu1 %v939_v47 }
  0x38   :  { %596 = vmatprep.subr.bf16.mxu0 %v901_v40 }
  0x3a   :  { %638 = vmatpush2.bf16.msra.mxu1 %v942_v50 }
  0x3b   :  { %597 = vmatpush2.bf16.msra.mxu0 %v905_v42  ;;  %639 = vmatprep.subr.bf16.mxu1 %v944_v51 }
  0x3c   :  { %598 = vmatprep.subr.bf16.mxu0 %v907_v44 }
  0x3e   :  { %640 = vmatpush2.bf16.msra.mxu1 %v947_v54 }
  0x3f   :  { %599 = vmatpush2.bf16.msra.mxu0 %v911_v45  ;;  %641 = vmatprep.subr.bf16.mxu1 %v949_v55 }
  0x40   :  { %600 = vmatprep.subr.bf16.mxu0 %v913_v48 }
  0x42   :  { %642 = vmatpush2.bf16.msra.mxu1 %v952_v58 }
  0x43   :  { %601 = vmatpush2.bf16.msra.mxu0 %v917_v49  ;;  %643 = vmatprep.subr.bf16.mxu1 %v954_v59 }
  0x44   :  { %602 = vmatprep.subr.bf16.mxu0 %v919_v52 }
  0x46   :  { %644 = vmatpush2.bf16.msra.mxu1 %v957_v62 }
  0x47   :  { %603 = vmatpush2.bf16.msra.mxu0 %v923_v53  ;;  %645 = vmatprep.subr.bf16.mxu1 %v959_v0 }
  0x48   :  { %604 = vmatprep.subr.bf16.mxu0 %v925_v56 }
  0x4a   :  { %646 = vmatpush2.bf16.msra.mxu1 %v962_v2 }
  0x4b   :  { %605 = vmatpush2.bf16.msra.mxu0 %v929_v57  ;;  %647 = vmatprep.subr.bf16.mxu1 %v964_v4 }
  0x4c   :  { %831 = vmatprep.subr.bf16.mxu0 %v936_v60 }
  0x4e   :  { %607 = vmatmul.mubr.bf16.vlgmr.msra.gmra.mxu0 %v933_v61  ;;  %648 = vmatpush2.bf16.msra.mxu1 %v967_v6 }
  0x4f   :  { %832 = vmatpush3.bf16.msra.mxu0 %v938_v63  ;;  %692 = vmatprep.mubr.bf16.mxu0 %v1017_v34 }
  0x50   :  { %833 = vmatprep.subr.bf16.mxu0 %v941_v1 }
  0x51   :  { %650 = vmatmul.mubr.bf16.vlgmr.msra.gmra.mxu1 %v933_v61 }
  0x53   :  { %834 = vmatpush3.bf16.msra.mxu0 %v943_v3 }
  0x54   :  { %835 = vmatprep.subr.bf16.mxu0 %v946_v5 }
  0x57   :  { %836 = vmatpush3.bf16.msra.mxu0 %v948_v7 }
  0x58   :  { %837 = vmatprep.subr.bf16.mxu0 %v951_v8 }
  0x5b   :  { %838 = vmatpush3.bf16.msra.mxu0 %v953_v9 }
  0x5c   :  { %839 = vmatprep.subr.bf16.mxu0 %v956_v10 }
  0x5f   :  { %840 = vmatpush3.bf16.msra.mxu0 %v958_v11 }
  0x60   :  { %841 = vmatprep.subr.bf16.mxu0 %v961_v12 }
  0x63   :  { %842 = vmatpush3.bf16.msra.mxu0 %v963_v13 }
  0x64   :  { %843 = vmatprep.subr.bf16.mxu0 %v966_v14 }
  0x67   :  { %844 = vmatpush3.bf16.msra.mxu0 %v968_v15 }
  0x68   :  { %845 = vmatprep.subr.bf16.mxu0 %v969_v16 }
  0x6b   :  { %846 = vmatpush3.bf16.msra.mxu0 %v970_v17 }
  0x6e   :  { %693 = vmatmul.mubr.bf16.vlgmr.msra.gmra.mxu0 %v933_v61 }
 0x10e   :  { %v608_v18 = vpop.f32.mrf.mxu0 }
 0x10f   :  { %734 = vst [vmem:[%s1057_s2] sm:$0xff] %v608_v18 }
 0x110   :  { %v610_v19 = vpop.f32.mrf.mxu0 }
 0x111   :  { %735 = vst [vmem:[%s1057_s2 + $0x8] sm:$0xff] %v610_v19  ;;  %v651_v22 = vpop.f32.mrf.mxu1 }
 0x112   :  { %v612_v20 = vpop.f32.mrf.mxu0  ;;  %736 = vst [vmem:[%s1057_s2 + $0x10] sm:$0xff] %v651_v22 }
 0x113   :  { %739 = vst [vmem:[%s1057_s2 + $0x28] sm:$0xff] %v612_v20  ;;  %v653_v23 = vpop.f32.mrf.mxu1 }
 0x114   :  { %v614_v21 = vpop.f32.mrf.mxu0  ;;  %737 = vst [vmem:[%s1057_s2 + $0x18] sm:$0xff] %v653_v23 }
 0x115   :  { %740 = vst [vmem:[%s1057_s2 + $0x30] sm:$0xff] %v614_v21  ;;  %v655_v24 = vpop.f32.mrf.mxu1 }
 0x116   :  { %741 = vst [vmem:[%s1057_s2 + $0x38] sm:$0xff] %v655_v24 }
 0x117   :  { %v657_v25 = vpop.f32.mrf.mxu1 }
 0x118   :  { %742 = vst [vmem:[%s1057_s2 + $0x40] sm:$0xff] %v657_v25 }
 0x12e   :  { %v847_v26 = vpop.f32.mrf.mxu0 }
 0x130   :  { %v848_v27 = vpop.f32.mrf.mxu0 }
 0x131   :  { %v849_v28 = vadd.f32 %v848_v27, %v847_v26 }
 0x132   :  { %v850_v29 = vpop.f32.mrf.mxu0 }
 0x133   :  { %738 = vst [vmem:[%s1057_s2 + $0x20] sm:$0xff] %v849_v28 }
 0x134   :  { %v851_v30 = vpop.f32.mrf.mxu0 }
 0x135   :  { %v852_v31 = vadd.f32 %v851_v30, %v850_v29 }
 0x137   :  { %743 = vst [vmem:[%s1057_s2 + $0x48] sm:$0xff] %v852_v31 }
 0x138   :  { %748 = vsyncpa [#allocation4], 1 }

// kernel: text_rwkv_forward.6
= control target key start
LH: loop header
LB: loop body
LE: loop exit
PB: predicated region body
PF: predicated region fallthrough
CT: control target
= control target key end

     0   :  { %s5311_s21 = smov 0   ;;  %s7718_s0 = inlined_call_operand.vmem [shape: f32[2,8,128], index: 0, kind: input, shape index: {}]   ;;  %s7719_s1 = inlined_call_operand.vmem [shape: f32[2,8,128], index: 1, kind: input, shape index: {}]   ;;  %s7720_s2 = inlined_call_operand.vmem [shape: f32[2,8,128], index: 2, kind: input, shape index: {}]   ;;  %s7721_s3 = inlined_call_operand.vmem [shape: f32[2,8,128], index: 3, kind: input, shape index: {}]   ;;  %s7722_s4 = inlined_call_operand.vmem [shape: f32[2,128,8], index: 4, kind: input, shape index: {}]   ;;  %s7723_s5 = inlined_call_operand.vmem [shape: f32[2,8,128], index: 5, kind: input, shape index: {}]   ;;  %s7724_s6 = inlined_call_operand.vmem [shape: f32[2,8,128], index: 6, kind: input, shape index: {}]   ;;  %s7725_s7 = inlined_call_operand.vmem [shape: f32[1,128], index: 7, kind: input, shape index: {}]   ;;  %s7726_s8 = inlined_call_operand.vmem [shape: f32[1,128], index: 8, kind: input, shape index: {}]   ;;  %s7727_s9 = inlined_call_operand.vmem [shape: f32[1,128], index: 9, kind: input, shape index: {}]   ;;  %s7728_s10 = inlined_call_operand.vmem [shape: f32[1,128], index: 10, kind: input, shape index: {}]   ;;  %s7729_s11 = inlined_call_operand.vmem [shape: f32[1,128], index: 11, kind: input, shape index: {}]   ;;  %s7730_s12 = inlined_call_operand.vmem [shape: f32[2,8,128], index: 12, kind: output, shape index: {}]  }
   0x1 LB: > { %s4529_s22 = sadd.s32 4294967295, %s5233_s21   ;;  %p4533_p0 = scmp.ge.s32.totalorder %s5233_s21, 1  ;;  %s5233_s21 = sphi %s5311_s21, %s22_s21  }
   0x2   : > { %p416_p1 = scmp.lt.s32.totalorder %s5233_s21, 3 }
   0x4   : > { %p417_p2 = pnand %p4533_p0, %p416_p1 }
   0x6   : > { %420 = sbr.rel (%p417_p2) target bundleno = 3376 (0xd30), region = 68 }
   0xb   : > { %p481_p3 = scmp.lt.s32.totalorder %s4529_s22, 1  ;;  %v5235_v0 = vmov 0   ;;  %v4543_v1 = vld [vmem:[%s7725_s7] ss:$0 sm:$0xff]  ;;  %vm561_vm0 = vcmask 523264   ;;  %s5236_s15 = smov 64   ;;  %v570_v28 = vlaneseq }
   0xc   : > { %5163 = vset.pattern.permute.xlu0 %v5235_v0  ;;  %5164 = vset.pattern.permute.xlu1 %v5235_v0  ;;  %v5237_v14 = vmov 1   ;;  %v5238_v23 = vmov 2   ;;  %v7731_v37 = vmov 0.0   ;;  %v4545_v62 = vld [vmem:[%s7726_s8] ss:$0 sm:$0xff]  ;;  %vm5240_vm1 = vmmov 0  }
   0xd   : > { %s7954_s22 = smov (!%p481_p3, %s4529_s22), 1  ;;  %v5420_v30 = vshrl.u32 %v570_v28, 7  ;;  %4840 = vmatprep.subr.mxu0 %v7731_v37  ;;  %4859 = vmatprep.subr.mxu1 %v7731_v37  ;;  %vm2286_vm2 = vcmask 1040384   ;;  %vm2288_vm3 = vcmask 1041408   ;;  %vm2290_vm4 = vcmask 1042432  }
   0xe   : > { %s5319_s23 = sshll.u32 %s7954_s22, 3  ;;  %s4695_s29 = sshll.u32 %s7954_s22, 7  ;;  %vm2292_vm5 = vcmask 1043456   ;;  %vm2294_vm6 = vcmask 1044480   ;;  %vm2296_vm7 = vcmask 1045504   ;;  %vm2298_vm8 = vcmask 1046528  }
   0xf   : > { %s492_s28 = scalar_lea.vmem %s7720_s2, %s5319_s23  ;;  %s5336_s14 = scalar_lea.vmem %s7722_s4, %s4695_s29  ;;  %7797 = vst [vmem:[#allocation7_spill] sm:$0xff] %v5420_v30  ;;  %v5426_v33 = vsub.s32 0, %v5420_v30 }
  0x10   : > { %v5328_v2 = vld [vmem:[%s492_s28] sm:$0xff]  ;;  %v5351_v8 = vld [vmem:[%s5336_s14 + $0x10] sm:$0xff]  ;;  %v5358_v10 = vld [vmem:[%s5336_s14 + $0x78] sm:$0xff]  ;;  %s488_s18 = scalar_lea.vmem %s7719_s1, %s5319_s23  ;;  %s505_s22 = scalar_lea.vmem %s7723_s5, %s5319_s23 }
  0x11   : > { %v5331_v3 = vmul.f32 %v4543_v1, %v5328_v2  ;;  %v5343_v6 = vld [vmem:[%s5336_s14] sm:$0xff]  ;;  %v5362_v11 = vld [vmem:[%s5336_s14 + $0x30] sm:$0xff]  ;;  %v5371_v13 = vld [vmem:[%s5336_s14 + $0x68] sm:$0xff]  ;;  %s5711_s28 = scalar_lea.vmem %s7718_s0, %s5319_s23  ;;  %s496_s16 = scalar_lea.vmem %s7721_s3, %s5319_s23 }
  0x12   : > { %v5347_v7 = vld [vmem:[%s5336_s14 + $0x40] sm:$0xff]  ;;  %v5366_v12 = vld [vmem:[%s5336_s14 + $0x70] sm:$0xff]  ;;  %7793 = vst [vmem:[#allocation3_spill] sm:$0xff] %v5371_v13  ;;  %v5379_v16 = vld [vmem:[%s5336_s14 + $0x58] sm:$0xff]  ;;  %s509_s24 = scalar_lea.vmem %s7724_s6, %s5319_s23  ;;  %s513_s27 = scalar_lea.vmem %s7730_s12, %s5319_s23 }
  0x13   : > { %v560_v4 = vmul.f32 %v5331_v3, %v5331_v3  ;;  %7792 = vst [vmem:[#allocation2_spill] sm:$0xff] %v5347_v7  ;;  %v5355_v9 = vld [vmem:[%s5336_s14 + $0x20] sm:$0xff]  ;;  %7794 = vst [vmem:[#allocation4_spill] sm:$0xff] %v5379_v16  ;;  %v5383_v17 = vld [vmem:[%s5336_s14 + $0x50] sm:$0xff] }
  0x14   : > { %v5375_v15 = vld [vmem:[%s5336_s14 + $0x60] sm:$0xff]  ;;  %7795 = vst [vmem:[#allocation5_spill] sm:$0xff] %v5383_v17  ;;  %v5387_v18 = vld [vmem:[%s5336_s14 + $0x48] sm:$0xff]  ;;  %v5395_v20 = vld [vmem:[%s5336_s14 + $0x18] sm:$0xff] }
  0x15   : > { %2327 = vrot.lane.b32.xlu0 %v560_v4, %s5236_s15  ;;  %v562_v5 = vsel %vm561_vm0, %v560_v4, 0.0  ;;  %7796 = vst [vmem:[#allocation6_spill] sm:$0xff] %v5387_v18  ;;  %v5391_v19 = vld [vmem:[%s5336_s14 + $0x8] sm:$0xff]  ;;  %v5403_v22 = vld [vmem:[%s5336_s14 + $0x38] sm:$0xff]  ;;  %v535_v56 = vld [vmem:[%s488_s18] sm:$0xff] }
  0x16   : > { %563 = vadd.xlane.f32.xlu1 %v562_v5  ;;  %v5399_v21 = vld [vmem:[%s5336_s14 + $0x28] sm:$0xff]  ;;  %v536_v57 = vmul.f32 1.442695, %v535_v56  ;;  %v5470_v59 = vld [vmem:[%s505_s22] sm:$0xff] }
  0x17   : > { %v4544_v60 = vadd.f32 -1.0, %v5470_v59 }
  0x19   : > { %591 = vperm.xlu0 %5163, %v5343_v6   ;;  %v557_v0 = vmul.f32 %v4545_v62, %v4544_v60 }
  0x1d   : > { %2358 = vperm.xlu0 %5163, %v5347_v7  }
  0x21   : > { %601 = vperm.xlu0 %5163, %v5351_v8  }
  0x25   : > { %611 = vperm.xlu0 %5163, %v5355_v9  }
  0x27   : > { %2393 = vperm.xlu1 %5164, %v5358_v10  }
  0x29   : > { %621 = vperm.xlu0 %5163, %v5362_v11  }
  0x2b   : > { %2388 = vperm.xlu1 %5164, %v5366_v12  }
  0x2d   : > { %5165 = vset.pattern.permute.xlu0 %v5237_v14 }
  0x2f   : > { %2383 = vperm.xlu1 %5164, %v5371_v13  }
  0x33   : > { %2378 = vperm.xlu1 %5164, %v5375_v15  }
  0x37   : > { %2373 = vperm.xlu1 %5164, %v5379_v16  }
  0x3b   : > { %2368 = vperm.xlu1 %5164, %v5383_v17  }
  0x3f   : > { %2363 = vperm.xlu1 %5164, %v5387_v18  }
  0x43   : > { %596 = vperm.xlu1 %5164, %v5391_v19  }
  0x47   : > { %606 = vperm.xlu1 %5164, %v5395_v20  }
  0x4b   : > { %616 = vperm.xlu1 %5164, %v5399_v21  }
  0x4f   : > { %626 = vperm.xlu1 %5164, %v5403_v22  }
  0x53   : > { %5166 = vset.pattern.permute.xlu1 %v5237_v14 }
  0x54   : > { %2647 = vperm.xlu1 %5166, %v5366_v12  }
  0x58   : > { %2639 = vperm.xlu1 %5166, %v5375_v15  }
  0x5c   : > { %2631 = vperm.xlu1 %5166, %v5383_v17  }
  0x60   : > { %2627 = vperm.xlu1 %5166, %v5387_v18  }
  0x64   : > { %5167 = vset.pattern.permute.xlu1 %v5238_v23 }
  0x65   : > { %2909 = vperm.xlu1 %5167, %v5358_v10  }
  0x69   : > { %2885 = vperm.xlu1 %5167, %v5387_v18  }
  0x6d   : > { %5168 = vset.pattern.permute.xlu1 %v5237_v14 }
  0x6e   : > { %839 = vperm.xlu1 %5168, %v5362_v11  }
  0x72   : > { %827 = vperm.xlu1 %5168, %v5395_v20  }
  0x76   : > { %823 = vperm.xlu1 %5168, %v5351_v8  }
  0x87   : > { %v2328_v24 = vpop.permute.xlu0 %2327 }
  0x88   : > { %v2330_v25 = vsel %vm561_vm0, %v2328_v24, 0.0 }
  0x89   : > { %2331 = vadd.xlane.f32.xlu0 %v2330_v25 }
  0x94   : > { %v592_v38 = vpop.permute.xlu0 %591 }
  0x98   : > { %v5437_v39 = vpop.permute.xlu0 %2358 }
  0x9c   : > { %v602_v40 = vpop.permute.xlu0 %601 }
  0x9f   : > { %2651 = vperm.xlu0 %5165, %v5358_v10   ;;  %v564_v26 = vpop.xlane.xlu1 %563 }
  0xa0   : > { %v565_v27 = vadd.f32 1e-06, %v564_v26  ;;  %v612_v41 = vpop.permute.xlu0 %611 }
  0xa2   : > { %5181 = vrsqrt.f32 %v565_v27 }
  0xa3   : > { %2643 = vperm.xlu0 %5165, %v5371_v13   ;;  %v5439_v44 = vpop.permute.xlu1 %2393 }
  0xa4   : > { %v622_v42 = vpop.permute.xlu0 %621 }
  0xa7   : > { %2635 = vperm.xlu0 %5165, %v5379_v16   ;;  %v5441_v46 = vpop.permute.xlu1 %2388 }
  0xab   : > { %v5443_v47 = vpop.permute.xlu1 %2383 }
  0xaf   : > { %v5182_v29 = vpop.eup %5181  ;;  %v5448_v50 = vpop.permute.xlu1 %2378 }
  0xb0   : > { %v567_v31 = vmul.f32 %v5182_v29, %v5331_v3 }
  0xb2   : > { %v5423_v32 = vsub.f32 0.0, %v567_v31  ;;  %v5486_v25 = vmul.f32 %v567_v31, %v5470_v59 }
  0xb3   : > { %v5455_v54 = vpop.permute.xlu1 %2373 }
  0xb4   : > { %7798 = vst [vmem:[#allocation8_spill] sm:$0xff] %v5423_v32  ;;  %v573_v34 = vrot.slane %v5423_v32, %v5426_v33  ;;  %v586_v29 = vrot.slane %v5486_v25, %v5426_v33 }
  0xb6   : > { %v574_v35 = vmul.f32 0.0, %v573_v34 }
  0xb7   : > { %v5462_v55 = vpop.permute.xlu1 %2368 }
  0xb8   : > { %v575_v36 = vsel %vm561_vm0, %v574_v35, 0.0 }
  0xbb   : > { %v5464_v58 = vpop.permute.xlu1 %2363 }
  0xbf   : > { %v597_v61 = vpop.permute.xlu1 %596 }
  0xc3   : > { %v607_v1 = vpop.permute.xlu1 %606 }
  0xc6   : > { %576 = vadd.xlane.f32.xlu0 %v575_v36 }
  0xc7   : > { %v617_v24 = vpop.permute.xlu1 %616 }
  0xcb   : > { %v627_v35 = vpop.permute.xlu1 %626 }
  0xdc   : > { %2623 = vperm.xlu0 %5165, %v5347_v7  }
  0xe0   : > { %843 = vperm.xlu0 %5165, %v5403_v22  }
  0xe4   : > { %835 = vperm.xlu0 %5165, %v5399_v21  }
  0xe8   : > { %831 = vperm.xlu0 %5165, %v5355_v9  }
 0x112   : > { %v2332_v43 = vpop.xlane.xlu0 %2331 }
 0x113   : > { %v2333_v45 = vadd.f32 1e-06, %v2332_v43 }
 0x115   : > { %5183 = vrsqrt.f32 %v2333_v45 }
 0x116   : > { %5185 = vpow2.f32 %v536_v57 }
 0x11a   : > { %v5476_v63 = vpop.permute.xlu0 %2651 }
 0x11b   : > { %7799 = vst [vmem:[#allocation9_spill] sm:$0xff] %v5476_v63 }
 0x11e   : > { %v5478_v4 = vpop.permute.xlu0 %2643 }
 0x11f   : > { %7800 = vst [vmem:[#allocation10_spill] sm:$0xff] %v5478_v4 }
 0x122   : > { %v5184_v48 = vpop.eup %5183  ;;  %v5490_v27 = vpop.permute.xlu0 %2635 }
 0x123   : > { %v5446_v49 = vmul.f32 %v5184_v48, %v5331_v3  ;;  %v558_v3 = vadd.f32 1.0, %v557_v0  ;;  %v5480_v5 = vpop.eup %5185  ;;  %7802 = vst [vmem:[#allocation12_spill] sm:$0xff] %v5490_v27 }
 0x124   : > { %v581_v26 = vrot.slane %v5480_v5, %v5426_v33 }
 0x125   : > { %v5451_v51 = vsub.f32 0.0, %v5446_v49  ;;  %v5483_v14 = vmul.f32 %v558_v3, %v5328_v2  ;;  %v5501_v2 = vsub.s32 1, %v5420_v30 }
 0x126   : > { %v5498_v34 = vmul.f32 0.0, %v581_v26 }
 0x127   : > { %v2341_v52 = vrot.slane %v5451_v51, %v5426_v33  ;;  %7801 = vst [vmem:[#allocation11_spill] sm:$0xff] %v5483_v14  ;;  %v5494_v28 = vrot.slane %v5483_v14, %v5426_v33  ;;  %v749_v0 = vrot.slane %v5423_v32, %v5501_v2 }
 0x129   : > { %v2342_v53 = vmul.f32 0.0, %v2341_v52  ;;  %v633_v43 = vmul.f32 %v5494_v28, %v592_v38  ;;  %v635_v45 = vmul.f32 %v5494_v28, %v602_v40  ;;  %v637_v48 = vmul.f32 %v5494_v28, %v612_v41 }
 0x12a   : > { %v639_v52 = vmul.f32 %v5494_v28, %v622_v42  ;;  %v634_v57 = vmul.f32 %v5494_v28, %v597_v61  ;;  %v636_v60 = vmul.f32 %v5494_v28, %v607_v1  ;;  %v638_v62 = vmul.f32 %v5494_v28, %v617_v24 }
 0x12b   : > { %2344 = vrot.lane.b32.xlu1 %v2342_v53, %s5236_s15  ;;  %v640_v53 = vmul.f32 %v5494_v28, %v627_v35 }
 0x14f   : > { %v577_v31 = vpop.xlane.xlu0 %576 }
 0x150   : > { %v587_v36 = vmul.f32 %v586_v29, %v577_v31 }
 0x152   : > { %v588_v56 = vadd.f32 %v587_v36, %v5498_v34 }
 0x154   : > { %v5514_v38 = vadd.f32 %v640_v53, %v588_v56  ;;  %v5516_v40 = vadd.f32 %v633_v43, %v588_v56  ;;  %v5518_v41 = vadd.f32 %v639_v52, %v588_v56  ;;  %v5520_v42 = vadd.f32 %v637_v48, %v588_v56 }
 0x155   : > { %v5522_v3 = vadd.f32 %v634_v57, %v588_v56  ;;  %v5524_v26 = vadd.f32 %v638_v62, %v588_v56  ;;  %v5526_v61 = vadd.f32 %v636_v60, %v588_v56  ;;  %v5528_v1 = vadd.f32 %v635_v45, %v588_v56 }
 0x156   : > { %4841 = vmatpush3.xpose.msk.msra.mxu0 %vm561_vm0, %v5514_v38  ;;  %v757_v24 = vmul.f32 %v749_v0, %v5514_v38  ;;  %v750_v29 = vmul.f32 %v749_v0, %v5516_v40  ;;  %v754_v35 = vmul.f32 %v749_v0, %v5520_v42  ;;  %v756_v31 = vmul.f32 %v749_v0, %v5518_v41 }
 0x157   : > { %4842 = vmatprep.subr.mxu0 %v7731_v37  ;;  %v751_v36 = vmul.f32 %v749_v0, %v5522_v3  ;;  %v753_v43 = vmul.f32 %v749_v0, %v5526_v61  ;;  %v752_v45 = vmul.f32 %v749_v0, %v5528_v1  ;;  %v755_v48 = vmul.f32 %v749_v0, %v5524_v26 }
 0x158   : > { %v779_v52 = vsel %vm561_vm0, %v757_v24, 0.0  ;;  %v758_v53 = vsel %vm561_vm0, %v750_v29, 0.0  ;;  %v770_v56 = vsel %vm561_vm0, %v754_v35, 0.0  ;;  %v776_v62 = vsel %vm561_vm0, %v756_v31, 0.0  ;;  %v5561_v29 = vpop.permute.xlu1 %2647 }
 0x159   : > { %780 = vadd.xlane.f32.xlu1 %v779_v52  ;;  %759 = vadd.xlane.f32.xlu0 %v758_v53  ;;  %v761_v57 = vsel %vm561_vm0, %v751_v36, 0.0  ;;  %v767_v60 = vsel %vm561_vm0, %v753_v43, 0.0  ;;  %v764_v0 = vsel %vm561_vm0, %v752_v45, 0.0  ;;  %v773_v24 = vsel %vm561_vm0, %v755_v48, 0.0  ;;  %7803 = vst [vmem:[#allocation13_spill] sm:$0xff] %v5561_v29 }
 0x15a   : > { %4843 = vmatpush3.xpose.msk.msra.mxu0 %vm561_vm0, %v5518_v41 }
 0x15b   : > { %4844 = vmatprep.subr.mxu0 %v7731_v37 }
 0x15c   : > { %v5566_v35 = vpop.permute.xlu1 %2639 }
 0x15d   : > { %771 = vadd.xlane.f32.xlu1 %v770_v56  ;;  %762 = vadd.xlane.f32.xlu0 %v761_v57  ;;  %7804 = vst [vmem:[#allocation14_spill] sm:$0xff] %v5566_v35  ;;  %v5594_v57 = vpop.permute.xlu0 %2623 }
 0x15e   : > { %4845 = vmatpush3.xpose.msk.msra.mxu0 %vm561_vm0, %v5524_v26  ;;  %7809 = vst [vmem:[#allocation19_spill] sm:$0xff] %v5594_v57 }
 0x15f   : > { %4846 = vmatprep.subr.mxu0 %v7731_v37 }
 0x160   : > { %v5573_v31 = vpop.permute.xlu1 %2631 }
 0x161   : > { %768 = vadd.xlane.f32.xlu1 %v767_v60  ;;  %777 = vadd.xlane.f32.xlu0 %v776_v62  ;;  %7805 = vst [vmem:[#allocation15_spill] sm:$0xff] %v5573_v31  ;;  %v844_v60 = vpop.permute.xlu0 %843 }
 0x162   : > { %4847 = vmatpush3.xpose.msk.msra.mxu0 %vm561_vm0, %v5520_v42 }
 0x163   : > { %4848 = vmatprep.subr.mxu0 %v7731_v37 }
 0x164   : > { %v5577_v36 = vpop.permute.xlu1 %2627 }
 0x165   : > { %765 = vadd.xlane.f32.xlu1 %v764_v0  ;;  %774 = vadd.xlane.f32.xlu0 %v773_v24  ;;  %7806 = vst [vmem:[#allocation16_spill] sm:$0xff] %v5577_v36  ;;  %v836_v62 = vpop.permute.xlu0 %835  ;;  %v5598_v24 = vrot.slane %v5480_v5, %v5501_v2 }
 0x166   : > { %4849 = vmatpush3.xpose.msk.msra.mxu0 %vm561_vm0, %v5526_v61 }
 0x167   : > { %4850 = vmatprep.subr.mxu0 %v7731_v37  ;;  %v793_v36 = vmul.f32 %v5598_v24, %v5514_v38  ;;  %v786_v57 = vmul.f32 %v5598_v24, %v5516_v40  ;;  %v790_v31 = vmul.f32 %v5598_v24, %v5520_v42 }
 0x168   : > { %v5582_v43 = vpop.permute.xlu1 %2909 }
 0x169   : > { %7807 = vst [vmem:[#allocation17_spill] sm:$0xff] %v5582_v43  ;;  %v832_v0 = vpop.permute.xlu0 %831  ;;  %v5607_v43 = vsub.s32 2, %v5420_v30 }
 0x16a   : > { %4851 = vmatpush3.xpose.msk.msra.mxu0 %vm561_vm0, %v5528_v1 }
 0x16b   : > { %4852 = vmatprep.subr.mxu0 %v7731_v37 }
 0x16c   : > { %v5587_v45 = vpop.permute.xlu1 %2885 }
 0x16d   : > { %7808 = vst [vmem:[#allocation18_spill] sm:$0xff] %v5587_v45  ;;  %v5604_v45 = vrot.slane %v5483_v14, %v5501_v2 }
 0x16e   : > { %4853 = vmatpush3.xpose.msk.msra.mxu0 %vm561_vm0, %v5522_v3 }
 0x16f   : > { %4854 = vmatprep.subr.mxu0 %v7731_v37  ;;  %v857_v4 = vmul.f32 %v5604_v45, %v844_v60 }
 0x170   : > { %v840_v48 = vpop.permute.xlu1 %839 }
 0x172   : > { %4855 = vmatpush3.xpose.msk.msra.mxu0 %vm561_vm0, %v5516_v40 }
 0x173   : > { %4878 = vmatprep.subr.mxu0 %v7731_v37  ;;  %v797_v37 = vrot.slane %v5486_v25, %v5501_v2 }
 0x174   : > { %v828_v52 = vpop.permute.xlu1 %827 }
 0x176   : > { %819 = vperm.xlu1 %5168, %v5391_v19  }
 0x178   : > { %v824_v53 = vpop.permute.xlu1 %823 }
 0x17a   : > { %5170 = vset.pattern.permute.xlu1 %v5238_v23 }
 0x17b   : > { %1056 = vperm.xlu1 %5170, %v5362_v11   ;;  %815 = vperm.xlu0 %5165, %v5343_v6  }
 0x17f   : > { %5169 = vset.pattern.permute.xlu0 %v5238_v23 }
 0x180   : > { %2905 = vperm.xlu0 %5169, %v5366_v12  }
 0x184   : > { %2901 = vperm.xlu0 %5169, %v5371_v13  }
 0x188   : > { %2897 = vperm.xlu0 %5169, %v5375_v15  }
 0x18c   : > { %2893 = vperm.xlu0 %5169, %v5379_v16  }
 0x190   : > { %2889 = vperm.xlu0 %5169, %v5383_v17   ;;  %v5620_v17 = vrot.slane %v5423_v32, %v5607_v43 }
 0x194   : > { %2881 = vperm.xlu0 %5169, %v5347_v7  }
 0x19d   : > { %v2345_v56 = vpop.permute.xlu1 %2344 }
 0x19e   : > { %v2347_v23 = vsel %vm561_vm0, %v2345_v56, 0.0 }
 0x19f   : > { %2348 = vadd.xlane.f32.xlu1 %v2347_v23 }
 0x1e2   : > { %v781_v56 = vpop.xlane.xlu1 %780  ;;  %v760_v23 = vpop.xlane.xlu0 %759 }
 0x1e3   : > { %v805_v27 = vmul.f32 %v797_v37, %v781_v56  ;;  %v798_v35 = vmul.f32 %v797_v37, %v760_v23  ;;  %v787_v56 = vmul.f32 %v5598_v24, %v5522_v3  ;;  %v792_v3 = vmul.f32 %v5598_v24, %v5518_v41 }
 0x1e4   : > { %v788_v41 = vmul.f32 %v5598_v24, %v5528_v1 }
 0x1e5   : > { %v813_v29 = vadd.f32 %v805_v27, %v793_v36  ;;  %v5614_v63 = vadd.f32 %v798_v35, %v786_v57  ;;  %v854_v27 = vmul.f32 %v5604_v45, %v832_v0  ;;  %v789_v57 = vmul.f32 %v5598_v24, %v5526_v61 }
 0x1e6   : > { %v772_v7 = vpop.xlane.xlu1 %771  ;;  %v763_v18 = vpop.xlane.xlu0 %762 }
 0x1e7   : > { %v802_v38 = vmul.f32 %v797_v37, %v772_v7  ;;  %v799_v40 = vmul.f32 %v797_v37, %v763_v18  ;;  %v5624_v23 = vadd.f32 %v857_v4, %v813_v29  ;;  %v7810_v4 = vmov 0.0  }
 0x1e8   : > { %4856 = vmatprep.mubr.msk.f32.mxu0 %vm5240_vm1, %v7810_v4  ;;  %4875 = vmatprep.mubr.msk.f32.mxu1 %vm5240_vm1, %v7810_v4 }
 0x1e9   : > { %v810_v35 = vadd.f32 %v802_v38, %v790_v31  ;;  %v807_v36 = vadd.f32 %v799_v40, %v787_v56  ;;  %4860 = vmatpush3.xpose.msk.msra.mxu1 %vm561_vm0, %v5624_v23  ;;  %v974_v42 = vmul.f32 %v5620_v17, %v5624_v23  ;;  %v856_v38 = vmul.f32 %v5604_v45, %v840_v48 }
 0x1ea   : > { %v769_v7 = vpop.xlane.xlu1 %768  ;;  %v778_v18 = vpop.xlane.xlu0 %777  ;;  %4861 = vmatprep.subr.mxu1 %v7810_v4  ;;  %v853_v56 = vmul.f32 %v5604_v45, %v828_v52  ;;  %v855_v52 = vmul.f32 %v5604_v45, %v836_v62 }
 0x1eb   : > { %v5636_v29 = vadd.f32 %v854_v27, %v810_v35  ;;  %v801_v31 = vmul.f32 %v797_v37, %v769_v7  ;;  %v804_v60 = vmul.f32 %v797_v37, %v778_v18  ;;  %v996_v0 = vsel %vm561_vm0, %v974_v42, 0.0 }
 0x1ec   : > { %997 = vadd.xlane.f32.xlu1 %v996_v0  ;;  %v791_v27 = vmul.f32 %v5598_v24, %v5524_v26 }
 0x1ed   : > { %v809_v40 = vadd.f32 %v801_v31, %v789_v57  ;;  %v812_v61 = vadd.f32 %v804_v60, %v792_v3  ;;  %v971_v16 = vmul.f32 %v5620_v17, %v5636_v29  ;;  %v852_v57 = vmul.f32 %v5604_v45, %v824_v53 }
 0x1ee   : > { %v766_v13 = vpop.xlane.xlu1 %765  ;;  %v775_v35 = vpop.xlane.xlu0 %774 }
 0x1ef   : > { %v5647_v7 = vadd.f32 %v853_v56, %v809_v40  ;;  %v5649_v42 = vadd.f32 %v856_v38, %v812_v61  ;;  %v800_v48 = vmul.f32 %v797_v37, %v766_v13  ;;  %v803_v18 = vmul.f32 %v797_v37, %v775_v35 }
 0x1f0   : > { %v987_v3 = vsel %vm561_vm0, %v971_v16, 0.0 }
 0x1f1   : > { %v808_v31 = vadd.f32 %v800_v48, %v788_v41  ;;  %v811_v60 = vadd.f32 %v803_v18, %v791_v27  ;;  %988 = vadd.xlane.f32.xlu1 %v987_v3  ;;  %4862 = vmatpush3.xpose.msk.msra.mxu1 %vm561_vm0, %v5649_v42  ;;  %v973_v26 = vmul.f32 %v5620_v17, %v5649_v42 }
 0x1f2   : > { %v820_v1 = vpop.permute.xlu1 %819  ;;  %4863 = vmatprep.subr.mxu1 %v7810_v4  ;;  %v970_v13 = vmul.f32 %v5620_v17, %v5647_v7 }
 0x1f3   : > { %v5661_v37 = vadd.f32 %v852_v57, %v808_v31  ;;  %v5663_v53 = vadd.f32 %v855_v52, %v811_v60  ;;  %v851_v16 = vmul.f32 %v5604_v45, %v820_v1  ;;  %v993_v62 = vsel %vm561_vm0, %v973_v26, 0.0 }
 0x1f4   : > { %994 = vadd.xlane.f32.xlu0 %v993_v62  ;;  %v984_v35 = vsel %vm561_vm0, %v970_v13, 0.0  ;;  %v2396_v26 = vmul.f32 %v5437_v39, %v5494_v28  ;;  %v2403_v1 = vmul.f32 %v5439_v44, %v5494_v28  ;;  %v2397_v13 = vmul.f32 %v5464_v58, %v5494_v28 }
 0x1f5   : > { %v5667_v0 = vadd.f32 %v851_v16, %v807_v36  ;;  %4864 = vmatpush3.xpose.msk.msra.mxu1 %vm561_vm0, %v5663_v53  ;;  %v972_v38 = vmul.f32 %v5620_v17, %v5663_v53  ;;  %v969_v56 = vmul.f32 %v5620_v17, %v5661_v37  ;;  %v2400_v39 = vmul.f32 %v5448_v50, %v5494_v28 }
 0x1f6   : > { %v816_v40 = vpop.permute.xlu0 %815  ;;  %4865 = vmatprep.subr.mxu1 %v7810_v4  ;;  %v5728_v18 = vpop.permute.xlu1 %1056  ;;  %v2399_v44 = vmul.f32 %v5455_v54, %v5494_v28  ;;  %v2529_v62 = vrot.slane %v5451_v51, %v5501_v2 }
 0x1f7   : > { %v850_v61 = vmul.f32 %v5604_v45, %v816_v40  ;;  %v990_v41 = vsel %vm561_vm0, %v972_v38, 0.0  ;;  %v968_v36 = vmul.f32 %v5620_v17, %v5667_v0  ;;  %v981_v52 = vsel %vm561_vm0, %v969_v56, 0.0 }
 0x1f8   : > { %991 = vadd.xlane.f32.xlu0 %v990_v41 }
 0x1f9   : > { %v5681_v27 = vadd.f32 %v850_v61, %v5614_v63  ;;  %4866 = vmatpush3.xpose.msk.msra.mxu1 %vm561_vm0, %v5636_v29  ;;  %v5726_v63 = vmul.f32 %v5446_v49, %v5470_v59  ;;  %v978_v60 = vsel %vm561_vm0, %v968_v36, 0.0  ;;  %v2402_v49 = vmul.f32 %v5441_v46, %v5494_v28 }
 0x1fa   : > { %4867 = vmatprep.subr.mxu1 %v7810_v4  ;;  %v2401_v59 = vmul.f32 %v5443_v47, %v5494_v28 }
 0x1fb   : > { %v967_v48 = vmul.f32 %v5620_v17, %v5681_v27  ;;  %v5714_v17 = vld [vmem:[%s5711_s28] sm:$0xff]  ;;  %v2353_v57 = vrot.slane %v5726_v63, %v5426_v33  ;;  %v2398_v33 = vmul.f32 %v5462_v55, %v5494_v28 }
 0x1fc   : > { %985 = vadd.xlane.f32.xlu0 %v984_v35  ;;  %7811 = vst [vmem:[#allocation20_spill] sm:$0xff] %v5714_v17  ;;  %4857 = vmatmul.mubr.msk.f32.vlgmr.msra.gmra.mxu0 %vm561_vm0, %v5714_v17 }
 0x1fd   : > { %4868 = vmatpush3.xpose.msk.msra.mxu1 %vm561_vm0, %v5647_v7  ;;  %4894 = vmatprep.mubr.msk.f32.mxu0 %vm5240_vm1, %v7810_v4  ;;  %v975_v46 = vsel %vm561_vm0, %v967_v48, 0.0 }
 0x1fe   : > { %4869 = vmatprep.subr.mxu1 %v7810_v4 }
 0x201   : > { %4870 = vmatpush3.xpose.msk.msra.mxu1 %vm561_vm0, %v5661_v37 }
 0x202   : > { %1052 = vperm.xlu1 %5170, %v5399_v21   ;;  %4871 = vmatprep.subr.mxu1 %v7810_v4 }
 0x205   : > { %4872 = vmatpush3.xpose.msk.msra.mxu1 %vm561_vm0, %v5667_v0 }
 0x206   : > { %4873 = vmatprep.subr.mxu1 %v7810_v4 }
 0x209   : > { %4874 = vmatpush3.xpose.msk.msra.mxu1 %vm561_vm0, %v5681_v27 }
 0x20a   : > { %4897 = vmatprep.subr.mxu1 %v7810_v4 }
 0x212   : > { %1060 = vperm.xlu0 %5169, %v5403_v22  }
 0x216   : > { %1048 = vperm.xlu0 %5169, %v5355_v9  }
 0x21a   : > { %1044 = vperm.xlu0 %5169, %v5395_v20  }
 0x21e   : > { %1040 = vperm.xlu0 %5169, %v5351_v8  }
 0x222   : > { %1032 = vperm.xlu0 %5169, %v5343_v6  }
 0x226   : > { %982 = vadd.xlane.f32.xlu1 %v981_v52 }
 0x228   : > { %v2349_v3 = vpop.xlane.xlu1 %2348 }
 0x229   : > { %v2354_v31 = vmul.f32 %v2353_v57, %v2349_v3  ;;  %v5241_v57 = vmov 3   ;;  %v5787_v3 = vpop.permute.xlu0 %2905 }
 0x22a   : > { %979 = vadd.xlane.f32.xlu1 %v978_v60  ;;  %5171 = vset.pattern.permute.xlu0 %v5241_v57 }
 0x22b   : > { %v2355_v16 = vadd.f32 %v2354_v31, %v5498_v34 }
 0x22d   : > { %v5754_v47 = vadd.f32 %v2402_v49, %v2355_v16  ;;  %v5756_v38 = vadd.f32 %v2401_v59, %v2355_v16  ;;  %v5758_v55 = vadd.f32 %v2398_v33, %v2355_v16  ;;  %v5760_v58 = vadd.f32 %v2397_v13, %v2355_v16  ;;  %v5789_v31 = vpop.permute.xlu0 %2901 }
 0x22e   : > { %976 = vadd.xlane.f32.xlu1 %v975_v46  ;;  %v5762_v34 = vadd.f32 %v2403_v1, %v2355_v16  ;;  %v5764_v50 = vadd.f32 %v2400_v39, %v2355_v16  ;;  %v5766_v56 = vadd.f32 %v2399_v44, %v2355_v16  ;;  %v5768_v54 = vadd.f32 %v2396_v26, %v2355_v16 }
 0x22f   : > { %7812 = vst [vmem:[#allocation21_spill] sm:$0xff] %v5754_v47  ;;  %7813 = vst [vmem:[#allocation22_spill] sm:$0xff] %v5756_v38  ;;  %v2536_v28 = vmul.f32 %v2529_v62, %v5754_v47  ;;  %v2535_v40 = vmul.f32 %v2529_v62, %v5756_v38  ;;  %v2532_v61 = vmul.f32 %v2529_v62, %v5758_v55 }
 0x230   : > { %7814 = vst [vmem:[#allocation23_spill] sm:$0xff] %v5758_v55  ;;  %7815 = vst [vmem:[#allocation24_spill] sm:$0xff] %v5760_v58  ;;  %v2531_v41 = vmul.f32 %v2529_v62, %v5760_v58  ;;  %v2537_v36 = vmul.f32 %v2529_v62, %v5762_v34  ;;  %v2534_v35 = vmul.f32 %v2529_v62, %v5764_v50 }
 0x231   : > { %7816 = vst [vmem:[#allocation25_spill] sm:$0xff] %v5762_v34  ;;  %7817 = vst [vmem:[#allocation26_spill] sm:$0xff] %v5764_v50  ;;  %2558 = vrot.lane.b32.xlu0 %v2536_v28, %s5236_s15  ;;  %v2533_v48 = vmul.f32 %v2529_v62, %v5766_v56  ;;  %v2530_v52 = vmul.f32 %v2529_v62, %v5768_v54  ;;  %v5791_v60 = vpop.permute.xlu0 %2897  ;;  %v5797_v1 = vrot.slane %v5480_v5, %v5607_v43 }
 0x232   : > { %7818 = vst [vmem:[#allocation27_spill] sm:$0xff] %v5766_v56  ;;  %7819 = vst [vmem:[#allocation28_spill] sm:$0xff] %v5768_v54  ;;  %v5803_v59 = vrot.slane %v5486_v25, %v5607_v43 }
 0x233   : > { %v1010_v13 = vmul.f32 %v5797_v1, %v5624_v23  ;;  %v1007_v62 = vmul.f32 %v5797_v1, %v5636_v29  ;;  %v1009_v23 = vmul.f32 %v5797_v1, %v5649_v42 }
 0x235   : > { %2556 = vrot.lane.b32.xlu0 %v2535_v40, %s5236_s15  ;;  %v5793_v26 = vpop.permute.xlu0 %2893 }
 0x236   : > { %7820 = vst [vmem:[#allocation29_spill] sm:$0xff] %v5793_v26 }
 0x239   : > { %2550 = vrot.lane.b32.xlu0 %v2532_v61, %s5236_s15  ;;  %v5799_v49 = vpop.permute.xlu0 %2889 }
 0x23a   : > { %7821 = vst [vmem:[#allocation30_spill] sm:$0xff] %v5799_v49 }
 0x23d   : > { %2548 = vrot.lane.b32.xlu0 %v2531_v41, %s5236_s15  ;;  %v5808_v44 = vpop.permute.xlu0 %2881  ;;  %v5815_v41 = vrot.slane %v5483_v14, %v5607_v43 }
 0x23e   : > { %7822 = vst [vmem:[#allocation31_spill] sm:$0xff] %v5808_v44 }
 0x23f   : > { %1036 = vperm.xlu1 %5170, %v5391_v19  }
 0x243   : > { %2560 = vrot.lane.b32.xlu1 %v2537_v36, %s5236_s15  ;;  %v5818_v36 = vsub.s32 3, %v5420_v30 }
 0x244   : > { %5172 = vset.pattern.permute.xlu1 %v5241_v57 }
 0x247   : > { %2554 = vrot.lane.b32.xlu1 %v2534_v35, %s5236_s15 }
 0x24b   : > { %2552 = vrot.lane.b32.xlu1 %v2533_v48, %s5236_s15  ;;  %v1073_v48 = vmul.f32 %v5815_v41, %v5728_v18 }
 0x24f   : > { %2546 = vrot.lane.b32.xlu1 %v2530_v52, %s5236_s15 }
 0x275   : > { %v998_v33 = vpop.xlane.xlu1 %997 }
 0x276   : > { %v1022_v16 = vmul.f32 %v5803_v59, %v998_v33 }
 0x278   : > { %v1030_v39 = vadd.f32 %v1022_v16, %v1010_v13  ;;  %v1008_v13 = vmul.f32 %v5797_v1, %v5663_v53 }
 0x27a   : > { %v989_v46 = vpop.xlane.xlu1 %988 }
 0x27b   : > { %v1019_v28 = vmul.f32 %v5803_v59, %v989_v46  ;;  %v5832_v46 = vrot.slane %v5423_v32, %v5818_v36 }
 0x27d   : > { %v1027_v40 = vadd.f32 %v1019_v28, %v1007_v62  ;;  %v995_v61 = vpop.xlane.xlu0 %994 }
 0x27e   : > { %v1021_v35 = vmul.f32 %v5803_v59, %v995_v61  ;;  %v1053_v52 = vpop.permute.xlu1 %1052 }
 0x27f   : > { %v1072_v42 = vmul.f32 %v5815_v41, %v1053_v52 }
 0x280   : > { %v1029_v29 = vadd.f32 %v1021_v35, %v1009_v23  ;;  %v1006_v23 = vmul.f32 %v5797_v1, %v5647_v7 }
 0x281   : > { %v992_v57 = vpop.xlane.xlu0 %991 }
 0x282   : > { %v5825_v33 = vadd.f32 %v1073_v48, %v1029_v29  ;;  %v1020_v16 = vmul.f32 %v5803_v59, %v992_v57 }
 0x284   : > { %v1028_v62 = vadd.f32 %v1020_v16, %v1008_v13  ;;  %v1190_v18 = vmul.f32 %v5832_v46, %v5825_v33 }
 0x285   : > { %v986_v28 = vpop.xlane.xlu0 %985 }
 0x286   : > { %v5837_v61 = vadd.f32 %v1072_v42, %v1028_v62  ;;  %v1018_v53 = vmul.f32 %v5803_v59, %v986_v28 }
 0x288   : > { %v1026_v35 = vadd.f32 %v1018_v53, %v1006_v23  ;;  %v1189_v48 = vmul.f32 %v5832_v46, %v5837_v61 }
 0x28d   : > { %v1061_v29 = vpop.permute.xlu0 %1060 }
 0x28e   : > { %v1074_v57 = vmul.f32 %v5815_v41, %v1061_v29  ;;  %v1210_v29 = vsel %vm561_vm0, %v1190_v18, 0.0 }
 0x290   : > { %v5845_v52 = vadd.f32 %v1074_v57, %v1030_v39 }
 0x291   : > { %v1049_v13 = vpop.permute.xlu0 %1048 }
 0x292   : > { %v1071_v16 = vmul.f32 %v5815_v41, %v1049_v13  ;;  %4879 = vmatpush3.xpose.msk.msra.mxu0 %vm561_vm0, %v5845_v52  ;;  %v1191_v7 = vmul.f32 %v5832_v46, %v5845_v52 }
 0x293   : > { %4880 = vmatprep.subr.mxu0 %v7810_v4 }
 0x294   : > { %v5853_v42 = vadd.f32 %v1071_v16, %v1027_v40  ;;  %v1213_v62 = vsel %vm561_vm0, %v1191_v7, 0.0  ;;  %v1207_v16 = vsel %vm561_vm0, %v1189_v48, 0.0 }
 0x295   : > { %1214 = vadd.xlane.f32.xlu0 %v1213_v62  ;;  %v1045_v28 = vpop.permute.xlu0 %1044 }
 0x296   : > { %v1070_v39 = vmul.f32 %v5815_v41, %v1045_v28  ;;  %4881 = vmatpush3.xpose.msk.msra.mxu0 %vm561_vm0, %v5825_v33  ;;  %v1188_v23 = vmul.f32 %v5832_v46, %v5853_v42 }
 0x297   : > { %4882 = vmatprep.subr.mxu0 %v7810_v4 }
 0x298   : > { %v5862_v53 = vadd.f32 %v1070_v39, %v1026_v35  ;;  %v1204_v40 = vsel %vm561_vm0, %v1188_v23, 0.0  ;;  %v1005_v23 = vmul.f32 %v5797_v1, %v5661_v37 }
 0x299   : > { %1211 = vadd.xlane.f32.xlu0 %v1210_v29  ;;  %1205 = vadd.xlane.f32.xlu1 %v1204_v40  ;;  %v1041_v57 = vpop.permute.xlu0 %1040 }
 0x29a   : > { %4883 = vmatpush3.xpose.msk.msra.mxu0 %vm561_vm0, %v5837_v61  ;;  %v1187_v13 = vmul.f32 %v5832_v46, %v5862_v53  ;;  %v1069_v40 = vmul.f32 %v5815_v41, %v1041_v57  ;;  %v1003_v57 = vmul.f32 %v5797_v1, %v5681_v27 }
 0x29b   : > { %4884 = vmatprep.subr.mxu0 %v7810_v4 }
 0x29d   : > { %1208 = vadd.xlane.f32.xlu0 %v1207_v16  ;;  %v1033_v18 = vpop.permute.xlu0 %1032 }
 0x29e   : > { %4885 = vmatpush3.xpose.msk.msra.mxu0 %vm561_vm0, %v5853_v42 }
 0x29f   : > { %4886 = vmatprep.subr.mxu0 %v7810_v4 }
 0x2a2   : > { %4887 = vmatpush3.xpose.msk.msra.mxu0 %vm561_vm0, %v5862_v53 }
 0x2a3   : > { %v2559_v35 = vpop.permute.xlu0 %2558  ;;  %4888 = vmatprep.subr.mxu0 %v7810_v4 }
 0x2a4   : > { %v2588_v7 = vsel %vm561_vm0, %v2559_v35, 0.0  ;;  %v1004_v35 = vmul.f32 %v5797_v1, %v5667_v0 }
 0x2a5   : > { %2589 = vadd.xlane.f32.xlu0 %v2588_v7 }
 0x2a7   : > { %v2557_v62 = vpop.permute.xlu0 %2556 }
 0x2ab   : > { %v2551_v28 = vpop.permute.xlu0 %2550 }
 0x2ac   : > { %v2576_v48 = vsel %vm561_vm0, %v2551_v28, 0.0 }
 0x2ad   : > { %2577 = vadd.xlane.f32.xlu0 %v2576_v48 }
 0x2af   : > { %v983_v39 = vpop.xlane.xlu1 %982 }
 0x2b0   : > { %v1017_v29 = vmul.f32 %v5803_v59, %v983_v39  ;;  %v1067_v39 = vmul.f32 %v5815_v41, %v1033_v18 }
 0x2b2   : > { %v1025_v16 = vadd.f32 %v1017_v29, %v1005_v23 }
 0x2b3   : > { %v980_v44 = vpop.xlane.xlu1 %979 }
 0x2b4   : > { %v5884_v49 = vadd.f32 %v1069_v40, %v1025_v16  ;;  %v1016_v7 = vmul.f32 %v5803_v59, %v980_v44 }
 0x2b6   : > { %v1024_v26 = vadd.f32 %v1016_v7, %v1004_v35  ;;  %4889 = vmatpush3.xpose.msk.msra.mxu0 %vm561_vm0, %v5884_v49  ;;  %v1186_v37 = vmul.f32 %v5832_v46, %v5884_v49 }
 0x2b7   : > { %v977_v28 = vpop.xlane.xlu1 %976  ;;  %4890 = vmatprep.subr.mxu0 %v7810_v4 }
 0x2b8   : > { %v1015_v48 = vmul.f32 %v5803_v59, %v977_v28 }
 0x2ba   : > { %v1023_v0 = vadd.f32 %v1015_v48, %v1003_v57 }
 0x2bb   : > { %v1037_v23 = vpop.permute.xlu1 %1036 }
 0x2bc   : > { %v5898_v44 = vadd.f32 %v1067_v39, %v1023_v0  ;;  %v1068_v29 = vmul.f32 %v5815_v41, %v1037_v23  ;;  %v2549_v39 = vpop.permute.xlu0 %2548  ;;  %v1201_v0 = vsel %vm561_vm0, %v1187_v13, 0.0  ;;  %v7823_v13 = vld [vmem:[#allocation3_spill] sm:$0xff] }
 0x2bd   : > { %v2573_v23 = vsel %vm561_vm0, %v2549_v39, 0.0  ;;  %v2605_v39 = vrot.slane %v5726_v63, %v5501_v2 }
 0x2be   : > { %v5901_v40 = vadd.f32 %v1068_v29, %v1024_v26  ;;  %v1184_v16 = vmul.f32 %v5832_v46, %v5898_v44  ;;  %v2585_v26 = vsel %vm561_vm0, %v2557_v62, 0.0  ;;  %v1198_v62 = vsel %vm561_vm0, %v1186_v37, 0.0 }
 0x2bf   : > { %v2561_v35 = vpop.permute.xlu1 %2560  ;;  %v5951_v37 = vrot.slane %v5486_v25, %v5818_v36 }
 0x2c0   : > { %4891 = vmatpush3.xpose.msk.msra.mxu0 %vm561_vm0, %v5901_v40  ;;  %v2591_v27 = vsel %vm561_vm0, %v2561_v35, 0.0  ;;  %v1185_v59 = vmul.f32 %v5832_v46, %v5901_v40  ;;  %v7738_v35 = vrot.slane %v5714_v17, 1 }
 0x2c1   : > { %2592 = vadd.xlane.f32.xlu1 %v2591_v27  ;;  %4892 = vmatprep.subr.mxu0 %v7810_v4 }
 0x2c2   : > { %v1195_v29 = vsel %vm561_vm0, %v1185_v59, 0.0  ;;  %4876 = vmatmul.mubr.msk.f32.vlgmr.msra.gmra.mxu1 %vm561_vm0, %v7738_v35 }
 0x2c3   : > { %v2555_v18 = vpop.permute.xlu1 %2554  ;;  %4913 = vmatprep.mubr.msk.f32.mxu1 %vm5240_vm1, %v7810_v4 }
 0x2c4   : > { %4893 = vmatpush3.xpose.msk.msra.mxu0 %vm561_vm0, %v5898_v44  ;;  %v2582_v28 = vsel %vm561_vm0, %v2555_v18, 0.0 }
 0x2c5   : > { %2586 = vadd.xlane.f32.xlu1 %v2585_v26  ;;  %4916 = vmatprep.subr.mxu0 %v7810_v4 }
 0x2c7   : > { %v2553_v7 = vpop.permute.xlu1 %2552 }
 0x2c8   : > { %v2579_v48 = vsel %vm561_vm0, %v2553_v7, 0.0 }
 0x2c9   : > { %2583 = vadd.xlane.f32.xlu1 %v2582_v28 }
 0x2cb   : > { %v2547_v57 = vpop.permute.xlu1 %2546 }
 0x2cc   : > { %v2570_v46 = vsel %vm561_vm0, %v2547_v57, 0.0 }
 0x2cd   : > { %2580 = vadd.xlane.f32.xlu1 %v2579_v48  ;;  %2571 = vadd.xlane.f32.xlu0 %v2570_v46 }
 0x2d1   : > { %1202 = vadd.xlane.f32.xlu0 %v1201_v0  ;;  %2574 = vadd.xlane.f32.xlu1 %v2573_v23 }
 0x2d5   : > { %1199 = vadd.xlane.f32.xlu1 %v1198_v62  ;;  %v7828_v62 = vld [vmem:[#allocation15_spill] sm:$0xff] }
 0x2d9   : > { %1196 = vadd.xlane.f32.xlu1 %v1195_v29  ;;  %v2656_v29 = vmul.f32 %v7828_v62, %v5604_v45 }
 0x2e7   : > { %3155 = vperm.xlu0 %5171, %v5375_v15   ;;  %v7825_v15 = vld [vmem:[#allocation5_spill] sm:$0xff] }
 0x2ea   : > { %3167 = vperm.xlu1 %5172, %v5358_v10   ;;  %v7824_v10 = vld [vmem:[#allocation4_spill] sm:$0xff] }
 0x2eb   : > { %1277 = vperm.xlu0 %5171, %v5403_v22   ;;  %v7826_v22 = vld [vmem:[#allocation6_spill] sm:$0xff] }
 0x2ee   : > { %3163 = vperm.xlu1 %5172, %v5366_v12   ;;  %v7827_v12 = vld [vmem:[#allocation2_spill] sm:$0xff] }
 0x2ef   : > { %1273 = vperm.xlu0 %5171, %v5362_v11   ;;  %v1192_v11 = vsel %vm561_vm0, %v1184_v16, 0.0 }
 0x2f2   : > { %3159 = vperm.xlu1 %5172, %v7823_v13  }
 0x2f3   : > { %1265 = vperm.xlu0 %5171, %v5355_v9   ;;  %v5947_v9 = vrot.slane %v5480_v5, %v5818_v36 }
 0x2f5   : > { %v1226_v18 = vmul.f32 %v5947_v9, %v5825_v33  ;;  %v1225_v57 = vmul.f32 %v5947_v9, %v5837_v61  ;;  %v2596_v33 = vmul.f32 %v5758_v55, %v5598_v24  ;;  %v5983_v61 = vrot.slane %v5451_v51, %v5607_v43 }
 0x2f6   : > { %3151 = vperm.xlu1 %5172, %v7824_v10  }
 0x2fa   : > { %3147 = vperm.xlu1 %5172, %v7825_v15  }
 0x2fe   : > { %3143 = vperm.xlu1 %5172, %v7826_v22  }
 0x302   : > { %3139 = vperm.xlu1 %5172, %v7827_v12   ;;  %v2600_v12 = vmul.f32 %v5754_v47, %v5598_v24 }
 0x306   : > { %1269 = vperm.xlu1 %5172, %v5399_v21  }
 0x30a   : > { %1261 = vperm.xlu1 %5172, %v5395_v20   ;;  %v1227_v20 = vmul.f32 %v5947_v9, %v5845_v52 }
 0x30e   : > { %1257 = vperm.xlu1 %5172, %v5351_v8  }
 0x312   : > { %1193 = vadd.xlane.f32.xlu0 %v1192_v11  ;;  %1253 = vperm.xlu1 %5172, %v5391_v19   ;;  %v2601_v11 = vmul.f32 %v5762_v34, %v5598_v24  ;;  %v7852_v34 = vld [vmem:[#allocation17_spill] sm:$0xff] }
 0x316   : > { %1249 = vperm.xlu1 %5172, %v5343_v6   ;;  %v1224_v6 = vmul.f32 %v5947_v9, %v5853_v42 }
 0x31e   : > { %v1215_v21 = vpop.xlane.xlu0 %1214 }
 0x31f   : > { %v1239_v8 = vmul.f32 %v5951_v37, %v1215_v21 }
 0x321   : > { %v5956_v16 = vadd.f32 %v1239_v8, %v1227_v20  ;;  %v7830_v20 = vld [vmem:[#allocation9_spill] sm:$0xff] }
 0x322   : > { %v1206_v27 = vpop.xlane.xlu1 %1205  ;;  %v1212_v19 = vpop.xlane.xlu0 %1211  ;;  %v2661_v8 = vmul.f32 %v7830_v20, %v5604_v45 }
 0x323   : > { %v1236_v59 = vmul.f32 %v5951_v37, %v1206_v27  ;;  %v1238_v26 = vmul.f32 %v5951_v37, %v1212_v19 }
 0x325   : > { %v5964_v7 = vadd.f32 %v1236_v59, %v1224_v6  ;;  %v5966_v28 = vadd.f32 %v1238_v26, %v1226_v18  ;;  %v7831_v59 = vld [vmem:[#allocation13_spill] sm:$0xff] }
 0x326   : > { %v1209_v52 = vpop.xlane.xlu0 %1208  ;;  %v2660_v18 = vmul.f32 %v7831_v59, %v5604_v45 }
 0x327   : > { %v1237_v48 = vmul.f32 %v5951_v37, %v1209_v52  ;;  %v2599_v52 = vmul.f32 %v5756_v38, %v5598_v24 }
 0x329   : > { %v5971_v46 = vadd.f32 %v1237_v48, %v1225_v57 }
 0x32e   : > { %v2590_v42 = vpop.xlane.xlu0 %2589 }
 0x32f   : > { %v2612_v2 = vmul.f32 %v2605_v39, %v2590_v42 }
 0x331   : > { %v2620_v27 = vadd.f32 %v2612_v2, %v2600_v12  ;;  %v7836_v12 = vld [vmem:[#allocation14_spill] sm:$0xff] }
 0x333   : > { %v6000_v48 = vadd.f32 %v2660_v18, %v2620_v27  ;;  %v7838_v18 = vld [vmem:[#allocation19_spill] sm:$0xff] }
 0x335   : > { %7833 = vst [vmem:[#allocation5_spill] sm:$0xff] %v6000_v48 }
 0x336   : > { %v2578_v0 = vpop.xlane.xlu0 %2577 }
 0x337   : > { %v2608_v23 = vmul.f32 %v2605_v39, %v2578_v0 }
 0x339   : > { %v2616_v13 = vadd.f32 %v2608_v23, %v2596_v33  ;;  %v7834_v23 = vld [vmem:[#allocation10_spill] sm:$0xff] }
 0x33a   : > { %v2659_v62 = vmul.f32 %v7834_v23, %v5604_v45 }
 0x33b   : > { %v5979_v10 = vadd.f32 %v2656_v29, %v2616_v13  ;;  %v2598_v29 = vmul.f32 %v5764_v50, %v5598_v24 }
 0x33d   : > { %7829 = vst [vmem:[#allocation3_spill] sm:$0xff] %v5979_v10  ;;  %v2790_v15 = vmul.f32 %v5983_v61, %v5979_v10 }
 0x33f   : > { %2808 = vrot.lane.b32.xlu0 %v2790_v15, %s5236_s15 }
 0x34a   : > { %v2593_v22 = vpop.xlane.xlu1 %2592 }
 0x34b   : > { %v2613_v21 = vmul.f32 %v2605_v39, %v2593_v22  ;;  %v2794_v22 = vmul.f32 %v5983_v61, %v6000_v48 }
 0x34d   : > { %v2621_v19 = vadd.f32 %v2613_v21, %v2601_v11  ;;  %v2658_v11 = vmul.f32 %v7836_v12, %v5604_v45 }
 0x34e   : > { %v2587_v6 = vpop.xlane.xlu1 %2586 }
 0x34f   : > { %v5996_v26 = vadd.f32 %v2661_v8, %v2621_v19  ;;  %v2611_v57 = vmul.f32 %v2605_v39, %v2587_v6  ;;  %v2597_v8 = vmul.f32 %v5766_v56, %v5598_v24  ;;  %v2594_v19 = vmul.f32 %v5768_v54, %v5598_v24 }
 0x351   : > { %7832 = vst [vmem:[#allocation4_spill] sm:$0xff] %v5996_v26  ;;  %v2619_v42 = vadd.f32 %v2611_v57, %v2599_v52  ;;  %v2795_v0 = vmul.f32 %v5983_v61, %v5996_v26  ;;  %v2654_v52 = vmul.f32 %v7838_v18, %v5604_v45  ;;  %v2859_v38 = vmul.f32 %v5996_v26, %v5797_v1 }
 0x352   : > { %v2584_v33 = vpop.xlane.xlu1 %2583 }
 0x353   : > { %v2610_v13 = vmul.f32 %v2605_v39, %v2584_v33  ;;  %2818 = vrot.lane.b32.xlu1 %v2795_v0, %s5236_s15  ;;  %v6009_v15 = vadd.f32 %v2659_v62, %v2619_v42  ;;  %v7839_v33 = vld [vmem:[#allocation12_spill] sm:$0xff]  ;;  %v2595_v62 = vmul.f32 %v5760_v58, %v5598_v24  ;;  %v2863_v58 = vrot.slane %v5726_v63, %v5607_v43 }
 0x354   : > { %v2657_v23 = vmul.f32 %v7839_v33, %v5604_v45  ;;  %v6236_v43 = vrot.slane %v5451_v51, %v5818_v36 }
 0x355   : > { %7835 = vst [vmem:[#allocation6_spill] sm:$0xff] %v6009_v15  ;;  %v2618_v2 = vadd.f32 %v2610_v13, %v2598_v29  ;;  %v2793_v0 = vmul.f32 %v5983_v61, %v6009_v15 }
 0x356   : > { %v2581_v21 = vpop.xlane.xlu1 %2580  ;;  %v2572_v20 = vpop.xlane.xlu0 %2571 }
 0x357   : > { %v2609_v27 = vmul.f32 %v2605_v39, %v2581_v21  ;;  %v2606_v6 = vmul.f32 %v2605_v39, %v2572_v20  ;;  %2816 = vrot.lane.b32.xlu1 %v2794_v22, %s5236_s15  ;;  %v6020_v59 = vadd.f32 %v2658_v11, %v2618_v2  ;;  %v1223_v22 = vmul.f32 %v5947_v9, %v5862_v53 }
 0x358   : > { %v1222_v53 = vmul.f32 %v5947_v9, %v5884_v49  ;;  %v1221_v49 = vmul.f32 %v5947_v9, %v5901_v40 }
 0x359   : > { %7837 = vst [vmem:[#allocation2_spill] sm:$0xff] %v6020_v59  ;;  %v2617_v57 = vadd.f32 %v2609_v27, %v2597_v8  ;;  %v2614_v42 = vadd.f32 %v2606_v6, %v2594_v19  ;;  %v2792_v21 = vmul.f32 %v5983_v61, %v6020_v59 }
 0x35a   : > { %v2575_v29 = vpop.xlane.xlu1 %2574  ;;  %v1203_v13 = vpop.xlane.xlu0 %1202 }
 0x35b   : > { %v6030_v12 = vadd.f32 %v2654_v52, %v2614_v42  ;;  %v2607_v2 = vmul.f32 %v2605_v39, %v2575_v29  ;;  %v1235_v11 = vmul.f32 %v5951_v37, %v1203_v13  ;;  %2814 = vrot.lane.b32.xlu1 %v2793_v0, %s5236_s15  ;;  %v6038_v20 = vadd.f32 %v2657_v23, %v2617_v57  ;;  %v7842_v39 = vld [vmem:[#allocation16_spill] sm:$0xff] }
 0x35c   : > { %v2655_v6 = vmul.f32 %v7842_v39, %v5604_v45  ;;  %v6057_v45 = vrot.slane %v5483_v14, %v5818_v36 }
 0x35d   : > { %7840 = vst [vmem:[#allocation15_spill] sm:$0xff] %v6030_v12  ;;  %7841 = vst [vmem:[#allocation9_spill] sm:$0xff] %v6038_v20  ;;  %v2615_v8 = vadd.f32 %v2607_v2, %v2595_v62  ;;  %v1243_v27 = vadd.f32 %v1235_v11, %v1223_v22  ;;  %v2788_v24 = vmul.f32 %v5983_v61, %v6030_v12  ;;  %v6064_v62 = vsub.s32 4, %v5420_v30 }
 0x35e   : > { %v1200_v19 = vpop.xlane.xlu1 %1199  ;;  %v2791_v42 = vmul.f32 %v5983_v61, %v6038_v20 }
 0x35f   : > { %v1234_v18 = vmul.f32 %v5951_v37, %v1200_v19  ;;  %2812 = vrot.lane.b32.xlu1 %v2792_v21, %s5236_s15  ;;  %2804 = vrot.lane.b32.xlu0 %v2788_v24, %s5236_s15  ;;  %v6049_v52 = vadd.f32 %v2655_v6, %v2615_v8  ;;  %v5242_v21 = vmov 4   ;;  %v1400_v8 = vrot.slane %v5423_v32, %v6064_v62 }
 0x360   : > { %5174 = vset.pattern.permute.xlu0 %v5242_v21  ;;  %5173 = vset.pattern.permute.xlu1 %v5242_v21 }
 0x361   : > { %7843 = vst [vmem:[#allocation13_spill] sm:$0xff] %v6049_v52  ;;  %v1242_v57 = vadd.f32 %v1234_v18, %v1222_v53  ;;  %v2789_v13 = vmul.f32 %v5983_v61, %v6049_v52 }
 0x362   : > { %v1197_v0 = vpop.xlane.xlu1 %1196  ;;  %v6053_v33 = vpop.permute.xlu0 %3155 }
 0x363   : > { %v1233_v23 = vmul.f32 %v5951_v37, %v1197_v0  ;;  %2810 = vrot.lane.b32.xlu1 %v2791_v42, %s5236_s15 }
 0x365   : > { %v1241_v29 = vadd.f32 %v1233_v23, %v1221_v49 }
 0x366   : > { %v6068_v2 = vpop.permute.xlu1 %3167  ;;  %v1278_v22 = vpop.permute.xlu0 %1277 }
 0x367   : > { %v1291_v11 = vmul.f32 %v6057_v45, %v1278_v22  ;;  %2806 = vrot.lane.b32.xlu1 %v2789_v13, %s5236_s15 }
 0x369   : > { %v6073_v40 = vadd.f32 %v1291_v11, %v5956_v16 }
 0x36a   : > { %v6077_v24 = vpop.permute.xlu1 %3163  ;;  %v1274_v19 = vpop.permute.xlu0 %1273 }
 0x36b   : > { %v1290_v61 = vmul.f32 %v6057_v45, %v1274_v19  ;;  %4898 = vmatpush3.xpose.msk.msra.mxu1 %vm561_vm0, %v6073_v40  ;;  %v1408_v39 = vmul.f32 %v1400_v8, %v6073_v40 }
 0x36c   : > { %4899 = vmatprep.subr.mxu1 %v7810_v4 }
 0x36d   : > { %v6085_v6 = vadd.f32 %v1290_v61, %v5966_v28 }
 0x36e   : > { %v6087_v16 = vpop.permute.xlu1 %3159  ;;  %v1266_v53 = vpop.permute.xlu0 %1265 }
 0x36f   : > { %v1288_v18 = vmul.f32 %v6057_v45, %v1266_v53  ;;  %4900 = vmatpush3.xpose.msk.msra.mxu1 %vm561_vm0, %v6085_v6  ;;  %v1407_v42 = vmul.f32 %v1400_v8, %v6085_v6 }
 0x370   : > { %4901 = vmatprep.subr.mxu1 %v7810_v4 }
 0x371   : > { %v6095_v0 = vadd.f32 %v1288_v18, %v5964_v7  ;;  %v1427_v22 = vsel %vm561_vm0, %v1407_v42, 0.0 }
 0x372   : > { %v6097_v49 = vpop.permute.xlu1 %3151 }
 0x373   : > { %v1405_v28 = vmul.f32 %v1400_v8, %v6095_v0 }
 0x376   : > { %v6100_v23 = vpop.permute.xlu1 %3147 }
 0x37a   : > { %v6102_v13 = vpop.permute.xlu1 %3143 }
 0x37e   : > { %v6105_v11 = vpop.permute.xlu1 %3139  ;;  %1428 = vadd.xlane.f32.xlu0 %v1427_v22  ;;  %v1430_v22 = vsel %vm561_vm0, %v1408_v39, 0.0 }
 0x37f   : > { %7844 = vst [vmem:[#allocation10_spill] sm:$0xff] %v6105_v11 }
 0x382   : > { %v1270_v21 = vpop.permute.xlu1 %1269 }
 0x383   : > { %v1289_v19 = vmul.f32 %v6057_v45, %v1270_v21 }
 0x385   : > { %v6109_v61 = vadd.f32 %v1289_v19, %v5971_v46 }
 0x386   : > { %v1262_v7 = vpop.permute.xlu1 %1261 }
 0x387   : > { %v1287_v53 = vmul.f32 %v6057_v45, %v1262_v7  ;;  %4902 = vmatpush3.xpose.msk.msra.mxu1 %vm561_vm0, %v6109_v61  ;;  %v1406_v18 = vmul.f32 %v1400_v8, %v6109_v61 }
 0x388   : > { %4903 = vmatprep.subr.mxu1 %v7810_v4 }
 0x389   : > { %v6116_v42 = vadd.f32 %v1287_v53, %v1243_v27  ;;  %v1424_v54 = vsel %vm561_vm0, %v1406_v18, 0.0  ;;  %v1421_v53 = vsel %vm561_vm0, %v1405_v28, 0.0 }
 0x38a   : > { %v1258_v35 = vpop.permute.xlu1 %1257 }
 0x38b   : > { %v1286_v21 = vmul.f32 %v6057_v45, %v1258_v35  ;;  %1431 = vadd.xlane.f32.xlu1 %v1430_v22  ;;  %4904 = vmatpush3.xpose.msk.msra.mxu1 %vm561_vm0, %v6095_v0  ;;  %v1404_v46 = vmul.f32 %v1400_v8, %v6116_v42 }
 0x38c   : > { %4905 = vmatprep.subr.mxu1 %v7810_v4 }
 0x38d   : > { %v6124_v19 = vadd.f32 %v1286_v21, %v1242_v57 }
 0x38e   : > { %v1254_v7 = vpop.permute.xlu1 %1253 }
 0x38f   : > { %v1285_v27 = vmul.f32 %v6057_v45, %v1254_v7  ;;  %1425 = vadd.xlane.f32.xlu1 %v1424_v54  ;;  %4906 = vmatpush3.xpose.msk.msra.mxu1 %vm561_vm0, %v6116_v42  ;;  %v1403_v35 = vmul.f32 %v1400_v8, %v6124_v19 }
 0x390   : > { %4907 = vmatprep.subr.mxu1 %v7810_v4 }
 0x391   : > { %v6132_v39 = vadd.f32 %v1285_v27, %v1241_v29  ;;  %v1220_v29 = vmul.f32 %v5947_v9, %v5898_v44 }
 0x392   : > { %v1250_v54 = vpop.permute.xlu1 %1249 }
 0x393   : > { %1422 = vadd.xlane.f32.xlu1 %v1421_v53  ;;  %4908 = vmatpush3.xpose.msk.msra.mxu1 %vm561_vm0, %v6124_v19  ;;  %v6138_v57 = vmul.f32 %v1400_v8, %v6132_v39  ;;  %v1284_v22 = vmul.f32 %v6057_v45, %v1250_v54 }
 0x394   : > { %4909 = vmatprep.subr.mxu1 %v7810_v4 }
 0x397   : > { %4910 = vmatpush3.xpose.msk.msra.mxu1 %vm561_vm0, %v6132_v39 }
 0x398   : > { %4911 = vmatprep.subr.mxu1 %v7810_v4 }
 0x39b   : > { %v1194_v18 = vpop.xlane.xlu0 %1193 }
 0x39c   : > { %v1232_v28 = vmul.f32 %v5951_v37, %v1194_v18 }
 0x39e   : > { %v1240_v21 = vadd.f32 %v1232_v28, %v1220_v29 }
 0x3a0   : > { %v6148_v7 = vadd.f32 %v1284_v22, %v1240_v21  ;;  %v1415_v22 = vsel %vm561_vm0, %v1403_v35, 0.0 }
 0x3a2   : > { %7845 = vst [vmem:[#allocation14_spill] sm:$0xff] %v6148_v7  ;;  %4912 = vmatpush3.xpose.msk.msra.mxu1 %vm561_vm0, %v6148_v7  ;;  %v6153_v27 = vmul.f32 %v1400_v8, %v6148_v7  ;;  %v2918_v7 = vmul.f32 %v5787_v3, %v5815_v41 }
 0x3a3   : > { %4935 = vmatprep.subr.mxu1 %v7810_v4 }
 0x3c5   : > { %v2819_v53 = vpop.permute.xlu1 %2818 }
 0x3c6   : > { %v2849_v55 = vsel %vm561_vm0, %v2819_v53, 0.0 }
 0x3c7   : > { %2850 = vadd.xlane.f32.xlu1 %v2849_v55  ;;  %v2809_v55 = vpop.permute.xlu0 %2808 }
 0x3c8   : > { %v2834_v53 = vsel %vm561_vm0, %v2809_v55, 0.0  ;;  %v6188_v55 = vld [vmem:[%s5336_s14 + $0x60] sm:$0xff] }
 0x3c9   : > { %v2817_v44 = vpop.permute.xlu1 %2816 }
 0x3ca   : > { %v2846_v37 = vsel %vm561_vm0, %v2817_v44, 0.0 }
 0x3cb   : > { %2847 = vadd.xlane.f32.xlu0 %v2846_v37 }
 0x3cd   : > { %v2815_v54 = vpop.permute.xlu1 %2814 }
 0x3ce   : > { %v2843_v18 = vsel %vm561_vm0, %v2815_v54, 0.0 }
 0x3cf   : > { %2844 = vadd.xlane.f32.xlu0 %v2843_v18  ;;  %v1418_v18 = vsel %vm561_vm0, %v1404_v46, 0.0  ;;  %v6183_v46 = vld [vmem:[%s5336_s14 + $0x38] sm:$0xff] }
 0x3d0   : > { %7848 = vst [vmem:[#allocation16_spill] sm:$0xff] %v6183_v46 }
 0x3d1   : > { %v2813_v29 = vpop.permute.xlu1 %2812  ;;  %v2805_v54 = vpop.permute.xlu0 %2804 }
 0x3d2   : > { %v2840_v28 = vsel %vm561_vm0, %v2813_v29, 0.0  ;;  %v2828_v35 = vsel %vm561_vm0, %v2805_v54, 0.0  ;;  %v6167_v29 = vld [vmem:[%s5336_s14 + $0x78] sm:$0xff]  ;;  %v6209_v54 = vld [vmem:[%s5336_s14 + $0x40] sm:$0xff] }
 0x3d3   : > { %2841 = vadd.xlane.f32.xlu0 %v2840_v28  ;;  %v6171_v28 = vld [vmem:[%s5336_s14 + $0x68] sm:$0xff] }
 0x3d4   : > { %7846 = vst [vmem:[#allocation19_spill] sm:$0xff] %v6171_v28 }
 0x3d5   : > { %v2811_v8 = vpop.permute.xlu1 %2810 }
 0x3d6   : > { %v2837_v21 = vsel %vm561_vm0, %v2811_v8, 0.0  ;;  %v6175_v8 = vld [vmem:[%s5336_s14 + $0x58] sm:$0xff] }
 0x3d7   : > { %1416 = vadd.xlane.f32.xlu0 %v1415_v22  ;;  %2838 = vadd.xlane.f32.xlu1 %v2837_v21  ;;  %v6179_v22 = vld [vmem:[%s5336_s14 + $0x70] sm:$0xff]  ;;  %v7741_v21 = vrot.slane %v5714_v17, 2 }
 0x3d8   : > { %7847 = vst [vmem:[#allocation12_spill] sm:$0xff] %v6179_v22 }
 0x3d9   : > { %v2807_v44 = vpop.permute.xlu1 %2806  ;;  %4895 = vmatmul.mubr.msk.f32.vlgmr.msra.gmra.mxu0 %vm561_vm0, %v7741_v21 }
 0x3da   : > { %v2831_v37 = vsel %vm561_vm0, %v2807_v44, 0.0  ;;  %4932 = vmatprep.mubr.msk.f32.mxu0 %vm5240_vm1, %v7810_v4  ;;  %v6201_v44 = vld [vmem:[%s5336_s14 + $0x50] sm:$0xff] }
 0x3db   : > { %2835 = vadd.xlane.f32.xlu1 %v2834_v53  ;;  %v6192_v53 = vld [vmem:[%s5336_s14 + $0x28] sm:$0xff] }
 0x3dc   : > { %7849 = vst [vmem:[#allocation32_spill] sm:$0xff] %v6192_v53 }
 0x3df   : > { %2832 = vadd.xlane.f32.xlu1 %v2831_v37  ;;  %v6205_v37 = vld [vmem:[%s5336_s14 + $0x48] sm:$0xff] }
 0x3e0   : > { %7850 = vst [vmem:[#allocation33_spill] sm:$0xff] %v6205_v37 }
 0x3e3   : > { %2829 = vadd.xlane.f32.xlu1 %v2828_v35  ;;  %v6213_v35 = vld [vmem:[%s5336_s14 + $0x30] sm:$0xff] }
 0x3e4   : > { %7851 = vst [vmem:[#allocation34_spill] sm:$0xff] %v6213_v35 }
 0x3e7   : > { %1419 = vadd.xlane.f32.xlu1 %v1418_v18 }
 0x3ed   : > { %3425 = vperm.xlu0 %5174, %v6167_v29  }
 0x3f1   : > { %3417 = vperm.xlu0 %5174, %v6171_v28  }
 0x3f5   : > { %3409 = vperm.xlu0 %5174, %v6175_v8  }
 0x3f8   : > { %3421 = vperm.xlu1 %5173, %v6179_v22   ;;  %v2858_v22 = vmul.f32 %v6000_v48, %v5797_v1 }
 0x3f9   : > { %1494 = vperm.xlu0 %5174, %v6183_v46  }
 0x3fc   : > { %3413 = vperm.xlu1 %5173, %v6188_v55  }
 0x3fd   : > { %1486 = vperm.xlu0 %5174, %v6192_v53   ;;  %v2919_v53 = vmul.f32 %v7852_v34, %v5815_v41 }
 0x400   : > { %3405 = vperm.xlu1 %5173, %v6201_v44  }
 0x404   : > { %3401 = vperm.xlu1 %5173, %v6205_v37  }
 0x407   : > { %v6224_v56 = vpop.xlane.xlu0 %1428 }
 0x408   : > { %3397 = vperm.xlu1 %5173, %v6209_v54  }
 0x40c   : > { %1490 = vperm.xlu1 %5173, %v6213_v35  }
 0x414   : > { %v6216_v18 = vpop.xlane.xlu1 %1431 }
 0x418   : > { %v6218_v21 = vpop.xlane.xlu1 %1425 }
 0x41c   : > { %v6220_v17 = vpop.xlane.xlu1 %1422 }
 0x450   : > { %v2851_v50 = vpop.xlane.xlu1 %2850 }
 0x451   : > { %v2871_v47 = vmul.f32 %v2863_v58, %v2851_v50 }
 0x453   : > { %v2879_v35 = vadd.f32 %v2871_v47, %v2859_v38  ;;  %v2857_v38 = vmul.f32 %v6009_v15, %v5797_v1 }
 0x454   : > { %v2848_v37 = vpop.xlane.xlu0 %2847 }
 0x455   : > { %v6230_v28 = vadd.f32 %v2919_v53, %v2879_v35  ;;  %v2870_v46 = vmul.f32 %v2863_v58, %v2848_v37  ;;  %v2917_v37 = vmul.f32 %v5789_v31, %v5815_v41 }
 0x457   : > { %7853 = vst [vmem:[#allocation17_spill] sm:$0xff] %v6230_v28  ;;  %v2878_v26 = vadd.f32 %v2870_v46, %v2858_v22  ;;  %v3053_v50 = vmul.f32 %v6236_v43, %v6230_v28 }
 0x458   : > { %v2845_v34 = vpop.xlane.xlu0 %2844 }
 0x459   : > { %v6242_v47 = vadd.f32 %v2918_v7, %v2878_v26  ;;  %v2869_v53 = vmul.f32 %v2863_v58, %v2845_v34  ;;  %3076 = vrot.lane.b32.xlu0 %v3053_v50, %s5236_s15  ;;  %v2856_v26 = vmul.f32 %v6020_v59, %v5797_v1  ;;  %v2916_v34 = vmul.f32 %v5791_v60, %v5815_v41 }
 0x45b   : > { %7854 = vst [vmem:[#allocation35_spill] sm:$0xff] %v6242_v47  ;;  %v2877_v35 = vadd.f32 %v2869_v53, %v2857_v38  ;;  %v3052_v3 = vmul.f32 %v6236_v43, %v6242_v47 }
 0x45c   : > { %v2842_v22 = vpop.xlane.xlu0 %2841 }
 0x45d   : > { %v6251_v46 = vadd.f32 %v2917_v37, %v2877_v35  ;;  %v2868_v7 = vmul.f32 %v2863_v58, %v2842_v22  ;;  %3074 = vrot.lane.b32.xlu0 %v3052_v3, %s5236_s15  ;;  %v2855_v37 = vmul.f32 %v6038_v20, %v5797_v1  ;;  %v7857_v22 = vld [vmem:[#allocation29_spill] sm:$0xff] }
 0x45e   : > { %v2915_v59 = vmul.f32 %v7857_v22, %v5815_v41 }
 0x45f   : > { %7855 = vst [vmem:[#allocation36_spill] sm:$0xff] %v6251_v46  ;;  %v2876_v50 = vadd.f32 %v2868_v7, %v2856_v26  ;;  %v3051_v31 = vmul.f32 %v6236_v43, %v6251_v46 }
 0x460   : > { %v2839_v38 = vpop.xlane.xlu1 %2838  ;;  %v6269_v26 = vpop.xlane.xlu0 %1416 }
 0x461   : > { %v6260_v53 = vadd.f32 %v2916_v34, %v2876_v50  ;;  %v2867_v35 = vmul.f32 %v2863_v58, %v2839_v38  ;;  %3072 = vrot.lane.b32.xlu0 %v3051_v31, %s5236_s15  ;;  %v2854_v34 = vmul.f32 %v5979_v10, %v5797_v1  ;;  %v7859_v31 = vld [vmem:[#allocation30_spill] sm:$0xff] }
 0x462   : > { %v2914_v38 = vmul.f32 %v7859_v31, %v5815_v41 }
 0x463   : > { %7856 = vst [vmem:[#allocation37_spill] sm:$0xff] %v6260_v53  ;;  %v2875_v3 = vadd.f32 %v2867_v35, %v2855_v37  ;;  %v3050_v60 = vmul.f32 %v6236_v43, %v6260_v53 }
 0x464   : > { %v2836_v7 = vpop.xlane.xlu1 %2835 }
 0x465   : > { %v6271_v48 = vadd.f32 %v2915_v59, %v2875_v3  ;;  %v2866_v50 = vmul.f32 %v2863_v58, %v2836_v7  ;;  %3070 = vrot.lane.b32.xlu1 %v3050_v60, %s5236_s15  ;;  %v2853_v59 = vmul.f32 %v6049_v52, %v5797_v1  ;;  %v7861_v60 = vld [vmem:[#allocation18_spill] sm:$0xff] }
 0x466   : > { %v2913_v7 = vmul.f32 %v7861_v60, %v5815_v41 }
 0x467   : > { %7858 = vst [vmem:[#allocation29_spill] sm:$0xff] %v6271_v48  ;;  %v2874_v20 = vadd.f32 %v2866_v50, %v2854_v34  ;;  %v3049_v37 = vmul.f32 %v6236_v43, %v6271_v48 }
 0x468   : > { %v2833_v35 = vpop.xlane.xlu1 %2832  ;;  %v6280_v22 = vpop.permute.xlu0 %3425 }
 0x469   : > { %v6282_v15 = vadd.f32 %v2914_v38, %v2874_v20  ;;  %v2865_v3 = vmul.f32 %v2863_v58, %v2833_v35  ;;  %3068 = vrot.lane.b32.xlu0 %v3049_v37, %s5236_s15  ;;  %v2852_v20 = vmul.f32 %v6030_v12, %v5797_v1  ;;  %v6300_v37 = vrot.slane %v5486_v25, %v6064_v62  ;;  %v7864_v35 = vld [vmem:[#allocation31_spill] sm:$0xff] }
 0x46b   : > { %7860 = vst [vmem:[#allocation30_spill] sm:$0xff] %v6282_v15  ;;  %v2873_v10 = vadd.f32 %v2865_v3, %v2853_v59  ;;  %v3048_v34 = vmul.f32 %v6236_v43, %v6282_v15  ;;  %v2912_v59 = vmul.f32 %v7864_v35, %v5815_v41  ;;  %v6306_v3 = vrot.slane %v5480_v5, %v6064_v62 }
 0x46c   : > { %v2830_v50 = vpop.xlane.xlu1 %2829  ;;  %v6291_v31 = vpop.permute.xlu0 %3417  ;;  %v1456_v41 = vmul.f32 %v6300_v37, %v6216_v18 }
 0x46d   : > { %7862 = vst [vmem:[#allocation18_spill] sm:$0xff] %v6291_v31  ;;  %v6293_v11 = vadd.f32 %v2913_v7, %v2873_v10  ;;  %v2864_v38 = vmul.f32 %v2863_v58, %v2830_v50  ;;  %3066 = vrot.lane.b32.xlu1 %v3048_v34, %s5236_s15  ;;  %v6316_v7 = vrot.slane %v5483_v14, %v6064_v62 }
 0x46e   : > { %v1444_v50 = vmul.f32 %v6306_v3, %v6073_v40  ;;  %v6340_v40 = vld [vmem:[%s5336_s14 + $0x20] sm:$0xff] }
 0x46f   : > { %7863 = vst [vmem:[#allocation38_spill] sm:$0xff] %v6293_v11  ;;  %v2872_v10 = vadd.f32 %v2864_v38, %v2852_v20  ;;  %v3047_v60 = vmul.f32 %v6236_v43, %v6293_v11 }
 0x470   : > { %v6310_v1 = vpop.xlane.xlu1 %1419  ;;  %v6312_v58 = vpop.permute.xlu0 %3409  ;;  %v1464_v12 = vadd.f32 %v1456_v41, %v1444_v50 }
 0x471   : > { %7865 = vst [vmem:[#allocation31_spill] sm:$0xff] %v6312_v58  ;;  %v6320_v34 = vadd.f32 %v2912_v59, %v2872_v10  ;;  %3064 = vrot.lane.b32.xlu0 %v3047_v60, %s5236_s15  ;;  %v6331_v58 = vld [vmem:[%s5336_s14 + $0x18] sm:$0xff] }
 0x473   : > { %7866 = vst [vmem:[#allocation39_spill] sm:$0xff] %v6320_v34  ;;  %v3046_v20 = vmul.f32 %v6236_v43, %v6320_v34 }
 0x474   : > { %v6327_v38 = vpop.permute.xlu1 %3421  ;;  %v1495_v35 = vpop.permute.xlu0 %1494 }
 0x475   : > { %v1508_v52 = vmul.f32 %v6316_v7, %v1495_v35  ;;  %1478 = vperm.xlu0 %5174, %v6331_v58   ;;  %3062 = vrot.lane.b32.xlu1 %v3046_v20, %s5236_s15  ;;  %v1454_v35 = vmul.f32 %v6300_v37, %v6218_v21 }
 0x477   : > { %v6335_v18 = vadd.f32 %v1508_v52, %v1464_v12  ;;  %v1455_v12 = vmul.f32 %v6300_v37, %v6224_v56  ;;  %v1443_v52 = vmul.f32 %v6306_v3, %v6085_v6  ;;  %v1412_v6 = vsel %vm561_vm0, %v6138_v57, 0.0 }
 0x478   : > { %v6337_v59 = vpop.permute.xlu1 %3413  ;;  %v1487_v41 = vpop.permute.xlu0 %1486 }
 0x479   : > { %7867 = vst [vmem:[#allocation40_spill] sm:$0xff] %v6337_v59  ;;  %1482 = vperm.xlu1 %5173, %v6340_v40   ;;  %4917 = vmatpush3.xpose.msk.msra.mxu0 %vm561_vm0, %v6335_v18  ;;  %v1463_v20 = vadd.f32 %v1455_v12, %v1443_v52 }
 0x47a   : > { %4918 = vmatprep.subr.mxu0 %v7810_v4 }
 0x47c   : > { %v6346_v43 = vpop.permute.xlu1 %3405 }
 0x47d   : > { %7868 = vst [vmem:[#allocation41_spill] sm:$0xff] %v6346_v43  ;;  %v1442_v43 = vmul.f32 %v6306_v3, %v6109_v61  ;;  %v5243_v61 = vmov 5  }
 0x47e   : > { %5175 = vset.pattern.permute.xlu0 %v5243_v61 }
 0x47f   : > { %v1462_v59 = vadd.f32 %v1454_v35, %v1442_v43 }
 0x480   : > { %v6348_v10 = vpop.permute.xlu1 %3401 }
 0x481   : > { %7869 = vst [vmem:[#allocation42_spill] sm:$0xff] %v6348_v10  ;;  %v1506_v10 = vmul.f32 %v6316_v7, %v1487_v41 }
 0x483   : > { %v6367_v56 = vadd.f32 %v1506_v10, %v1462_v59 }
 0x484   : > { %v6350_v60 = vpop.permute.xlu1 %3397 }
 0x485   : > { %7870 = vst [vmem:[#allocation43_spill] sm:$0xff] %v6350_v60 }
 0x488   : > { %v1491_v50 = vpop.permute.xlu1 %1490 }
 0x489   : > { %v1507_v31 = vmul.f32 %v6316_v7, %v1491_v50 }
 0x48b   : > { %v6362_v60 = vadd.f32 %v1507_v31, %v1463_v20 }
 0x48d   : > { %4919 = vmatpush3.xpose.msk.msra.mxu0 %vm561_vm0, %v6362_v60 }
 0x48e   : > { %4920 = vmatprep.subr.mxu0 %v7810_v4 }
 0x491   : > { %4921 = vmatpush3.xpose.msk.msra.mxu0 %vm561_vm0, %v6367_v56 }
 0x492   : > { %4922 = vmatprep.subr.mxu0 %v7810_v4 }
 0x49d   : > { %1413 = vadd.xlane.f32.xlu1 %v1412_v6 }
 0x4cb   : > { %v3077_v21 = vpop.permute.xlu0 %3076 }
 0x4cc   : > { %v3107_v31 = vsel %vm561_vm0, %v3077_v21, 0.0 }
 0x4cd   : > { %3108 = vadd.xlane.f32.xlu0 %v3107_v31  ;;  %v6382_v31 = vsub.s32 5, %v5420_v30 }
 0x4cf   : > { %v3075_v43 = vpop.permute.xlu0 %3074 }
 0x4d0   : > { %v3104_v12 = vsel %vm561_vm0, %v3075_v43, 0.0 }
 0x4d1   : > { %3105 = vadd.xlane.f32.xlu0 %v3104_v12 }
 0x4d3   : > { %v3073_v59 = vpop.permute.xlu0 %3072 }
 0x4d4   : > { %v3101_v10 = vsel %vm561_vm0, %v3073_v59, 0.0  ;;  %v6387_v59 = vrot.slane %v5423_v32, %v6382_v31 }
 0x4d5   : > { %3102 = vadd.xlane.f32.xlu0 %v3101_v10  ;;  %v1409_v10 = vsel %vm561_vm0, %v6153_v27, 0.0 }
 0x4d7   : > { %v3071_v52 = vpop.permute.xlu1 %3070 }
 0x4d8   : > { %v3098_v41 = vsel %vm561_vm0, %v3071_v52, 0.0  ;;  %v1625_v52 = vmul.f32 %v6387_v59, %v6335_v18 }
 0x4d9   : > { %3099 = vadd.xlane.f32.xlu0 %v3098_v41 }
 0x4da   : > { %v1647_v41 = vsel %vm561_vm0, %v1625_v52, 0.0 }
 0x4db   : > { %v3069_v57 = vpop.permute.xlu0 %3068 }
 0x4dc   : > { %v3095_v50 = vsel %vm561_vm0, %v3069_v57, 0.0  ;;  %v1623_v57 = vmul.f32 %v6387_v59, %v6367_v56 }
 0x4dd   : > { %3096 = vadd.xlane.f32.xlu0 %v3095_v50  ;;  %v1453_v50 = vmul.f32 %v6300_v37, %v6220_v17  ;;  %v1440_v17 = vmul.f32 %v6306_v3, %v6116_v42  ;;  %v6425_v42 = vld [vmem:[%s5336_s14] sm:$0xff] }
 0x4de   : > { %v1641_v27 = vsel %vm561_vm0, %v1623_v57, 0.0  ;;  %v6416_v57 = vld [vmem:[%s5336_s14 + $0x8] sm:$0xff] }
 0x4df   : > { %v3067_v20 = vpop.permute.xlu1 %3066 }
 0x4e0   : > { %v3092_v35 = vsel %vm561_vm0, %v3067_v20, 0.0  ;;  %v1441_v20 = vmul.f32 %v6306_v3, %v6095_v0 }
 0x4e1   : > { %3093 = vadd.xlane.f32.xlu0 %v3092_v35 }
 0x4e3   : > { %v3065_v6 = vpop.permute.xlu0 %3064 }
 0x4e4   : > { %v3089_v21 = vsel %vm561_vm0, %v3065_v6, 0.0 }
 0x4e5   : > { %3090 = vadd.xlane.f32.xlu1 %v3089_v21  ;;  %v1461_v21 = vadd.f32 %v1453_v50, %v1441_v20  ;;  %v1624_v50 = vmul.f32 %v6387_v59, %v6362_v60 }
 0x4e7   : > { %v3063_v43 = vpop.permute.xlu1 %3062  ;;  %v1644_v20 = vsel %vm561_vm0, %v1624_v50, 0.0  ;;  %v3115_v50 = vmul.f32 %v6251_v46, %v5947_v9 }
 0x4e8   : > { %v3086_v12 = vsel %vm561_vm0, %v3063_v43, 0.0  ;;  %v1452_v43 = vmul.f32 %v6300_v37, %v6310_v1 }
 0x4e9   : > { %3087 = vadd.xlane.f32.xlu0 %v3086_v12 }
 0x4ed   : > { %1410 = vadd.xlane.f32.xlu0 %v1409_v10  ;;  %v6405_v10 = vld [vmem:[%s5336_s14 + $0x10] sm:$0xff] }
 0x4f0   : > { %v1479_v35 = vpop.permute.xlu0 %1478 }
 0x4f1   : > { %1648 = vadd.xlane.f32.xlu0 %v1647_v41  ;;  %v1504_v0 = vmul.f32 %v6316_v7, %v1479_v35  ;;  %v1460_v41 = vadd.f32 %v1452_v43, %v1440_v17  ;;  %v6439_v35 = vrot.slane %v5726_v63, %v5818_v36  ;;  %v6453_v36 = vrot.slane %v5451_v51, %v6064_v62 }
 0x4f3   : > { %v6420_v1 = vadd.f32 %v1504_v0, %v1460_v41 }
 0x4f4   : > { %v1483_v6 = vpop.permute.xlu1 %1482 }
 0x4f5   : > { %v1505_v12 = vmul.f32 %v6316_v7, %v1483_v6  ;;  %1642 = vadd.xlane.f32.xlu0 %v1641_v27 }
 0x4f6   : > { %1474 = vperm.xlu1 %5173, %v6405_v10  }
 0x4f7   : > { %v6411_v52 = vadd.f32 %v1505_v12, %v1461_v21  ;;  %v3116_v21 = vmul.f32 %v6242_v47, %v5947_v9  ;;  %v3176_v12 = vmul.f32 %v6077_v24, %v6057_v45 }
 0x4f9   : > { %4923 = vmatpush3.xpose.msk.msra.mxu0 %vm561_vm0, %v6411_v52 }
 0x4fa   : > { %1470 = vperm.xlu1 %5173, %v6416_v57   ;;  %4924 = vmatprep.subr.mxu0 %v7810_v4 }
 0x4fd   : > { %4925 = vmatpush3.xpose.msk.msra.mxu0 %vm561_vm0, %v6420_v1 }
 0x4fe   : > { %1466 = vperm.xlu1 %5173, %v6425_v42   ;;  %4926 = vmatprep.subr.mxu0 %v7810_v4 }
 0x502   : > { %5176 = vset.pattern.permute.xlu1 %v5243_v61 }
 0x50b   : > { %3683 = vperm.xlu0 %5175, %v6167_v29  }
 0x50f   : > { %3671 = vperm.xlu0 %5175, %v6188_v55   ;;  %v3117_v55 = vmul.f32 %v6230_v28, %v5947_v9 }
 0x513   : > { %3667 = vperm.xlu0 %5175, %v6175_v8  }
 0x517   : > { %3663 = vperm.xlu0 %5175, %v6201_v44   ;;  %v3177_v44 = vmul.f32 %v6068_v2, %v6057_v45 }
 0x51b   : > { %3655 = vperm.xlu0 %5175, %v6209_v54  }
 0x522   : > { %1645 = vadd.xlane.f32.xlu1 %v1644_v20 }
 0x556   : > { %v3109_v61 = vpop.xlane.xlu0 %3108 }
 0x557   : > { %v3129_v8 = vmul.f32 %v6439_v35, %v3109_v61  ;;  %v3175_v61 = vmul.f32 %v6087_v16, %v6057_v45 }
 0x559   : > { %v3137_v54 = vadd.f32 %v3129_v8, %v3117_v55 }
 0x55a   : > { %v3106_v6 = vpop.xlane.xlu0 %3105 }
 0x55b   : > { %v6446_v27 = vadd.f32 %v3177_v44, %v3137_v54  ;;  %v3128_v43 = vmul.f32 %v6439_v35, %v3106_v6  ;;  %v3114_v54 = vmul.f32 %v6260_v53, %v5947_v9 }
 0x55d   : > { %v3136_v17 = vadd.f32 %v3128_v43, %v3116_v21  ;;  %v3311_v2 = vmul.f32 %v6453_v36, %v6446_v27  ;;  %v3174_v21 = vmul.f32 %v6053_v33, %v6057_v45 }
 0x55e   : > { %v3103_v0 = vpop.xlane.xlu0 %3102 }
 0x55f   : > { %v6459_v41 = vadd.f32 %v3176_v12, %v3136_v17  ;;  %v3127_v20 = vmul.f32 %v6439_v35, %v3103_v0  ;;  %3334 = vrot.lane.b32.xlu1 %v3311_v2, %s5236_s15  ;;  %v3113_v2 = vmul.f32 %v6271_v48, %v5947_v9 }
 0x561   : > { %v3135_v55 = vadd.f32 %v3127_v20, %v3115_v50  ;;  %v3310_v24 = vmul.f32 %v6453_v36, %v6459_v41  ;;  %v3173_v50 = vmul.f32 %v6097_v49, %v6057_v45 }
 0x562   : > { %v3100_v8 = vpop.xlane.xlu0 %3099 }
 0x563   : > { %v6469_v44 = vadd.f32 %v3175_v61, %v3135_v55  ;;  %v3126_v6 = vmul.f32 %v6439_v35, %v3100_v8  ;;  %3332 = vrot.lane.b32.xlu1 %v3310_v24, %s5236_s15  ;;  %v1414_v61 = vpop.xlane.xlu1 %1413  ;;  %v3112_v8 = vmul.f32 %v6282_v15, %v5947_v9 }
 0x565   : > { %7871 = vst [vmem:[#allocation44_spill] sm:$0xff] %v6469_v44  ;;  %v3134_v43 = vadd.f32 %v3126_v6, %v3114_v54  ;;  %v3309_v16 = vmul.f32 %v6453_v36, %v6469_v44  ;;  %v3172_v6 = vmul.f32 %v6100_v23, %v6057_v45  ;;  %v1439_v23 = vmul.f32 %v6306_v3, %v6124_v19 }
 0x566   : > { %v3097_v12 = vpop.xlane.xlu0 %3096 }
 0x567   : > { %v6479_v17 = vadd.f32 %v3174_v21, %v3134_v43  ;;  %v3125_v0 = vmul.f32 %v6439_v35, %v3097_v12  ;;  %3330 = vrot.lane.b32.xlu0 %v3309_v16, %s5236_s15  ;;  %v1451_v43 = vmul.f32 %v6300_v37, %v6269_v26 }
 0x569   : > { %v3133_v20 = vadd.f32 %v3125_v0, %v3113_v2  ;;  %v3308_v33 = vmul.f32 %v6453_v36, %v6479_v17  ;;  %v3111_v2 = vmul.f32 %v6293_v11, %v5947_v9 }
 0x56a   : > { %v3094_v55 = vpop.xlane.xlu0 %3093 }
 0x56b   : > { %v6489_v24 = vadd.f32 %v3173_v50, %v3133_v20  ;;  %v3124_v54 = vmul.f32 %v6439_v35, %v3094_v55  ;;  %3328 = vrot.lane.b32.xlu1 %v3308_v33, %s5236_s15  ;;  %v3171_v50 = vmul.f32 %v6102_v13, %v6057_v45  ;;  %v1459_v33 = vadd.f32 %v1451_v43, %v1439_v23  ;;  %v7875_v43 = vld [vmem:[#allocation10_spill] sm:$0xff] }
 0x56c   : > { %v1450_v55 = vmul.f32 %v6300_v37, %v1414_v61  ;;  %v1438_v13 = vmul.f32 %v6306_v3, %v6132_v39  ;;  %v7877_v39 = vld [vmem:[#allocation14_spill] sm:$0xff] }
 0x56d   : > { %7872 = vst [vmem:[#allocation45_spill] sm:$0xff] %v6489_v24  ;;  %v3132_v21 = vadd.f32 %v3124_v54, %v3112_v8  ;;  %v3307_v49 = vmul.f32 %v6453_v36, %v6489_v24 }
 0x56e   : > { %v3091_v16 = vpop.xlane.xlu1 %3090  ;;  %v1458_v23 = vadd.f32 %v1450_v55, %v1438_v13  ;;  %v7878_v13 = vld [vmem:[#allocation16_spill] sm:$0xff] }
 0x56f   : > { %v6501_v12 = vadd.f32 %v3172_v6, %v3132_v21  ;;  %v3123_v0 = vmul.f32 %v6439_v35, %v3091_v16  ;;  %3326 = vrot.lane.b32.xlu1 %v3307_v49, %s5236_s15  ;;  %v3110_v49 = vmul.f32 %v6320_v34, %v5947_v9  ;;  %v3170_v16 = vmul.f32 %v7875_v43, %v6057_v45 }
 0x570   : > { %v1621_v43 = vmul.f32 %v6387_v59, %v6420_v1 }
 0x571   : > { %7873 = vst [vmem:[#allocation46_spill] sm:$0xff] %v6501_v12  ;;  %v3131_v20 = vadd.f32 %v3123_v0, %v3111_v2  ;;  %v3306_v26 = vmul.f32 %v6453_v36, %v6501_v12 }
 0x572   : > { %v1475_v8 = vpop.permute.xlu1 %1474  ;;  %v3088_v54 = vpop.xlane.xlu0 %3087 }
 0x573   : > { %v6514_v6 = vadd.f32 %v3171_v50, %v3131_v20  ;;  %v1503_v21 = vmul.f32 %v6316_v7, %v1475_v8  ;;  %v3122_v19 = vmul.f32 %v6439_v35, %v3088_v54  ;;  %3324 = vrot.lane.b32.xlu0 %v3306_v26, %s5236_s15 }
 0x575   : > { %7874 = vst [vmem:[#allocation47_spill] sm:$0xff] %v6514_v6  ;;  %v6525_v61 = vadd.f32 %v1503_v21, %v1459_v33  ;;  %v3130_v2 = vadd.f32 %v3122_v19, %v3110_v49  ;;  %v3305_v0 = vmul.f32 %v6453_v36, %v6514_v6  ;;  %v1437_v33 = vmul.f32 %v6306_v3, %v7877_v39  ;;  %v6551_v49 = vld [vmem:[%s5711_s28] sm:$0xff]  ;;  %v7883_v39 = vld [vmem:[#allocation32_spill] sm:$0xff] }
 0x576   : > { %v1471_v50 = vpop.permute.xlu1 %1470  ;;  %v1411_v20 = vpop.xlane.xlu0 %1410  ;;  %v7768_v19 = vrot.slane %v6551_v49, 3 }
 0x577   : > { %v6529_v9 = vadd.f32 %v3170_v16, %v3130_v2  ;;  %v1502_v35 = vmul.f32 %v6316_v7, %v1471_v50  ;;  %v1449_v26 = vmul.f32 %v6300_v37, %v1411_v20  ;;  %3322 = vrot.lane.b32.xlu1 %v3305_v0, %s5236_s15  ;;  %4927 = vmatpush3.xpose.msk.msra.mxu0 %vm561_vm0, %v6525_v61  ;;  %v1635_v2 = vsel %vm561_vm0, %v1621_v43, 0.0  ;;  %v7879_v0 = vld [vmem:[#allocation12_spill] sm:$0xff]  ;;  %v7881_v20 = vld [vmem:[#allocation33_spill] sm:$0xff] }
 0x578   : > { %4928 = vmatprep.subr.mxu0 %v7810_v4  ;;  %4914 = vmatmul.mubr.msk.f32.vlgmr.msra.gmra.mxu1 %vm561_vm0, %v7768_v19 }
 0x579   : > { %7876 = vst [vmem:[#allocation10_spill] sm:$0xff] %v6529_v9  ;;  %v6537_v45 = vadd.f32 %v1502_v35, %v1458_v23  ;;  %v3304_v55 = vmul.f32 %v6453_v36, %v6529_v9  ;;  %v1457_v54 = vadd.f32 %v1449_v26, %v1437_v33  ;;  %4951 = vmatprep.mubr.msk.f32.mxu1 %vm5240_vm1, %v7810_v4  ;;  %v7880_v23 = vld [vmem:[#allocation19_spill] sm:$0xff]  ;;  %v7882_v35 = vld [vmem:[#allocation34_spill] sm:$0xff] }
 0x57a   : > { %v1467_v8 = vpop.permute.xlu1 %1466  ;;  %v1622_v36 = vmul.f32 %v6387_v59, %v6411_v52  ;;  %v1649_v50 = vpop.xlane.xlu0 %1648 }
 0x57b   : > { %v1501_v21 = vmul.f32 %v6316_v7, %v1467_v8  ;;  %3320 = vrot.lane.b32.xlu0 %v3304_v55, %s5236_s15  ;;  %4929 = vmatpush3.xpose.msk.msra.mxu0 %vm561_vm0, %v6537_v45 }
 0x57c   : > { %4930 = vmatprep.subr.mxu0 %v7810_v4  ;;  %v1638_v16 = vsel %vm561_vm0, %v1622_v36, 0.0 }
 0x57d   : > { %v6548_v37 = vadd.f32 %v1501_v21, %v1457_v54 }
 0x57e   : > { %v6573_v26 = vpop.xlane.xlu0 %1642 }
 0x57f   : > { %1711 = vperm.xlu0 %5175, %v7878_v13   ;;  %4931 = vmatpush3.xpose.msk.msra.mxu0 %vm561_vm0, %v6548_v37 }
 0x580   : > { %4954 = vmatprep.subr.mxu0 %v7810_v4 }
 0x586   : > { %v6576_v33 = vpop.permute.xlu0 %3683 }
 0x587   : > { %7884 = vst [vmem:[#allocation14_spill] sm:$0xff] %v6576_v33 }
 0x58a   : > { %v6578_v55 = vpop.permute.xlu0 %3671 }
 0x58b   : > { %7885 = vst [vmem:[#allocation16_spill] sm:$0xff] %v6578_v55 }
 0x58e   : > { %v6580_v8 = vpop.permute.xlu0 %3667 }
 0x58f   : > { %7886 = vst [vmem:[#allocation12_spill] sm:$0xff] %v6580_v8 }
 0x592   : > { %v6584_v21 = vpop.permute.xlu0 %3663 }
 0x593   : > { %7887 = vst [vmem:[#allocation19_spill] sm:$0xff] %v6584_v21 }
 0x59b   : > { %1639 = vadd.xlane.f32.xlu1 %v1638_v16  ;;  %v6587_v16 = vpop.permute.xlu0 %3655 }
 0x59c   : > { %7888 = vst [vmem:[#allocation33_spill] sm:$0xff] %v6587_v16 }
 0x59e   : > { %1636 = vadd.xlane.f32.xlu0 %v1635_v2 }
 0x5ab   : > { %v6582_v54 = vpop.xlane.xlu1 %1645 }
 0x5ac   : > { %3679 = vperm.xlu1 %5176, %v7879_v0  }
 0x5b0   : > { %3675 = vperm.xlu1 %5176, %v7880_v23  }
 0x5b4   : > { %3659 = vperm.xlu1 %5176, %v7881_v20  }
 0x5b8   : > { %1707 = vperm.xlu1 %5176, %v7882_v35  }
 0x5bc   : > { %1703 = vperm.xlu1 %5176, %v7883_v39   ;;  %v1620_v39 = vmul.f32 %v6387_v59, %v6525_v61 }
 0x5be   : > { %v1632_v34 = vsel %vm561_vm0, %v1620_v39, 0.0 }
 0x5d1   : > { %v3335_v36 = vpop.permute.xlu1 %3334 }
 0x5d2   : > { %v3365_v43 = vsel %vm561_vm0, %v3335_v36, 0.0 }
 0x5d3   : > { %3366 = vadd.xlane.f32.xlu0 %v3365_v43 }
 0x5d5   : > { %v3333_v20 = vpop.permute.xlu1 %3332 }
 0x5d6   : > { %v3362_v11 = vsel %vm561_vm0, %v3333_v20, 0.0  ;;  %v1618_v20 = vmul.f32 %v6387_v59, %v6548_v37 }
 0x5d8   : > { %v1626_v39 = vsel %vm561_vm0, %v1618_v20, 0.0  ;;  %v6632_v20 = vsub.s32 6, %v5420_v30 }
 0x5d9   : > { %v3331_v2 = vpop.permute.xlu0 %3330 }
 0x5da   : > { %v3359_v23 = vsel %vm561_vm0, %v3331_v2, 0.0 }
 0x5db   : > { %3360 = vadd.xlane.f32.xlu0 %v3359_v23 }
 0x5dd   : > { %v3329_v19 = vpop.permute.xlu1 %3328 }
 0x5de   : > { %v3356_v48 = vsel %vm561_vm0, %v3329_v19, 0.0 }
 0x5e0   : > { %1633 = vadd.xlane.f32.xlu1 %v1632_v34  ;;  %v1619_v34 = vmul.f32 %v6387_v59, %v6537_v45  ;;  %v6616_v59 = vrot.slane %v5483_v14, %v6382_v31 }
 0x5e1   : > { %v3327_v15 = vpop.permute.xlu1 %3326 }
 0x5e2   : > { %v3353_v53 = vsel %vm561_vm0, %v3327_v15, 0.0  ;;  %v6610_v15 = vrot.slane %v5486_v25, %v6382_v31 }
 0x5e4   : > { %3363 = vadd.xlane.f32.xlu1 %v3362_v11  ;;  %v1629_v11 = vsel %vm561_vm0, %v1619_v34, 0.0  ;;  %v1671_v46 = vmul.f32 %v6610_v15, %v6573_v26 }
 0x5e5   : > { %v3325_v36 = vpop.permute.xlu0 %3324 }
 0x5e6   : > { %v3350_v43 = vsel %vm561_vm0, %v3325_v36, 0.0 }
 0x5e7   : > { %3351 = vadd.xlane.f32.xlu0 %v3350_v43 }
 0x5e8   : > { %3357 = vadd.xlane.f32.xlu1 %v3356_v48  ;;  %v6606_v48 = vrot.slane %v5480_v5, %v6382_v31 }
 0x5e9   : > { %v3323_v2 = vpop.permute.xlu1 %3322 }
 0x5ea   : > { %v3347_v23 = vsel %vm561_vm0, %v3323_v2, 0.0  ;;  %v1661_v43 = vmul.f32 %v6606_v48, %v6335_v18  ;;  %v5244_v18 = vmov 6   ;;  %v1659_v8 = vmul.f32 %v6606_v48, %v6367_v56 }
 0x5eb   : > { %3348 = vadd.xlane.f32.xlu0 %v3347_v23  ;;  %5177 = vset.pattern.permute.xlu1 %v5244_v18  ;;  %v1657_v21 = vmul.f32 %v6606_v48, %v6420_v1  ;;  %v1656_v1 = vmul.f32 %v6606_v48, %v6525_v61 }
 0x5ec   : > { %3354 = vadd.xlane.f32.xlu1 %v3353_v53  ;;  %v1673_v53 = vmul.f32 %v6610_v15, %v1649_v50 }
 0x5ed   : > { %v3321_v19 = vpop.permute.xlu0 %3320 }
 0x5ee   : > { %v3344_v36 = vsel %vm561_vm0, %v3321_v19, 0.0  ;;  %v1681_v23 = vadd.f32 %v1673_v53, %v1661_v43  ;;  %v6638_v19 = vrot.slane %v5423_v32, %v6632_v20 }
 0x5f0   : > { %1630 = vadd.xlane.f32.xlu1 %v1629_v11 }
 0x5f4   : > { %1627 = vadd.xlane.f32.xlu1 %v1626_v39 }
 0x5f8   : > { %3345 = vadd.xlane.f32.xlu1 %v3344_v36 }
 0x5fa   : > { %v1712_v2 = vpop.permute.xlu0 %1711 }
 0x5fb   : > { %v1725_v34 = vmul.f32 %v6616_v59, %v1712_v2 }
 0x5fd   : > { %v6621_v11 = vadd.f32 %v1725_v34, %v1681_v23  ;;  %v1672_v23 = vmul.f32 %v6610_v15, %v6582_v54  ;;  %v1660_v34 = vmul.f32 %v6606_v48, %v6362_v60 }
 0x5ff   : > { %4936 = vmatpush3.xpose.msk.msra.mxu1 %vm561_vm0, %v6621_v11  ;;  %v1842_v53 = vmul.f32 %v6638_v19, %v6621_v11  ;;  %v1680_v47 = vadd.f32 %v1672_v23, %v1660_v34 }
 0x600   : > { %4937 = vmatprep.subr.mxu1 %v7810_v4 }
 0x601   : > { %1699 = vperm.xlu0 %5175, %v6340_v40   ;;  %v1864_v43 = vsel %vm561_vm0, %v1842_v53, 0.0 }
 0x605   : > { %1695 = vperm.xlu0 %5175, %v6331_v58  }
 0x609   : > { %1691 = vperm.xlu0 %5175, %v6405_v10  }
 0x60d   : > { %1687 = vperm.xlu0 %5175, %v6416_v57  }
 0x611   : > { %1683 = vperm.xlu0 %5175, %v6425_v42  }
 0x615   : > { %5178 = vset.pattern.permute.xlu0 %v5244_v18 }
 0x624   : > { %v1640_v50 = vpop.xlane.xlu1 %1639 }
 0x628   : > { %v6634_v39 = vpop.permute.xlu1 %3679 }
 0x629   : > { %7889 = vst [vmem:[#allocation34_spill] sm:$0xff] %v6634_v39 }
 0x62c   : > { %v6642_v36 = vpop.permute.xlu1 %3675 }
 0x62d   : > { %7890 = vst [vmem:[#allocation32_spill] sm:$0xff] %v6642_v36 }
 0x630   : > { %v6645_v2 = vpop.permute.xlu1 %3659  ;;  %1865 = vadd.xlane.f32.xlu0 %v1864_v43  ;;  %v1679_v43 = vadd.f32 %v1671_v46, %v1659_v8  ;;  %v1637_v46 = vpop.xlane.xlu0 %1636 }
 0x631   : > { %7891 = vst [vmem:[#allocation48_spill] sm:$0xff] %v6645_v2  ;;  %v1669_v16 = vmul.f32 %v6610_v15, %v1637_v46 }
 0x633   : > { %v1677_v32 = vadd.f32 %v1669_v16, %v1657_v21 }
 0x634   : > { %v1708_v18 = vpop.permute.xlu1 %1707 }
 0x635   : > { %v1724_v28 = vmul.f32 %v6616_v59, %v1708_v18 }
 0x637   : > { %v6656_v53 = vadd.f32 %v1724_v28, %v1680_v47 }
 0x638   : > { %v1704_v2 = vpop.permute.xlu1 %1703 }
 0x639   : > { %v1723_v36 = vmul.f32 %v6616_v59, %v1704_v2  ;;  %4938 = vmatpush3.xpose.msk.msra.mxu1 %vm561_vm0, %v6656_v53  ;;  %v1841_v60 = vmul.f32 %v6638_v19, %v6656_v53 }
 0x63a   : > { %4939 = vmatprep.subr.mxu1 %v7810_v4 }
 0x63b   : > { %v6664_v26 = vadd.f32 %v1723_v36, %v1679_v43  ;;  %v1861_v54 = vsel %vm561_vm0, %v1841_v60, 0.0  ;;  %v1670_v43 = vmul.f32 %v6610_v15, %v1640_v50 }
 0x63c   : > { %1862 = vadd.xlane.f32.xlu1 %v1861_v54  ;;  %v1658_v54 = vmul.f32 %v6606_v48, %v6411_v52 }
 0x63d   : > { %7892 = vst [vmem:[#allocation49_spill] sm:$0xff] %v6664_v26  ;;  %4940 = vmatpush3.xpose.msk.msra.mxu1 %vm561_vm0, %v6664_v26  ;;  %v1840_v28 = vmul.f32 %v6638_v19, %v6664_v26 }
 0x63e   : > { %4941 = vmatprep.subr.mxu1 %v7810_v4 }
 0x63f   : > { %v1858_v47 = vsel %vm561_vm0, %v1840_v28, 0.0 }
 0x640   : > { %1859 = vadd.xlane.f32.xlu0 %v1858_v47  ;;  %v1678_v47 = vadd.f32 %v1670_v43, %v1658_v54 }
 0x65c   : > { %v3367_v8 = vpop.xlane.xlu0 %3366 }
 0x664   : > { %v6673_v2 = vpop.xlane.xlu0 %3360 }
 0x669   : > { %v1634_v56 = vpop.xlane.xlu1 %1633 }
 0x66a   : > { %v1668_v50 = vmul.f32 %v6610_v15, %v1634_v56 }
 0x66c   : > { %v1676_v16 = vadd.f32 %v1668_v50, %v1656_v1 }
 0x66d   : > { %v3364_v36 = vpop.xlane.xlu1 %3363 }
 0x670   : > { %v6675_v23 = vpop.xlane.xlu0 %3351 }
 0x671   : > { %v6677_v34 = vpop.xlane.xlu1 %3357 }
 0x674   : > { %v6679_v18 = vpop.xlane.xlu0 %3348 }
 0x675   : > { %v6682_v60 = vpop.xlane.xlu1 %3354 }
 0x679   : > { %v1631_v33 = vpop.xlane.xlu1 %1630 }
 0x67c   : > { %v1700_v28 = vpop.permute.xlu0 %1699 }
 0x67d   : > { %v1722_v39 = vmul.f32 %v6616_v59, %v1700_v28  ;;  %v1628_v54 = vpop.xlane.xlu1 %1627 }
 0x67f   : > { %v6690_v55 = vadd.f32 %v1722_v39, %v1678_v47  ;;  %v1666_v47 = vmul.f32 %v6610_v15, %v1628_v54 }
 0x680   : > { %v1696_v26 = vpop.permute.xlu0 %1695 }
 0x681   : > { %v1721_v30 = vmul.f32 %v6616_v59, %v1696_v26  ;;  %4942 = vmatpush3.xpose.msk.msra.mxu1 %vm561_vm0, %v6690_v55  ;;  %v1839_v52 = vmul.f32 %v6638_v19, %v6690_v55  ;;  %v1667_v26 = vmul.f32 %v6610_v15, %v1631_v33  ;;  %v3379_v15 = vrot.slane %v5726_v63, %v6064_v62 }
 0x682   : > { %4943 = vmatprep.subr.mxu1 %v7810_v4 }
 0x683   : > { %v6701_v39 = vadd.f32 %v1721_v30, %v1677_v32  ;;  %v1855_v46 = vsel %vm561_vm0, %v1839_v52, 0.0  ;;  %v1655_v30 = vmul.f32 %v6606_v48, %v6537_v45  ;;  %v1654_v45 = vmul.f32 %v6606_v48, %v6548_v37 }
 0x684   : > { %1856 = vadd.xlane.f32.xlu1 %v1855_v46  ;;  %v1692_v21 = vpop.permute.xlu0 %1691  ;;  %v3375_v37 = vmul.f32 %v6446_v27, %v6306_v3  ;;  %v3386_v54 = vmul.f32 %v3379_v15, %v3364_v36  ;;  %v3346_v36 = vpop.xlane.xlu1 %3345 }
 0x685   : > { %v1720_v56 = vmul.f32 %v6616_v59, %v1692_v21  ;;  %4944 = vmatpush3.xpose.msk.msra.mxu1 %vm561_vm0, %v6701_v39  ;;  %v1838_v43 = vmul.f32 %v6638_v19, %v6701_v39  ;;  %v1675_v28 = vadd.f32 %v1667_v26, %v1655_v30  ;;  %v3435_v30 = vmul.f32 %v6280_v22, %v6316_v7 }
 0x686   : > { %4945 = vmatprep.subr.mxu1 %v7810_v4  ;;  %v3561_v22 = vrot.slane %v5451_v51, %v6382_v31 }
 0x687   : > { %v6713_v32 = vadd.f32 %v1720_v56, %v1676_v16  ;;  %v1852_v61 = vsel %vm561_vm0, %v1838_v43, 0.0  ;;  %v1674_v16 = vadd.f32 %v1666_v47, %v1654_v45  ;;  %v3387_v56 = vmul.f32 %v3379_v15, %v3367_v8 }
 0x688   : > { %1853 = vadd.xlane.f32.xlu1 %v1852_v61  ;;  %v1688_v33 = vpop.permute.xlu0 %1687  ;;  %v3374_v61 = vmul.f32 %v6459_v41, %v6306_v3  ;;  %v3385_v47 = vmul.f32 %v3379_v15, %v6673_v2  ;;  %v3373_v45 = vmul.f32 %v6469_v44, %v6306_v3  ;;  %v3383_v2 = vmul.f32 %v3379_v15, %v6682_v60 }
 0x689   : > { %v1719_v50 = vmul.f32 %v6616_v59, %v1688_v33  ;;  %4946 = vmatpush3.xpose.msk.msra.mxu1 %vm561_vm0, %v6713_v32  ;;  %v1837_v52 = vmul.f32 %v6638_v19, %v6713_v32  ;;  %v3395_v62 = vadd.f32 %v3387_v56, %v3375_v37  ;;  %v7894_v37 = vld [vmem:[#allocation18_spill] sm:$0xff]  ;;  %v3382_v60 = vmul.f32 %v3379_v15, %v6675_v23  ;;  %v7896_v23 = vld [vmem:[#allocation43_spill] sm:$0xff] }
 0x68a   : > { %4947 = vmatprep.subr.mxu1 %v7810_v4  ;;  %v3394_v8 = vadd.f32 %v3386_v54, %v3374_v61  ;;  %v3368_v54 = vmul.f32 %v6529_v9, %v6306_v3 }
 0x68b   : > { %v6725_v1 = vadd.f32 %v1719_v50, %v1675_v28  ;;  %v1849_v46 = vsel %vm561_vm0, %v1837_v52, 0.0  ;;  %v6745_v33 = vadd.f32 %v3435_v30, %v3395_v62  ;;  %v3384_v28 = vmul.f32 %v3379_v15, %v6677_v34 }
 0x68c   : > { %1850 = vadd.xlane.f32.xlu0 %v1849_v46  ;;  %v1684_v21 = vpop.permute.xlu0 %1683  ;;  %v3434_v50 = vmul.f32 %v6327_v38, %v6316_v7  ;;  %v3372_v52 = vmul.f32 %v6479_v17, %v6306_v3  ;;  %v3393_v38 = vadd.f32 %v3385_v47, %v3373_v45  ;;  %v3433_v62 = vmul.f32 %v7894_v37, %v6316_v7 }
 0x68d   : > { %v1718_v26 = vmul.f32 %v6616_v59, %v1684_v21  ;;  %4948 = vmatpush3.xpose.msk.msra.mxu1 %vm561_vm0, %v6725_v1  ;;  %v3569_v21 = vmul.f32 %v3561_v22, %v6745_v33  ;;  %v7780_v45 = vrot.slane %v6551_v49, 4 }
 0x68e   : > { %4949 = vmatprep.subr.mxu1 %v7810_v4  ;;  %v6758_v46 = vadd.f32 %v3434_v50, %v3394_v8  ;;  %v3392_v34 = vadd.f32 %v3384_v28, %v3372_v52  ;;  %v6775_v28 = vadd.f32 %v3433_v62, %v3393_v38  ;;  %v7895_v50 = vld [vmem:[#allocation31_spill] sm:$0xff] }
 0x68f   : > { %v6734_v43 = vadd.f32 %v1718_v26, %v1674_v16  ;;  %v3380_v16 = vmul.f32 %v3379_v15, %v3346_v36  ;;  %v7893_v26 = vld [vmem:[#allocation40_spill] sm:$0xff]  ;;  %v3431_v52 = vmul.f32 %v7895_v50, %v6316_v7  ;;  %v3370_v36 = vmul.f32 %v6501_v12, %v6306_v3  ;;  %4933 = vmatmul.mubr.msk.f32.vlgmr.msra.gmra.mxu0 %vm561_vm0, %v7780_v45 }
 0x690   : > { %v3432_v56 = vmul.f32 %v7893_v26, %v6316_v7  ;;  %v3568_v8 = vmul.f32 %v3561_v22, %v6758_v46  ;;  %4970 = vmatprep.mubr.msk.f32.mxu0 %vm5240_vm1, %v7810_v4 }
 0x691   : > { %4950 = vmatpush3.xpose.msk.msra.mxu1 %vm561_vm0, %v6734_v43  ;;  %v3388_v47 = vadd.f32 %v3380_v16, %v3368_v54 }
 0x692   : > { %4973 = vmatprep.subr.mxu1 %v7810_v4  ;;  %v6772_v30 = vadd.f32 %v3432_v56, %v3392_v34  ;;  %v3428_v34 = vmul.f32 %v7896_v23, %v6316_v7  ;;  %v3567_v56 = vmul.f32 %v3561_v22, %v6775_v28 }
 0x694   : > { %v3566_v16 = vmul.f32 %v3561_v22, %v6772_v30  ;;  %v6793_v26 = vadd.f32 %v3428_v34, %v3388_v47 }
 0x696   : > { %v3562_v54 = vmul.f32 %v3561_v22, %v6793_v26 }
 0x699   : > { %1924 = vperm.xlu1 %5177, %v7882_v35   ;;  %v3371_v35 = vmul.f32 %v6489_v24, %v6306_v3 }
 0x69b   : > { %v3391_v61 = vadd.f32 %v3383_v2, %v3371_v35  ;;  %v3390_v2 = vadd.f32 %v3382_v60, %v3370_v36  ;;  %v7898_v60 = vld [vmem:[#allocation42_spill] sm:$0xff] }
 0x69d   : > { %3592 = vrot.lane.b32.xlu1 %v3569_v21, %s5236_s15  ;;  %v3381_v21 = vmul.f32 %v3379_v15, %v6679_v18  ;;  %v6787_v38 = vadd.f32 %v3431_v52, %v3391_v61  ;;  %v3369_v18 = vmul.f32 %v6514_v6, %v6306_v3  ;;  %v3429_v61 = vmul.f32 %v7898_v60, %v6316_v7 }
 0x69e   : > { %v1835_v52 = vmul.f32 %v6638_v19, %v6734_v43 }
 0x69f   : > { %v3389_v37 = vadd.f32 %v3381_v21, %v3369_v18  ;;  %v3565_v62 = vmul.f32 %v3561_v22, %v6787_v38  ;;  %v6834_v21 = vrot.slane %v5480_v5, %v6632_v20  ;;  %v6846_v18 = vrot.slane %v5483_v14, %v6632_v20 }
 0x6a0   : > { %v1843_v36 = vsel %vm561_vm0, %v1835_v52, 0.0 }
 0x6a1   : > { %3590 = vrot.lane.b32.xlu1 %v3568_v8, %s5236_s15  ;;  %v6812_v8 = vadd.f32 %v3429_v61, %v3389_v37  ;;  %v1878_v37 = vmul.f32 %v6834_v21, %v6621_v11 }
 0x6a2   : > { %1928 = vperm.xlu0 %5178, %v7878_v13   ;;  %v7897_v13 = vld [vmem:[#allocation41_spill] sm:$0xff] }
 0x6a3   : > { %v3430_v35 = vmul.f32 %v7897_v13, %v6316_v7  ;;  %v3563_v47 = vmul.f32 %v3561_v22, %v6812_v8  ;;  %v1836_v7 = vmul.f32 %v6638_v19, %v6725_v1  ;;  %v6838_v19 = vrot.slane %v5486_v25, %v6632_v20 }
 0x6a5   : > { %3586 = vrot.lane.b32.xlu1 %v3566_v16, %s5236_s15  ;;  %v6804_v15 = vadd.f32 %v3430_v35, %v3390_v2  ;;  %v1846_v50 = vsel %vm561_vm0, %v1836_v7, 0.0  ;;  %v1877_v7 = vmul.f32 %v6834_v21, %v6656_v53 }
 0x6a6   : > { %3588 = vrot.lane.b32.xlu0 %v3567_v56, %s5236_s15 }
 0x6a7   : > { %v3564_v3 = vmul.f32 %v3561_v22, %v6804_v15 }
 0x6a9   : > { %3584 = vrot.lane.b32.xlu1 %v3565_v62, %s5236_s15 }
 0x6aa   : > { %3578 = vrot.lane.b32.xlu0 %v3562_v54, %s5236_s15 }
 0x6ad   : > { %3582 = vrot.lane.b32.xlu1 %v3564_v3, %s5236_s15 }
 0x6ae   : > { %3941 = vperm.xlu0 %5178, %v6167_v29  }
 0x6b1   : > { %3580 = vrot.lane.b32.xlu1 %v3563_v47, %s5236_s15 }
 0x6b2   : > { %3937 = vperm.xlu0 %5178, %v7879_v0  }
 0x6b9   : > { %v1866_v22 = vpop.xlane.xlu0 %1865 }
 0x6ba   : > { %v1890_v13 = vmul.f32 %v6838_v19, %v1866_v22 }
 0x6bc   : > { %v1898_v60 = vadd.f32 %v1890_v13, %v1878_v37 }
 0x6c5   : > { %v1863_v23 = vpop.xlane.xlu1 %1862 }
 0x6c6   : > { %v1889_v61 = vmul.f32 %v6838_v19, %v1863_v23 }
 0x6c8   : > { %v1897_v11 = vadd.f32 %v1889_v61, %v1877_v7  ;;  %v6882_v7 = vld [vmem:[%s5336_s14 + $0x60] sm:$0xff] }
 0x6c9   : > { %v6830_v2 = vpop.xlane.xlu0 %1859 }
 0x6d5   : > { %1847 = vadd.xlane.f32.xlu1 %v1846_v50 }
 0x6d9   : > { %1844 = vadd.xlane.f32.xlu1 %v1843_v36 }
 0x70d   : > { %v6826_v29 = vpop.xlane.xlu1 %1856 }
 0x711   : > { %v6828_v34 = vpop.xlane.xlu1 %1853 }
 0x712   : > { %v1886_v44 = vmul.f32 %v6838_v19, %v6828_v34 }
 0x715   : > { %v1925_v0 = vpop.permute.xlu1 %1924  ;;  %v6840_v16 = vpop.xlane.xlu0 %1850 }
 0x716   : > { %v1941_v50 = vmul.f32 %v6846_v18, %v1925_v0 }
 0x719   : > { %v3593_v56 = vpop.permute.xlu1 %3592 }
 0x71a   : > { %v3623_v35 = vsel %vm561_vm0, %v3593_v56, 0.0  ;;  %v6862_v56 = vadd.f32 %v1941_v50, %v1897_v11  ;;  %v6887_v50 = vld [vmem:[%s5336_s14 + $0x50] sm:$0xff] }
 0x71b   : > { %3624 = vadd.xlane.f32.xlu0 %v3623_v35  ;;  %7899 = vst [vmem:[#allocation40_spill] sm:$0xff] %v6887_v50 }
 0x71d   : > { %v3591_v62 = vpop.permute.xlu1 %3590  ;;  %v1929_v54 = vpop.permute.xlu0 %1928 }
 0x71e   : > { %v1942_v3 = vmul.f32 %v6846_v18, %v1929_v54  ;;  %v3620_v47 = vsel %vm561_vm0, %v3591_v62, 0.0 }
 0x71f   : > { %3621 = vadd.xlane.f32.xlu0 %v3620_v47  ;;  %v6878_v47 = vld [vmem:[%s5336_s14 + $0x28] sm:$0xff] }
 0x720   : > { %v6856_v52 = vadd.f32 %v1942_v3, %v1898_v60  ;;  %v6873_v3 = vld [vmem:[%s5336_s14 + $0x68] sm:$0xff] }
 0x721   : > { %v3587_v36 = vpop.permute.xlu1 %3586  ;;  %v3589_v22 = vpop.permute.xlu0 %3588 }
 0x722   : > { %4955 = vmatpush3.xpose.msk.msra.mxu0 %vm561_vm0, %v6856_v52  ;;  %v3617_v23 = vsel %vm561_vm0, %v3589_v22, 0.0  ;;  %v3614_v0 = vsel %vm561_vm0, %v3587_v36, 0.0  ;;  %v6892_v36 = vld [vmem:[%s5336_s14 + $0x48] sm:$0xff]  ;;  %v6899_v22 = vld [vmem:[%s5336_s14 + $0x58] sm:$0xff] }
 0x723   : > { %3618 = vadd.xlane.f32.xlu1 %v3617_v23  ;;  %4956 = vmatprep.subr.mxu0 %v7810_v4  ;;  %7900 = vst [vmem:[#allocation18_spill] sm:$0xff] %v6892_v36  ;;  %7901 = vst [vmem:[#allocation31_spill] sm:$0xff] %v6899_v22  ;;  %v7903_v23 = vld [vmem:[#allocation8_spill] sm:$0xff] }
 0x725   : > { %v3585_v13 = vpop.permute.xlu1 %3584  ;;  %v3579_v60 = vpop.permute.xlu0 %3578 }
 0x726   : > { %4957 = vmatpush3.xpose.msk.msra.mxu0 %vm561_vm0, %v6862_v56  ;;  %v3611_v53 = vsel %vm561_vm0, %v3585_v13, 0.0  ;;  %v3602_v61 = vsel %vm561_vm0, %v3579_v60, 0.0 }
 0x727   : > { %3612 = vadd.xlane.f32.xlu0 %v3611_v53  ;;  %3615 = vadd.xlane.f32.xlu1 %v3614_v0 }
 0x728   : > { %4958 = vmatprep.subr.mxu0 %v7810_v4 }
 0x729   : > { %v3583_v35 = vpop.permute.xlu1 %3582 }
 0x72a   : > { %v3608_v37 = vsel %vm561_vm0, %v3583_v35, 0.0 }
 0x72b   : > { %3609 = vadd.xlane.f32.xlu1 %v3608_v37 }
 0x72d   : > { %v3581_v62 = vpop.permute.xlu1 %3580 }
 0x72e   : > { %v3605_v54 = vsel %vm561_vm0, %v3581_v62, 0.0  ;;  %v6917_v62 = vpop.permute.xlu0 %3941 }
 0x72f   : > { %3606 = vadd.xlane.f32.xlu1 %v3605_v54 }
 0x732   : > { %v6921_v60 = vpop.permute.xlu0 %3937 }
 0x733   : > { %3603 = vadd.xlane.f32.xlu1 %v3602_v61 }
 0x73d   : > { %3933 = vperm.xlu0 %5178, %v6873_v3  }
 0x741   : > { %1904 = vperm.xlu0 %5178, %v6416_v57   ;;  %v5213_v57 = vld [vmem:[%s5336_s14 + $0x40] sm:$0xff] }
 0x744   : > { %1920 = vperm.xlu1 %5177, %v6878_v47  }
 0x745   : > { %3929 = vperm.xlu0 %5178, %v6882_v7  }
 0x748   : > { %1916 = vperm.xlu1 %5177, %v6340_v40   ;;  %v7902_v40 = vld [vmem:[#allocation7_spill] sm:$0xff] }
 0x749   : > { %3921 = vperm.xlu0 %5178, %v6887_v50   ;;  %v6903_v11 = vsub.s32 7, %v7902_v40  ;;  %v1875_v50 = vmul.f32 %v6834_v21, %v6690_v55 }
 0x74c   : > { %1912 = vperm.xlu1 %5177, %v6331_v58   ;;  %v6907_v58 = vrot.slane %v7903_v23, %v6903_v11 }
 0x74d   : > { %3917 = vperm.xlu0 %5178, %v6892_v36   ;;  %v1887_v36 = vmul.f32 %v6838_v19, %v6826_v29 }
 0x74e   : > { %v2059_v13 = vmul.f32 %v6907_v58, %v6856_v52 }
 0x750   : > { %1908 = vperm.xlu1 %5177, %v6405_v10   ;;  %v2081_v10 = vsel %vm561_vm0, %v2059_v13, 0.0  ;;  %v1888_v13 = vmul.f32 %v6838_v19, %v6830_v2 }
 0x751   : > { %3913 = vperm.xlu0 %5178, %v5213_v57  }
 0x754   : > { %1900 = vperm.xlu1 %5177, %v6425_v42   ;;  %v2058_v42 = vmul.f32 %v6907_v58, %v6862_v56 }
 0x756   : > { %v2078_v53 = vsel %vm561_vm0, %v2058_v42, 0.0  ;;  %v7904_v42 = vld [vmem:[#allocation49_spill] sm:$0xff] }
 0x758   : > { %3925 = vperm.xlu1 %5177, %v6899_v22   ;;  %v1895_v22 = vadd.f32 %v1887_v36, %v1875_v50  ;;  %v1885_v36 = vmul.f32 %v6838_v19, %v6840_v16 }
 0x75e   : > { %v1848_v0 = vpop.xlane.xlu1 %1847 }
 0x762   : > { %v1845_v35 = vpop.xlane.xlu1 %1844 }
 0x770   : > { %2082 = vadd.xlane.f32.xlu0 %v2081_v10 }
 0x77c   : > { %2079 = vadd.xlane.f32.xlu1 %v2078_v53  ;;  %v1876_v53 = vmul.f32 %v6834_v21, %v7904_v42 }
 0x77e   : > { %v1896_v6 = vadd.f32 %v1888_v13, %v1876_v53 }
 0x7a4   : > { %v3625_v57 = vpop.xlane.xlu0 %3624 }
 0x7a8   : > { %v6931_v10 = vpop.xlane.xlu0 %3621 }
 0x7ac   : > { %v6915_v37 = vpop.xlane.xlu1 %3618 }
 0x7b0   : > { %v6919_v54 = vpop.xlane.xlu1 %3615  ;;  %v6938_v12 = vpop.xlane.xlu0 %3612 }
 0x7b4   : > { %v6923_v61 = vpop.xlane.xlu1 %3609 }
 0x7b8   : > { %v6925_v40 = vpop.xlane.xlu1 %3606  ;;  %v6951_v29 = vpop.permute.xlu0 %3933 }
 0x7bc   : > { %v6927_v23 = vpop.xlane.xlu1 %3603 }
 0x7c0   : > { %v1921_v45 = vpop.permute.xlu1 %1920 }
 0x7c1   : > { %v1940_v9 = vmul.f32 %v6846_v18, %v1921_v45 }
 0x7c3   : > { %v6942_v24 = vadd.f32 %v1940_v9, %v1896_v6  ;;  %v1874_v6 = vmul.f32 %v6834_v21, %v6701_v39  ;;  %v1873_v39 = vmul.f32 %v6834_v21, %v6713_v32  ;;  %v1872_v32 = vmul.f32 %v6834_v21, %v6725_v1 }
 0x7c4   : > { %v1917_v2 = vpop.permute.xlu1 %1916 }
 0x7c5   : > { %v1939_v42 = vmul.f32 %v6846_v18, %v1917_v2  ;;  %4959 = vmatpush3.xpose.msk.msra.mxu0 %vm561_vm0, %v6942_v24  ;;  %v2057_v45 = vmul.f32 %v6907_v58, %v6942_v24  ;;  %v1894_v50 = vadd.f32 %v1886_v44, %v1874_v6  ;;  %v1905_v2 = vpop.permute.xlu0 %1904 }
 0x7c6   : > { %4960 = vmatprep.subr.mxu0 %v7810_v4 }
 0x7c7   : > { %v6956_v9 = vadd.f32 %v1939_v42, %v1895_v22  ;;  %v2075_v55 = vsel %vm561_vm0, %v2057_v45, 0.0  ;;  %v1893_v42 = vadd.f32 %v1885_v36, %v1873_v39  ;;  %v1884_v45 = vmul.f32 %v6838_v19, %v1848_v0 }
 0x7c8   : > { %2076 = vadd.xlane.f32.xlu1 %v2075_v55  ;;  %v1913_v34 = vpop.permute.xlu1 %1912  ;;  %v3637_v39 = vrot.slane %v5726_v63, %v6382_v31 }
 0x7c9   : > { %v1938_v13 = vmul.f32 %v6846_v18, %v1913_v34  ;;  %4961 = vmatpush3.xpose.msk.msra.mxu0 %vm561_vm0, %v6956_v9  ;;  %v2056_v53 = vmul.f32 %v6907_v58, %v6956_v9  ;;  %v1936_v34 = vmul.f32 %v6846_v18, %v1905_v2 }
 0x7ca   : > { %4962 = vmatprep.subr.mxu0 %v7810_v4  ;;  %v3645_v2 = vmul.f32 %v3637_v39, %v3625_v57 }
 0x7cb   : > { %v6969_v22 = vadd.f32 %v1938_v13, %v1894_v50  ;;  %v2072_v44 = vsel %vm561_vm0, %v2056_v53, 0.0  ;;  %v1892_v13 = vadd.f32 %v1884_v45, %v1872_v32  ;;  %v1883_v53 = vmul.f32 %v6838_v19, %v1845_v35 }
 0x7cc   : > { %2073 = vadd.xlane.f32.xlu0 %v2072_v44  ;;  %v1909_v16 = vpop.permute.xlu1 %1908  ;;  %v1871_v44 = vmul.f32 %v6834_v21, %v6734_v43  ;;  %v3633_v35 = vmul.f32 %v6745_v33, %v6606_v48  ;;  %v3642_v45 = vmul.f32 %v3637_v39, %v6919_v54  ;;  %v3630_v32 = vmul.f32 %v6772_v30, %v6606_v48 }
 0x7cd   : > { %v1937_v6 = vmul.f32 %v6846_v18, %v1909_v16  ;;  %4963 = vmatpush3.xpose.msk.msra.mxu0 %vm561_vm0, %v6969_v22  ;;  %v2055_v55 = vmul.f32 %v6907_v58, %v6969_v22  ;;  %v6995_v16 = vadd.f32 %v1936_v34, %v1892_v13  ;;  %v3644_v54 = vmul.f32 %v3637_v39, %v6931_v10  ;;  %v7906_v13 = vld [vmem:[#allocation16_spill] sm:$0xff] }
 0x7ce   : > { %4964 = vmatprep.subr.mxu0 %v7810_v4  ;;  %v1891_v31 = vadd.f32 %v1883_v53, %v1871_v44  ;;  %v3653_v43 = vadd.f32 %v3645_v2, %v3633_v35  ;;  %v3690_v53 = vmul.f32 %v7906_v13, %v6616_v59  ;;  %v3819_v44 = vrot.slane %v5451_v51, %v6632_v20 }
 0x7cf   : > { %v6982_v50 = vadd.f32 %v1937_v6, %v1893_v42  ;;  %v2069_v36 = vsel %vm561_vm0, %v2055_v55, 0.0  ;;  %v7905_v6 = vld [vmem:[#allocation14_spill] sm:$0xff]  ;;  %v3632_v2 = vmul.f32 %v6758_v46, %v6606_v48  ;;  %v3643_v35 = vmul.f32 %v3637_v39, %v6915_v37 }
 0x7d0   : > { %2070 = vadd.xlane.f32.xlu1 %v2069_v36  ;;  %v1901_v0 = vpop.permute.xlu1 %1900  ;;  %v3693_v55 = vmul.f32 %v7905_v6, %v6616_v59  ;;  %v3650_v36 = vadd.f32 %v3642_v45, %v3630_v32  ;;  %v3626_v6 = vmul.f32 %v6793_v26, %v6606_v48 }
 0x7d1   : > { %4965 = vmatpush3.xpose.msk.msra.mxu0 %vm561_vm0, %v6982_v50  ;;  %v2054_v1 = vmul.f32 %v6907_v58, %v6982_v50  ;;  %v1935_v42 = vmul.f32 %v6846_v18, %v1901_v0  ;;  %v3640_v0 = vmul.f32 %v3637_v39, %v6923_v61  ;;  %v3652_v10 = vadd.f32 %v3644_v54, %v3632_v2  ;;  %v7042_v54 = vpop.permute.xlu0 %3929  ;;  %v7909_v2 = vld [vmem:[#allocation33_spill] sm:$0xff] }
 0x7d2   : > { %4966 = vmatprep.subr.mxu0 %v7810_v4  ;;  %v7014_v34 = vadd.f32 %v3693_v55, %v3653_v43  ;;  %v7907_v43 = vld [vmem:[#allocation19_spill] sm:$0xff]  ;;  %v7908_v55 = vld [vmem:[#allocation34_spill] sm:$0xff] }
 0x7d3   : > { %v2066_v19 = vsel %vm561_vm0, %v2054_v1, 0.0  ;;  %v7005_v57 = vadd.f32 %v1935_v42, %v1891_v31  ;;  %v3628_v1 = vmul.f32 %v6804_v15, %v6606_v48  ;;  %v7026_v42 = vadd.f32 %v3690_v53, %v3650_v36 }
 0x7d4   : > { %2067 = vadd.xlane.f32.xlu0 %v2066_v19  ;;  %v3638_v31 = vmul.f32 %v3637_v39, %v6927_v23  ;;  %v3827_v61 = vmul.f32 %v3819_v44, %v7014_v34  ;;  %v3688_v45 = vmul.f32 %v7907_v43, %v6616_v59  ;;  %v3692_v32 = vmul.f32 %v7908_v55, %v6616_v59  ;;  %v7910_v43 = vld [vmem:[#allocation32_spill] sm:$0xff] }
 0x7d5   : > { %4967 = vmatpush3.xpose.msk.msra.mxu0 %vm561_vm0, %v6995_v16  ;;  %v3648_v19 = vadd.f32 %v3640_v0, %v3628_v1  ;;  %v3631_v36 = vmul.f32 %v6775_v28, %v6606_v48  ;;  %v3824_v37 = vmul.f32 %v3819_v44, %v7026_v42  ;;  %v3641_v1 = vmul.f32 %v3637_v39, %v6938_v12 }
 0x7d6   : > { %4968 = vmatprep.subr.mxu0 %v7810_v4  ;;  %v3646_v0 = vadd.f32 %v3638_v31, %v3626_v6  ;;  %v7045_v13 = vadd.f32 %v3692_v32, %v3652_v10  ;;  %v3691_v55 = vmul.f32 %v7910_v43, %v6616_v59  ;;  %v3639_v12 = vmul.f32 %v3637_v39, %v6925_v40  ;;  %v7062_v32 = vpop.permute.xlu0 %3921  ;;  %v7912_v39 = vld [vmem:[#allocation48_spill] sm:$0xff] }
 0x7d7   : > { %v7040_v23 = vadd.f32 %v3688_v45, %v3648_v19  ;;  %v3651_v53 = vadd.f32 %v3643_v35, %v3631_v36  ;;  %v3629_v19 = vmul.f32 %v6787_v38, %v6606_v48  ;;  %v7911_v36 = vld [vmem:[#allocation12_spill] sm:$0xff] }
 0x7d8   : > { %v3826_v6 = vmul.f32 %v3819_v44, %v7045_v13 }
 0x7d9   : > { %4969 = vmatpush3.xpose.msk.msra.mxu0 %vm561_vm0, %v7005_v57  ;;  %v3822_v45 = vmul.f32 %v3819_v44, %v7040_v23  ;;  %v7058_v10 = vadd.f32 %v3691_v55, %v3651_v53  ;;  %v3649_v35 = vadd.f32 %v3641_v1, %v3629_v19 }
 0x7da   : > { %4992 = vmatprep.subr.mxu0 %v7810_v4  ;;  %v7078_v43 = vpop.permute.xlu0 %3917 }
 0x7db   : > { %v3825_v40 = vmul.f32 %v3819_v44, %v7058_v10 }
 0x7e1   : > { %3850 = vrot.lane.b32.xlu1 %v3827_v61, %s5236_s15  ;;  %v3686_v61 = vmul.f32 %v7909_v2, %v6616_v59 }
 0x7e3   : > { %v7055_v31 = vadd.f32 %v3686_v61, %v3646_v0  ;;  %v3627_v0 = vmul.f32 %v6812_v8, %v6606_v48  ;;  %v3687_v61 = vmul.f32 %v7912_v39, %v6616_v59 }
 0x7e5   : > { %3844 = vrot.lane.b32.xlu1 %v3824_v37, %s5236_s15  ;;  %v3689_v37 = vmul.f32 %v7911_v36, %v6616_v59  ;;  %v3820_v53 = vmul.f32 %v3819_v44, %v7055_v31  ;;  %v3647_v1 = vadd.f32 %v3639_v12, %v3627_v0  ;;  %v7094_v59 = vrot.slane %v5486_v25, %v6903_v11  ;;  %v7101_v0 = vpop.permute.xlu1 %3925 }
 0x7e6   : > { %v5245_v12 = vmov 7  }
 0x7e7   : > { %v7071_v2 = vadd.f32 %v3689_v37, %v3649_v35  ;;  %v7080_v55 = vadd.f32 %v3687_v61, %v3647_v1  ;;  %v7090_v35 = vrot.slane %v5480_v5, %v6903_v11  ;;  %5179 = vset.pattern.permute.xlu1 %v5245_v12  ;;  %5180 = vset.pattern.permute.xlu0 %v5245_v12 }
 0x7e9   : > { %3840 = vrot.lane.b32.xlu1 %v3822_v45, %s5236_s15  ;;  %v3823_v48 = vmul.f32 %v3819_v44, %v7071_v2  ;;  %v3821_v19 = vmul.f32 %v3819_v44, %v7080_v55  ;;  %v7085_v45 = vpop.permute.xlu0 %3913  ;;  %v2095_v36 = vmul.f32 %v7090_v35, %v6856_v52  ;;  %v2094_v5 = vmul.f32 %v7090_v35, %v6862_v56 }
 0x7ea   : > { %3848 = vrot.lane.b32.xlu0 %v3826_v6, %s5236_s15  ;;  %v2093_v61 = vmul.f32 %v7090_v35, %v6942_v24  ;;  %v2092_v56 = vmul.f32 %v7090_v35, %v6956_v9 }
 0x7ed   : > { %3836 = vrot.lane.b32.xlu1 %v3820_v53, %s5236_s15 }
 0x7ee   : > { %3846 = vrot.lane.b32.xlu0 %v3825_v40, %s5236_s15  ;;  %v2053_v40 = vmul.f32 %v6907_v58, %v6995_v16 }
 0x7f0   : > { %v2063_v39 = vsel %vm561_vm0, %v2053_v40, 0.0 }
 0x7f2   : > { %3842 = vrot.lane.b32.xlu0 %v3823_v48, %s5236_s15 }
 0x7f6   : > { %3838 = vrot.lane.b32.xlu0 %v3821_v19, %s5236_s15 }
 0x7f9   : > { %v2083_v6 = vpop.xlane.xlu0 %2082 }
 0x7fa   : > { %v2107_v44 = vmul.f32 %v7094_v59, %v2083_v6 }
 0x7fc   : > { %v7099_v37 = vadd.f32 %v2107_v44, %v2095_v36 }
 0x805   : > { %v2080_v53 = vpop.xlane.xlu1 %2079 }
 0x806   : > { %v2106_v25 = vmul.f32 %v7094_v59, %v2080_v53  ;;  %v2091_v53 = vmul.f32 %v7090_v35, %v6969_v22 }
 0x808   : > { %v7106_v1 = vadd.f32 %v2106_v25, %v2094_v5 }
 0x811   : > { %2064 = vadd.xlane.f32.xlu1 %v2063_v39  ;;  %v2090_v39 = vmul.f32 %v7090_v35, %v6982_v50 }
 0x851   : > { %v2077_v52 = vpop.xlane.xlu1 %2076 }
 0x852   : > { %v2105_v48 = vmul.f32 %v7094_v59, %v2077_v52 }
 0x854   : > { %v7114_v19 = vadd.f32 %v2105_v48, %v2093_v61 }
 0x855   : > { %v2074_v12 = vpop.xlane.xlu0 %2073 }
 0x856   : > { %v2104_v6 = vmul.f32 %v7094_v59, %v2074_v12 }
 0x858   : > { %v7119_v36 = vadd.f32 %v2104_v6, %v2092_v56 }
 0x859   : > { %v2071_v44 = vpop.xlane.xlu1 %2070 }
 0x85a   : > { %v2103_v5 = vmul.f32 %v7094_v59, %v2071_v44 }
 0x85c   : > { %v7124_v25 = vadd.f32 %v2103_v5, %v2091_v53 }
 0x85d   : > { %v3851_v24 = vpop.permute.xlu1 %3850  ;;  %v2068_v40 = vpop.xlane.xlu0 %2067 }
 0x85e   : > { %v2102_v52 = vmul.f32 %v7094_v59, %v2068_v40  ;;  %v3881_v9 = vsel %vm561_vm0, %v3851_v24, 0.0 }
 0x85f   : > { %3882 = vadd.xlane.f32.xlu1 %v3881_v9 }
 0x860   : > { %v7130_v61 = vadd.f32 %v2102_v52, %v2090_v39 }
 0x861   : > { %v3845_v48 = vpop.permute.xlu1 %3844  ;;  %v3849_v12 = vpop.permute.xlu0 %3848 }
 0x862   : > { %v3878_v22 = vsel %vm561_vm0, %v3849_v12, 0.0  ;;  %v3872_v40 = vsel %vm561_vm0, %v3845_v48, 0.0  ;;  %v2052_v12 = vmul.f32 %v6907_v58, %v7005_v57  ;;  %v5215_v48 = vld [vmem:[%s5336_s14 + $0x38] sm:$0xff]  ;;  %v5217_v58 = vld [vmem:[%s5336_s14 + $0x20] sm:$0xff] }
 0x863   : > { %3879 = vadd.xlane.f32.xlu0 %v3878_v22 }
 0x864   : > { %v2060_v22 = vsel %vm561_vm0, %v2052_v12, 0.0 }
 0x865   : > { %v3841_v56 = vpop.permute.xlu1 %3840  ;;  %v3847_v6 = vpop.permute.xlu0 %3846 }
 0x866   : > { %v3866_v44 = vsel %vm561_vm0, %v3841_v56, 0.0  ;;  %v3875_v53 = vsel %vm561_vm0, %v3847_v6, 0.0  ;;  %v5216_v56 = vld [vmem:[%s5336_s14 + $0x30] sm:$0xff]  ;;  %v7790_v6 = vrot.slane %v6551_v49, 5 }
 0x867   : > { %3867 = vadd.xlane.f32.xlu1 %v3866_v44  ;;  %3876 = vadd.xlane.f32.xlu0 %v3875_v53  ;;  %v5218_v44 = vld [vmem:[%s5336_s14 + $0x10] sm:$0xff]  ;;  %v5219_v53 = vld [vmem:[%s5336_s14 + $0x8] sm:$0xff] }
 0x868   : > { %4952 = vmatmul.mubr.msk.f32.vlgmr.msra.gmra.mxu1 %vm561_vm0, %v7790_v6 }
 0x869   : > { %v3837_v50 = vpop.permute.xlu1 %3836  ;;  %v3843_v5 = vpop.permute.xlu0 %3842  ;;  %4989 = vmatprep.mubr.msk.f32.mxu1 %vm5240_vm1, %v7810_v4 }
 0x86a   : > { %v3860_v24 = vsel %vm561_vm0, %v3837_v50, 0.0  ;;  %v3869_v39 = vsel %vm561_vm0, %v3843_v5, 0.0  ;;  %v7155_v50 = vld [vmem:[%s5711_s28] sm:$0xff] }
 0x86b   : > { %3861 = vadd.xlane.f32.xlu1 %v3860_v24  ;;  %3873 = vadd.xlane.f32.xlu0 %v3872_v40  ;;  %v7789_v5 = vrot.slane %v7155_v50, 6  ;;  %v7913_v24 = vld [vmem:[#allocation25_spill] sm:$0xff] }
 0x86c   : > { %v5221_v40 = vld [vmem:[%s5336_s14 + $0x18] sm:$0xff] }
 0x86d   : > { %v3839_v52 = vpop.permute.xlu0 %3838  ;;  %4971 = vmatmul.mubr.msk.f32.vlgmr.msra.gmra.mxu0 %vm561_vm0, %v7789_v5 }
 0x86e   : > { %v3863_v9 = vsel %vm561_vm0, %v3839_v52, 0.0  ;;  %5008 = vmatprep.mubr.msk.f32.mxu0 %vm5240_vm1, %v7810_v4  ;;  %v7915_v52 = vld [vmem:[#allocation21_spill] sm:$0xff] }
 0x86f   : > { %3870 = vadd.xlane.f32.xlu0 %v3869_v39  ;;  %v7914_v39 = vld [vmem:[#allocation4_spill] sm:$0xff] }
 0x873   : > { %3864 = vadd.xlane.f32.xlu0 %v3863_v9  ;;  %v7916_v9 = vld [vmem:[#allocation6_spill] sm:$0xff] }
 0x877   : > { %2061 = vadd.xlane.f32.xlu0 %v2060_v22  ;;  %v2089_v22 = vmul.f32 %v7090_v35, %v6995_v16  ;;  %v7922_v16 = vld [vmem:[#allocation3_spill] sm:$0xff] }
 0x87c   : > { %2145 = vperm.xlu1 %5179, %v5215_v48  }
 0x880   : > { %2141 = vperm.xlu1 %5179, %v5216_v56   ;;  %v7917_v56 = vld [vmem:[#allocation5_spill] sm:$0xff] }
 0x884   : > { %2133 = vperm.xlu1 %5179, %v5217_v58  }
 0x888   : > { %2125 = vperm.xlu1 %5179, %v5218_v44   ;;  %v7918_v44 = vld [vmem:[#allocation2_spill] sm:$0xff] }
 0x88c   : > { %2121 = vperm.xlu1 %5179, %v5219_v53   ;;  %v7919_v53 = vld [vmem:[#allocation22_spill] sm:$0xff] }
 0x88d   : > { %2137 = vperm.xlu0 %5180, %v6878_v47   ;;  %v5222_v47 = vld [vmem:[%s5336_s14] sm:$0xff] }
 0x890   : > { %2436 = vrot.lane.b32.xlu1 %v7913_v24, %s5236_s15  ;;  %v7920_v24 = vld [vmem:[#allocation9_spill] sm:$0xff] }
 0x891   : > { %2129 = vperm.xlu0 %5180, %v5221_v40   ;;  %v7921_v40 = vld [vmem:[#allocation26_spill] sm:$0xff] }
 0x894   : > { %2694 = vrot.lane.b32.xlu1 %v7914_v39, %s5236_s15  ;;  %v7923_v39 = vld [vmem:[#allocation27_spill] sm:$0xff] }
 0x895   : > { %2117 = vperm.xlu0 %5180, %v5222_v47   ;;  %v7924_v47 = vld [vmem:[#allocation24_spill] sm:$0xff] }
 0x898   : > { %2434 = vrot.lane.b32.xlu1 %v7915_v52, %s5236_s15  ;;  %v7925_v52 = vld [vmem:[#allocation23_spill] sm:$0xff] }
 0x899   : > { %2690 = vrot.lane.b32.xlu0 %v7916_v9, %s5236_s15  ;;  %v7926_v9 = vld [vmem:[#allocation13_spill] sm:$0xff] }
 0x89a   : > { %v2065_v12 = vpop.xlane.xlu1 %2064 }
 0x89b   : > { %v2101_v48 = vmul.f32 %v7094_v59, %v2065_v12  ;;  %v7927_v12 = vld [vmem:[#allocation28_spill] sm:$0xff] }
 0x89c   : > { %2692 = vrot.lane.b32.xlu1 %v7917_v56, %s5236_s15  ;;  %v7929_v56 = vld [vmem:[#allocation17_spill] sm:$0xff] }
 0x89d   : > { %v7178_v58 = vadd.f32 %v2101_v48, %v2089_v22  ;;  %2688 = vrot.lane.b32.xlu0 %v7918_v44, %s5236_s15  ;;  %v7928_v22 = vld [vmem:[#allocation15_spill] sm:$0xff]  ;;  %v5223_v48 = vld [vmem:[%s5336_s14 + $0x78] sm:$0xff]  ;;  %v7209_v44 = vrot.slane %v5726_v63, %v6632_v20  ;;  %v7223_v20 = vrot.slane %v5451_v51, %v6903_v11  ;;  %v3949_v51 = vmul.f32 %v6951_v29, %v6846_v18 }
 0x89e   : > { %v3948_v29 = vmul.f32 %v7042_v54, %v6846_v18  ;;  %v3947_v54 = vmul.f32 %v7101_v0, %v6846_v18 }
 0x8a0   : > { %2432 = vrot.lane.b32.xlu1 %v7919_v53, %s5236_s15 }
 0x8a1   : > { %2686 = vrot.lane.b32.xlu0 %v7920_v24, %s5236_s15  ;;  %v3891_v24 = vmul.f32 %v7014_v34, %v6834_v21 }
 0x8a4   : > { %2430 = vrot.lane.b32.xlu1 %v7921_v40, %s5236_s15 }
 0x8a5   : > { %2684 = vrot.lane.b32.xlu0 %v7922_v16, %s5236_s15  ;;  %v3951_v16 = vmul.f32 %v6917_v62, %v6846_v18 }
 0x8a8   : > { %2428 = vrot.lane.b32.xlu1 %v7923_v39, %s5236_s15 }
 0x8a9   : > { %2424 = vrot.lane.b32.xlu0 %v7924_v47, %s5236_s15 }
 0x8ac   : > { %2426 = vrot.lane.b32.xlu1 %v7925_v52, %s5236_s15 }
 0x8ad   : > { %2682 = vrot.lane.b32.xlu0 %v7926_v9, %s5236_s15  ;;  %v3890_v9 = vmul.f32 %v7045_v13, %v6834_v21 }
 0x8b0   : > { %2422 = vrot.lane.b32.xlu1 %v7927_v12, %s5236_s15 }
 0x8b1   : > { %2680 = vrot.lane.b32.xlu0 %v7928_v22, %s5236_s15  ;;  %v3950_v22 = vmul.f32 %v6921_v60, %v6846_v18 }
 0x8b5   : > { %4199 = vperm.xlu0 %5180, %v5223_v48  }
 0x8b9   : > { %2412 = vrot.lane.b32.xlu0 %v7155_v50, %s5236_s15 }
 0x8bd   : > { %2952 = vrot.lane.b32.xlu0 %v7929_v56, %s5236_s15 }
 0x8e8   : > { %v3883_v53 = vpop.xlane.xlu1 %3882 }
 0x8e9   : > { %v3903_v40 = vmul.f32 %v7209_v44, %v3883_v53 }
 0x8eb   : > { %v3911_v39 = vadd.f32 %v3903_v40, %v3891_v24  ;;  %v3889_v40 = vmul.f32 %v7058_v10, %v6834_v21 }
 0x8ec   : > { %v3880_v47 = vpop.xlane.xlu0 %3879 }
 0x8ed   : > { %v7216_v52 = vadd.f32 %v3951_v16, %v3911_v39  ;;  %v3902_v12 = vmul.f32 %v7209_v44, %v3880_v47 }
 0x8ef   : > { %v3910_v48 = vadd.f32 %v3902_v12, %v3890_v9  ;;  %v4085_v62 = vmul.f32 %v7223_v20, %v7216_v52  ;;  %v7241_v12 = vrot.slane %v5483_v14, %v6903_v11 }
 0x8f0   : > { %v3868_v56 = vpop.xlane.xlu1 %3867  ;;  %v3877_v53 = vpop.xlane.xlu0 %3876 }
 0x8f1   : > { %v7229_v24 = vadd.f32 %v3950_v22, %v3910_v48  ;;  %v3901_v16 = vmul.f32 %v7209_v44, %v3877_v53  ;;  %4108 = vrot.lane.b32.xlu1 %v4085_v62, %s5236_s15  ;;  %v3888_v48 = vmul.f32 %v7026_v42, %v6834_v21  ;;  %v3898_v0 = vmul.f32 %v7209_v44, %v3868_v56 }
 0x8f3   : > { %v3909_v39 = vadd.f32 %v3901_v16, %v3889_v40  ;;  %v4084_v60 = vmul.f32 %v7223_v20, %v7229_v24 }
 0x8f4   : > { %v3862_v47 = vpop.xlane.xlu1 %3861  ;;  %v3874_v9 = vpop.xlane.xlu0 %3873 }
 0x8f5   : > { %v7243_v22 = vadd.f32 %v3949_v51, %v3909_v39  ;;  %v3900_v62 = vmul.f32 %v7209_v44, %v3874_v9  ;;  %4106 = vrot.lane.b32.xlu0 %v4084_v60, %s5236_s15  ;;  %v3887_v39 = vmul.f32 %v7071_v2, %v6834_v21 }
 0x8f7   : > { %v3908_v53 = vadd.f32 %v3900_v62, %v3888_v48  ;;  %v4083_v40 = vmul.f32 %v7223_v20, %v7243_v22 }
 0x8f8   : > { %v2146_v16 = vpop.permute.xlu1 %2145  ;;  %v3871_v5 = vpop.xlane.xlu0 %3870 }
 0x8f9   : > { %v7253_v6 = vadd.f32 %v3948_v29, %v3908_v53  ;;  %v2159_v51 = vmul.f32 %v7241_v12, %v2146_v16  ;;  %v3899_v9 = vmul.f32 %v7209_v44, %v3871_v5  ;;  %4104 = vrot.lane.b32.xlu0 %v4083_v40, %s5236_s15 }
 0x8fb   : > { %v2167_v60 = vadd.f32 %v2159_v51, %v7099_v37  ;;  %v3907_v48 = vadd.f32 %v3899_v9, %v3887_v39  ;;  %v4082_v62 = vmul.f32 %v7223_v20, %v7253_v6  ;;  %v3886_v39 = vmul.f32 %v7040_v23, %v6834_v21 }
 0x8fc   : > { %v2142_v29 = vpop.permute.xlu1 %2141  ;;  %v3865_v53 = vpop.xlane.xlu0 %3864  ;;  %v2088_v9 = vmul.f32 %v7090_v35, %v7005_v57  ;;  %v3885_v57 = vmul.f32 %v7080_v55, %v6834_v21 }
 0x8fd   : > { %v7265_v16 = vadd.f32 %v3947_v54, %v3907_v48  ;;  %v2158_v14 = vmul.f32 %v7241_v12, %v2142_v29  ;;  %4102 = vrot.lane.b32.xlu1 %v4082_v62, %s5236_s15  ;;  %4974 = vmatpush3.xpose.msk.msra.mxu1 %vm561_vm0, %v2167_v60  ;;  %v5224_v60 = vld [vmem:[%s5336_s14 + $0x70] sm:$0xff]  ;;  %v3946_v62 = vmul.f32 %v7062_v32, %v6846_v18 }
 0x8fe   : > { %4975 = vmatprep.subr.mxu1 %v7810_v4  ;;  %v7931_v29 = vld [vmem:[#allocation20_spill] sm:$0xff]  ;;  %v3945_v32 = vmul.f32 %v7078_v43, %v6846_v18 }
 0x8ff   : > { %v2166_v37 = vadd.f32 %v2158_v14, %v7106_v1  ;;  %v4081_v5 = vmul.f32 %v7223_v20, %v7265_v16  ;;  %v3906_v14 = vadd.f32 %v3898_v0, %v3886_v39  ;;  %v3897_v1 = vmul.f32 %v7209_v44, %v3865_v53 }
 0x900   : > { %v2134_v40 = vpop.permute.xlu1 %2133  ;;  %v2062_v51 = vpop.xlane.xlu0 %2061  ;;  %v3896_v53 = vmul.f32 %v7209_v44, %v3862_v47 }
 0x901   : > { %v2100_v54 = vmul.f32 %v7094_v59, %v2062_v51  ;;  %4195 = vperm.xlu1 %5179, %v5224_v60   ;;  %4100 = vrot.lane.b32.xlu0 %v4081_v5, %s5236_s15  ;;  %v7930_v59 = vld [vmem:[#allocation35_spill] sm:$0xff]  ;;  %v7296_v0 = vadd.f32 %v3946_v62, %v3906_v14  ;;  %v3905_v5 = vadd.f32 %v3897_v1, %v3885_v57 }
 0x902   : > { %4976 = vmatpush3.xpose.msk.msra.mxu1 %vm561_vm0, %v2166_v37  ;;  %v7932_v37 = vrot.slane %v7931_v29, 1  ;;  %v2156_v43 = vmul.f32 %v7241_v12, %v2134_v40  ;;  %v3944_v62 = vmul.f32 %v7085_v45, %v6846_v18 }
 0x903   : > { %v7284_v56 = vadd.f32 %v2100_v54, %v2088_v9  ;;  %4977 = vmatprep.subr.mxu1 %v7810_v4  ;;  %v3884_v9 = vmul.f32 %v7055_v31, %v6834_v21  ;;  %v7308_v14 = vadd.f32 %v3945_v32, %v3905_v5  ;;  %v4080_v47 = vmul.f32 %v7223_v20, %v7296_v0 }
 0x904   : > { %v2126_v48 = vpop.permute.xlu1 %2125  ;;  %v2164_v18 = vadd.f32 %v2156_v43, %v7119_v36 }
 0x905   : > { %2950 = vrot.lane.b32.xlu1 %v7930_v59, %s5236_s15  ;;  %2670 = vrot.lane.b32.xlu0 %v7932_v37, %s5236_s15  ;;  %v3904_v60 = vadd.f32 %v3896_v53, %v3884_v9  ;;  %v2154_v37 = vmul.f32 %v7241_v12, %v2126_v48 }
 0x908   : > { %v2122_v51 = vpop.permute.xlu1 %2121  ;;  %v2138_v39 = vpop.permute.xlu0 %2137 }
 0x909   : > { %v2157_v54 = vmul.f32 %v7241_v12, %v2138_v39  ;;  %3208 = vrot.lane.b32.xlu1 %v6459_v41, %s5236_s15  ;;  %3210 = vrot.lane.b32.xlu0 %v6446_v27, %s5236_s15  ;;  %v7933_v41 = vld [vmem:[#allocation36_spill] sm:$0xff]  ;;  %v7321_v27 = vadd.f32 %v3944_v62, %v3904_v60  ;;  %v7934_v39 = vld [vmem:[#allocation37_spill] sm:$0xff] }
 0x90b   : > { %v2165_v44 = vadd.f32 %v2157_v54, %v7114_v19  ;;  %v4079_v19 = vmul.f32 %v7223_v20, %v7308_v14  ;;  %v4078_v59 = vmul.f32 %v7223_v20, %v7321_v27  ;;  %v2153_v20 = vmul.f32 %v7241_v12, %v2122_v51 }
 0x90c   : > { %v2437_v1 = vpop.permute.xlu1 %2436  ;;  %v2130_v21 = vpop.permute.xlu0 %2129 }
 0x90d   : > { %4098 = vrot.lane.b32.xlu1 %v4080_v47, %s5236_s15  ;;  %2948 = vrot.lane.b32.xlu0 %v7933_v41, %s5236_s15  ;;  %v2155_v45 = vmul.f32 %v7241_v12, %v2130_v21  ;;  %v2161_v32 = vadd.f32 %v2153_v20, %v7178_v58  ;;  %v2168_v58 = vrot.slane %v7155_v50, 7 }
 0x90e   : > { %4978 = vmatpush3.xpose.msk.msra.mxu1 %vm561_vm0, %v2165_v44  ;;  %4993 = vmatpush3.xpose.msk.msra.mxu0 %vm561_vm0, %v2437_v1 }
 0x90f   : > { %4979 = vmatprep.subr.mxu1 %v7810_v4  ;;  %4994 = vmatprep.subr.mxu0 %v7810_v4  ;;  %v2163_v53 = vadd.f32 %v2155_v45, %v7124_v25 }
 0x910   : > { %v2695_v40 = vpop.permute.xlu1 %2694  ;;  %v2118_v57 = vpop.permute.xlu0 %2117 }
 0x911   : > { %4096 = vrot.lane.b32.xlu1 %v4079_v19, %s5236_s15  ;;  %4187 = vperm.xlu0 %5180, %v6882_v7   ;;  %v2162_v7 = vadd.f32 %v2154_v37, %v7130_v61  ;;  %v2152_v9 = vmul.f32 %v7241_v12, %v2118_v57  ;;  %v7935_v61 = vld [vmem:[#allocation44_spill] sm:$0xff] }
 0x912   : > { %4980 = vmatpush3.xpose.msk.msra.mxu1 %vm561_vm0, %v2164_v18 }
 0x913   : > { %4981 = vmatprep.subr.mxu1 %v7810_v4 }
 0x914   : > { %v2435_v36 = vpop.permute.xlu1 %2434  ;;  %v2691_v5 = vpop.permute.xlu0 %2690 }
 0x915   : > { %4094 = vrot.lane.b32.xlu1 %v4078_v59, %s5236_s15  ;;  %2946 = vrot.lane.b32.xlu0 %v7934_v39, %s5236_s15 }
 0x916   : > { %4982 = vmatpush3.xpose.msk.msra.mxu1 %vm561_vm0, %v2163_v53  ;;  %4995 = vmatpush3.xpose.msk.msra.mxu0 %vm561_vm0, %v2435_v36 }
 0x917   : > { %4983 = vmatprep.subr.mxu1 %v7810_v4  ;;  %4996 = vmatprep.subr.mxu0 %v7810_v4 }
 0x918   : > { %v2693_v25 = vpop.permute.xlu1 %2692  ;;  %v2689_v48 = vpop.permute.xlu0 %2688 }
 0x919   : > { %4191 = vperm.xlu1 %5179, %v6873_v3   ;;  %3204 = vrot.lane.b32.xlu0 %v6479_v17, %s5236_s15  ;;  %v2160_v17 = vadd.f32 %v2152_v9, %v7284_v56 }
 0x91a   : > { %4984 = vmatpush3.xpose.msk.msra.mxu1 %vm561_vm0, %v2162_v7 }
 0x91b   : > { %4985 = vmatprep.subr.mxu1 %v7810_v4 }
 0x91c   : > { %v2433_v54 = vpop.permute.xlu1 %2432  ;;  %v2687_v60 = vpop.permute.xlu0 %2686 }
 0x91d   : > { %3206 = vrot.lane.b32.xlu1 %v7935_v61, %s5236_s15  ;;  %4997 = vmatpush3.xpose.msk.msra.mxu0 %vm561_vm0, %v2433_v54 }
 0x91e   : > { %4986 = vmatpush3.xpose.msk.msra.mxu1 %vm561_vm0, %v2161_v32  ;;  %4998 = vmatprep.subr.mxu0 %v7810_v4 }
 0x91f   : > { %4987 = vmatprep.subr.mxu1 %v7810_v4 }
 0x920   : > { %v2431_v3 = vpop.permute.xlu1 %2430  ;;  %v2685_v51 = vpop.permute.xlu0 %2684 }
 0x921   : > { %4999 = vmatpush3.xpose.msk.msra.mxu0 %vm561_vm0, %v2431_v3 }
 0x922   : > { %4988 = vmatpush3.xpose.msk.msra.mxu1 %vm561_vm0, %v2160_v17  ;;  %5000 = vmatprep.subr.mxu0 %v7810_v4 }
 0x923   : > { %5011 = vmatprep.subr.mxu1 %v7810_v4 }
 0x924   : > { %v2429_v44 = vpop.permute.xlu1 %2428  ;;  %v2425_v47 = vpop.permute.xlu0 %2424 }
 0x925   : > { %4990 = vmatmul.mubr.msk.f32.vlgmr.msra.gmra.mxu1 %vm561_vm0, %v2168_v58  ;;  %5001 = vmatpush3.xpose.msk.msra.mxu0 %vm561_vm0, %v2429_v44 }
 0x926   : > { %5012 = vmatpush3.xpose.msk.msra.mxu1 %vm561_vm0, %v2695_v40  ;;  %5002 = vmatprep.subr.mxu0 %v7810_v4 }
 0x927   : > { %5013 = vmatprep.subr.mxu1 %v7810_v4  ;;  %5027 = vmatprep.mubr.msk.f32.mxu1 %vm5240_vm1, %v7810_v4 }
 0x928   : > { %v2427_v56 = vpop.permute.xlu1 %2426  ;;  %v2683_v43 = vpop.permute.xlu0 %2682 }
 0x929   : > { %5003 = vmatpush3.xpose.msk.msra.mxu0 %vm561_vm0, %v2427_v56 }
 0x92a   : > { %5014 = vmatpush3.xpose.msk.msra.mxu1 %vm561_vm0, %v2693_v25  ;;  %5004 = vmatprep.subr.mxu0 %v7810_v4 }
 0x92b   : > { %5015 = vmatprep.subr.mxu1 %v7810_v4 }
 0x92c   : > { %v2681_v1 = vpop.permute.xlu0 %2680  ;;  %v2423_v21 = vpop.permute.xlu1 %2422 }
 0x92d   : > { %5005 = vmatpush3.xpose.msk.msra.mxu0 %vm561_vm0, %v2425_v47 }
 0x92e   : > { %5016 = vmatpush3.xpose.msk.msra.mxu1 %vm561_vm0, %v2691_v5  ;;  %5006 = vmatprep.subr.mxu0 %v7810_v4 }
 0x92f   : > { %5017 = vmatprep.subr.mxu1 %v7810_v4 }
 0x930   : > { %v7382_v62 = vpop.permute.xlu0 %4199 }
 0x931   : > { %5007 = vmatpush3.xpose.msk.msra.mxu0 %vm561_vm0, %v2423_v21 }
 0x932   : > { %5018 = vmatpush3.xpose.msk.msra.mxu1 %vm561_vm0, %v2689_v48  ;;  %5030 = vmatprep.subr.mxu0 %v7810_v4 }
 0x933   : > { %5019 = vmatprep.subr.mxu1 %v7810_v4 }
 0x934   : > { %v2413_v41 = vpop.permute.xlu0 %2412 }
 0x935   : > { %5009 = vmatmul.mubr.msk.f32.vlgmr.msra.gmra.mxu0 %vm561_vm0, %v2413_v41  ;;  %v7937_v41 = vld [vmem:[#allocation29_spill] sm:$0xff] }
 0x936   : > { %5020 = vmatpush3.xpose.msk.msra.mxu1 %vm561_vm0, %v2687_v60  ;;  %5046 = vmatprep.mubr.msk.f32.mxu0 %vm5240_vm1, %v7810_v4 }
 0x937   : > { %5021 = vmatprep.subr.mxu1 %v7810_v4 }
 0x938   : > { %v2953_v19 = vpop.permute.xlu0 %2952 }
 0x939   : > { %5031 = vmatpush3.xpose.msk.msra.mxu0 %vm561_vm0, %v2953_v19  ;;  %v7938_v19 = vld [vmem:[#allocation45_spill] sm:$0xff] }
 0x93a   : > { %5022 = vmatpush3.xpose.msk.msra.mxu1 %vm561_vm0, %v2685_v51  ;;  %5032 = vmatprep.subr.mxu0 %v7810_v4 }
 0x93b   : > { %5023 = vmatprep.subr.mxu1 %v7810_v4 }
 0x93e   : > { %5024 = vmatpush3.xpose.msk.msra.mxu1 %vm561_vm0, %v2683_v43 }
 0x93f   : > { %5025 = vmatprep.subr.mxu1 %v7810_v4 }
 0x942   : > { %5026 = vmatpush3.xpose.msk.msra.mxu1 %vm561_vm0, %v2681_v1  ;;  %v7936_v1 = vld [vmem:[#allocation31_spill] sm:$0xff] }
 0x943   : > { %5049 = vmatprep.subr.mxu1 %v7810_v4 }
 0x963   : > { %v4109_v18 = vpop.permute.xlu1 %4108 }
 0x964   : > { %v4139_v45 = vsel %vm561_vm0, %v4109_v18, 0.0  ;;  %v7939_v18 = vld [vmem:[#allocation40_spill] sm:$0xff] }
 0x965   : > { %4140 = vadd.xlane.f32.xlu1 %v4139_v45  ;;  %v742_v45 = vpop.f32.mrf.mxu0 }
 0x967   : > { %v4107_v40 = vpop.permute.xlu0 %4106 }
 0x968   : > { %v4136_v57 = vsel %vm561_vm0, %v4107_v40, 0.0  ;;  %v7940_v40 = vld [vmem:[#allocation30_spill] sm:$0xff] }
 0x969   : > { %4137 = vadd.xlane.f32.xlu0 %v4136_v57  ;;  %v959_v57 = vpop.f32.mrf.mxu1 }
 0x96b   : > { %v4105_v59 = vpop.permute.xlu0 %4104 }
 0x96c   : > { %v4133_v37 = vsel %vm561_vm0, %v4105_v59, 0.0  ;;  %v2266_v59 = vrot.slane %v959_v57, 7  ;;  %v5225_v57 = vld [vmem:[%s5336_s14 + $0x40] sm:$0xff] }
 0x96d   : > { %4134 = vadd.xlane.f32.xlu1 %v4133_v37  ;;  %v4858_v37 = vpop.f32.mrf.mxu0 }
 0x96f   : > { %v4103_v53 = vpop.permute.xlu1 %4102 }
 0x970   : > { %v4130_v36 = vsel %vm561_vm0, %v4103_v53, 0.0  ;;  %v4877_v53 = vpop.f32.mrf.mxu1 }
 0x971   : > { %4131 = vadd.xlane.f32.xlu0 %v4130_v36  ;;  %v7941_v36 = vld [vmem:[#allocation46_spill] sm:$0xff]  ;;  %v4148_v53 = vmul.f32 %v7229_v24, %v7090_v35 }
 0x973   : > { %v4101_v5 = vpop.permute.xlu0 %4100 }
 0x974   : > { %v4127_v39 = vsel %vm561_vm0, %v4101_v5, 0.0  ;;  %v2287_v5 = vsel %vm2286_vm2, %v742_v45, %v2266_v59  ;;  %v7945_v45 = vld [vmem:[#allocation47_spill] sm:$0xff]  ;;  %v7947_v59 = vrot.slane %v7931_v29, 2 }
 0x975   : > { %4128 = vadd.xlane.f32.xlu0 %v4127_v39  ;;  %v7942_v39 = vld [vmem:[#allocation10_spill] sm:$0xff] }
 0x977   : > { %v2671_v7 = vpop.permute.xlu0 %2670 }
 0x978   : > { %5028 = vmatmul.mubr.msk.f32.vlgmr.msra.gmra.mxu1 %vm561_vm0, %v2671_v7  ;;  %v1176_v7 = vpop.f32.mrf.mxu0 }
 0x979   : > { %5065 = vmatprep.mubr.msk.f32.mxu1 %vm5240_vm1, %v7810_v4 }
 0x97b   : > { %v3211_v20 = vpop.permute.xlu0 %3210 }
 0x97c   : > { %v7409_v25 = vpop.permute.xlu1 %4195  ;;  %5050 = vmatpush3.xpose.msk.msra.mxu1 %vm561_vm0, %v3211_v20  ;;  %v1393_v20 = vpop.f32.mrf.mxu1 }
 0x97d   : > { %5051 = vmatprep.subr.mxu1 %v7810_v4 }
 0x97f   : > { %v2949_v32 = vpop.permute.xlu0 %2948 }
 0x980   : > { %v2951_v48 = vpop.permute.xlu1 %2950 }
 0x981   : > { %5033 = vmatpush3.xpose.msk.msra.mxu0 %vm561_vm0, %v2951_v48  ;;  %v7943_v48 = vld [vmem:[#allocation18_spill] sm:$0xff] }
 0x982   : > { %5034 = vmatprep.subr.mxu0 %v7810_v4 }
 0x984   : > { %v3209_v9 = vpop.permute.xlu1 %3208 }
 0x985   : > { %5035 = vmatpush3.xpose.msk.msra.mxu0 %vm561_vm0, %v2949_v32  ;;  %5052 = vmatpush3.xpose.msk.msra.mxu1 %vm561_vm0, %v3209_v9  ;;  %v2269_v32 = vrot.slane %v1176_v7, 6  ;;  %v2272_v9 = vrot.slane %v1393_v20, 5 }
 0x986   : > { %5036 = vmatprep.subr.mxu0 %v7810_v4  ;;  %5053 = vmatprep.subr.mxu1 %v7810_v4 }
 0x988   : > { %v4099_v54 = vpop.permute.xlu1 %4098 }
 0x989   : > { %v4124_v60 = vsel %vm561_vm0, %v4099_v54, 0.0  ;;  %v4896_v54 = vpop.f32.mrf.mxu0 }
 0x98a   : > { %4125 = vadd.xlane.f32.xlu1 %v4124_v60  ;;  %v4915_v60 = vpop.f32.mrf.mxu1 }
 0x98c   : > { %v4097_v61 = vpop.permute.xlu1 %4096  ;;  %v7420_v17 = vpop.permute.xlu0 %4187 }
 0x98d   : > { %v4121_v3 = vsel %vm561_vm0, %v4097_v61, 0.0  ;;  %v2289_v61 = vsel %vm2288_vm3, %v2287_v5, %v2269_v32 }
 0x98e   : > { %4122 = vadd.xlane.f32.xlu0 %v4121_v3  ;;  %v2291_v3 = vsel %vm2290_vm4, %v2289_v61, %v2272_v9  ;;  %v4146_v9 = vmul.f32 %v7253_v6, %v7090_v35 }
 0x990   : > { %v4095_v51 = vpop.permute.xlu1 %4094  ;;  %v2947_v44 = vpop.permute.xlu0 %2946 }
 0x991   : > { %v4118_v47 = vsel %vm561_vm0, %v4095_v51, 0.0  ;;  %5037 = vmatpush3.xpose.msk.msra.mxu0 %vm561_vm0, %v2947_v44  ;;  %v1610_v51 = vpop.f32.mrf.mxu0  ;;  %v1827_v44 = vpop.f32.mrf.mxu1 }
 0x992   : > { %4119 = vadd.xlane.f32.xlu0 %v4118_v47  ;;  %5038 = vmatprep.subr.mxu0 %v7810_v4  ;;  %v7944_v47 = vld [vmem:[#allocation38_spill] sm:$0xff] }
 0x994   : > { %v7426_v56 = vpop.permute.xlu1 %4191  ;;  %v3205_v21 = vpop.permute.xlu0 %3204 }
 0x995   : > { %v4207_v20 = vmul.f32 %v7426_v56, %v7241_v12 }
 0x998   : > { %v3207_v43 = vpop.permute.xlu1 %3206 }
 0x999   : > { %5054 = vmatpush3.xpose.msk.msra.mxu1 %vm561_vm0, %v3207_v43  ;;  %v2275_v43 = vrot.slane %v1610_v51, 4  ;;  %v4145_v51 = vmul.f32 %v7265_v16, %v7090_v35 }
 0x99a   : > { %5055 = vmatprep.subr.mxu1 %v7810_v4 }
 0x99b   : > { %4183 = vperm.xlu1 %5179, %v7936_v1   ;;  %v2278_v1 = vrot.slane %v1827_v44, 3 }
 0x99d   : > { %5056 = vmatpush3.xpose.msk.msra.mxu1 %vm561_vm0, %v3205_v21  ;;  %v4953_v21 = vpop.f32.mrf.mxu1 }
 0x99e   : > { %5057 = vmatprep.subr.mxu1 %v7810_v4 }
 0x99f   : > { %2944 = vrot.lane.b32.xlu1 %v7937_v41, %s5236_s15  ;;  %v2293_v41 = vsel %vm2292_vm5, %v2291_v3, %v2275_v43 }
 0x9a3   : > { %3202 = vrot.lane.b32.xlu1 %v7938_v19, %s5236_s15  ;;  %v2295_v19 = vsel %vm2294_vm6, %v2293_v41, %v2278_v1 }
 0x9a7   : > { %4179 = vperm.xlu1 %5179, %v7939_v18  }
 0x9a8   : > { %2942 = vrot.lane.b32.xlu0 %v7940_v40, %s5236_s15 }
 0x9ab   : > { %3200 = vrot.lane.b32.xlu1 %v7941_v36, %s5236_s15 }
 0x9ac   : > { %3196 = vrot.lane.b32.xlu0 %v7942_v39, %s5236_s15  ;;  %v4147_v39 = vmul.f32 %v7243_v22, %v7090_v35 }
 0x9af   : > { %4175 = vperm.xlu1 %5179, %v7943_v48  }
 0x9b0   : > { %3468 = vrot.lane.b32.xlu0 %v6745_v33, %s5236_s15  ;;  %v4934_v33 = vpop.f32.mrf.mxu0 }
 0x9b2   : > { %v2044_v18 = vpop.f32.mrf.mxu0 }
 0x9b3   : > { %2940 = vrot.lane.b32.xlu1 %v7944_v47, %s5236_s15 }
 0x9b4   : > { %3726 = vrot.lane.b32.xlu0 %v7014_v34, %s5236_s15  ;;  %v4972_v40 = vpop.f32.mrf.mxu0  ;;  %v7946_v34 = vld [vmem:[#allocation39_spill] sm:$0xff] }
 0x9b7   : > { %3198 = vrot.lane.b32.xlu1 %v7945_v45, %s5236_s15 }
 0x9b8   : > { %3724 = vrot.lane.b32.xlu0 %v7045_v13, %s5236_s15  ;;  %v7948_v13 = vrot.slane %v6551_v49, 3 }
 0x9bb   : > { %4171 = vperm.xlu1 %5179, %v5225_v57  }
 0x9bc   : > { %3722 = vrot.lane.b32.xlu0 %v7058_v10, %s5236_s15  ;;  %v4149_v10 = vmul.f32 %v7216_v52, %v7090_v35 }
 0x9bf   : > { %2938 = vrot.lane.b32.xlu1 %v7946_v34, %s5236_s15 }
 0x9c0   : > { %3720 = vrot.lane.b32.xlu0 %v7026_v42, %s5236_s15 }
 0x9c3   : > { %2928 = vrot.lane.b32.xlu1 %v7947_v59, %s5236_s15 }
 0x9c4   : > { %3718 = vrot.lane.b32.xlu0 %v7071_v2, %s5236_s15 }
 0x9c7   : > { %3186 = vrot.lane.b32.xlu1 %v7948_v13, %s5236_s15 }
 0x9c8   : > { %3716 = vrot.lane.b32.xlu0 %v7040_v23, %s5236_s15  ;;  %v7949_v23 = vrot.slane %v6551_v49, 4 }
 0x9cb   : > { %3466 = vrot.lane.b32.xlu1 %v6758_v46, %s5236_s15  ;;  %v2281_v46 = vrot.slane %v2044_v18, 2 }
 0x9cc   : > { %3714 = vrot.lane.b32.xlu0 %v7080_v55, %s5236_s15  ;;  %v4209_v55 = vmul.f32 %v7382_v62, %v7241_v12 }
 0x9cf   : > { %3464 = vrot.lane.b32.xlu1 %v6775_v28, %s5236_s15  ;;  %v2297_v28 = vsel %vm2296_vm7, %v2295_v19, %v2281_v46 }
 0x9d0   : > { %3712 = vrot.lane.b32.xlu0 %v7055_v31, %s5236_s15  ;;  %v7509_v31 = vrot.slane %v5726_v63, %v6903_v11  ;;  %v4208_v11 = vmul.f32 %v7409_v25, %v7241_v12 }
 0x9d3   : > { %3462 = vrot.lane.b32.xlu1 %v6772_v30, %s5236_s15 }
 0x9d4   : > { %3984 = vrot.lane.b32.xlu0 %v7216_v52, %s5236_s15 }
 0x9d7   : > { %3460 = vrot.lane.b32.xlu1 %v6787_v38, %s5236_s15 }
 0x9db   : > { %3458 = vrot.lane.b32.xlu1 %v6804_v15, %s5236_s15 }
 0x9df   : > { %3456 = vrot.lane.b32.xlu1 %v6812_v8, %s5236_s15  ;;  %v7950_v8 = vrot.slane %v6551_v49, 5 }
 0x9e3   : > { %3454 = vrot.lane.b32.xlu1 %v6793_v26, %s5236_s15 }
 0x9e5   : > { %v2261_v30 = vpop.f32.mrf.mxu1 }
 0x9e6   : > { %v2284_v42 = vrot.slane %v2261_v30, 1  ;;  %v4143_v30 = vmul.f32 %v7308_v14, %v7090_v35 }
 0x9e7   : > { %3444 = vrot.lane.b32.xlu1 %v7949_v23, %s5236_s15  ;;  %v4991_v38 = vpop.f32.mrf.mxu1 }
 0x9e8   : > { %v7502_v15 = vsel %vm2298_vm8, %v2297_v28, %v2284_v42 }
 0x9eb   : > { %3702 = vrot.lane.b32.xlu1 %v7950_v8, %s5236_s15 }
 0x9ee   : > { %v4141_v26 = vpop.xlane.xlu1 %4140 }
 0x9ef   : > { %v4161_v2 = vmul.f32 %v7509_v31, %v4141_v26  ;;  %3982 = vrot.lane.b32.xlu1 %v7229_v24, %s5236_s15 }
 0x9f1   : > { %v4169_v29 = vadd.f32 %v4161_v2, %v4149_v10 }
 0x9f2   : > { %v4138_v37 = vpop.xlane.xlu0 %4137 }
 0x9f3   : > { %v4217_v49 = vadd.f32 %v4209_v55, %v4169_v29  ;;  %v4160_v63 = vmul.f32 %v7509_v31, %v4138_v37  ;;  %3980 = vrot.lane.b32.xlu1 %v7243_v22, %s5236_s15  ;;  %v4206_v22 = vmul.f32 %v7420_v17, %v7241_v12 }
 0x9f5   : > { %v4168_v52 = vadd.f32 %v4160_v63, %v4148_v53  ;;  %4242 = vrot.lane.b32.xlu0 %v4217_v49, %s5236_s15  ;;  %v7526_v36 = vpop.f32.mrf.mxu0 }
 0x9f6   : > { %v4135_v62 = vpop.xlane.xlu1 %4134 }
 0x9f7   : > { %v4216_v5 = vadd.f32 %v4208_v11, %v4168_v52  ;;  %v4159_v24 = vmul.f32 %v7509_v31, %v4135_v62  ;;  %3978 = vrot.lane.b32.xlu1 %v7253_v6, %s5236_s15  ;;  %v5010_v7 = vpop.f32.mrf.mxu0  ;;  %v7951_v6 = vrot.slane %v7155_v50, 6 }
 0x9f9   : > { %v4167_v25 = vadd.f32 %v4159_v24, %v4147_v39  ;;  %4240 = vrot.lane.b32.xlu0 %v4216_v5, %s5236_s15 }
 0x9fa   : > { %v4132_v48 = vpop.xlane.xlu0 %4131 }
 0x9fb   : > { %v4215_v32 = vadd.f32 %v4207_v20, %v4167_v25  ;;  %v4158_v54 = vmul.f32 %v7509_v31, %v4132_v48  ;;  %3976 = vrot.lane.b32.xlu1 %v7265_v16, %s5236_s15  ;;  %v4144_v16 = vmul.f32 %v7296_v0, %v7090_v35 }
 0x9fd   : > { %v4166_v60 = vadd.f32 %v4158_v54, %v4146_v9  ;;  %4238 = vrot.lane.b32.xlu0 %v4215_v32, %s5236_s15  ;;  %v2300_v32 = vsel %vm561_vm0, %v7502_v15, 0.0 }
 0x9fe   : > { %v4129_v17 = vpop.xlane.xlu0 %4128 }
 0x9ff   : > { %v4214_v56 = vadd.f32 %v4206_v22, %v4166_v60  ;;  %3974 = vrot.lane.b32.xlu1 %v7296_v0, %s5236_s15  ;;  %v4157_v3 = vmul.f32 %v7509_v31, %v4129_v17 }
 0xa01   : > { %4236 = vrot.lane.b32.xlu0 %v4214_v56, %s5236_s15  ;;  %v4165_v43 = vadd.f32 %v4157_v3, %v4145_v51 }
 0xa03   : > { %3972 = vrot.lane.b32.xlu1 %v7308_v14, %s5236_s15  ;;  %v4142_v14 = vmul.f32 %v7321_v27, %v7090_v35 }
 0xa07   : > { %3970 = vrot.lane.b32.xlu1 %v7321_v27, %s5236_s15 }
 0xa0b   : > { %3960 = vrot.lane.b32.xlu1 %v7951_v6, %s5236_s15 }
 0xa13   : > { %v4126_v61 = vpop.xlane.xlu1 %4125 }
 0xa14   : > { %v4156_v45 = vmul.f32 %v7509_v31, %v4126_v61 }
 0xa16   : > { %v4164_v57 = vadd.f32 %v4156_v45, %v4144_v16 }
 0xa17   : > { %v4184_v44 = vpop.permute.xlu1 %4183  ;;  %v4123_v47 = vpop.xlane.xlu0 %4122 }
 0xa18   : > { %v4205_v1 = vmul.f32 %v4184_v44, %v7241_v12  ;;  %v4155_v28 = vmul.f32 %v7509_v31, %v4123_v47 }
 0xa1a   : > { %v4213_v33 = vadd.f32 %v4205_v1, %v4165_v43  ;;  %v4163_v0 = vadd.f32 %v4155_v28, %v4143_v30 }
 0xa1b   : > { %v2945_v21 = vpop.permute.xlu1 %2944  ;;  %v4120_v41 = vpop.xlane.xlu0 %4119 }
 0xa1c   : > { %4234 = vrot.lane.b32.xlu0 %v4213_v33, %s5236_s15  ;;  %5039 = vmatpush3.xpose.msk.msra.mxu0 %vm561_vm0, %v2945_v21  ;;  %v4154_v55 = vmul.f32 %v7509_v31, %v4120_v41 }
 0xa1d   : > { %5040 = vmatprep.subr.mxu0 %v7810_v4 }
 0xa1e   : > { %v4162_v37 = vadd.f32 %v4154_v55, %v4142_v14 }
 0xa1f   : > { %v3203_v19 = vpop.permute.xlu1 %3202  ;;  %v2943_v18 = vpop.permute.xlu0 %2942 }
 0xa20   : > { %5041 = vmatpush3.xpose.msk.msra.mxu0 %vm561_vm0, %v2943_v18  ;;  %5058 = vmatpush3.xpose.msk.msra.mxu1 %vm561_vm0, %v3203_v19 }
 0xa21   : > { %5059 = vmatprep.subr.mxu1 %v7810_v4  ;;  %5042 = vmatprep.subr.mxu0 %v7810_v4 }
 0xa23   : > { %v4180_v40 = vpop.permute.xlu1 %4179  ;;  %v3197_v13 = vpop.permute.xlu0 %3196 }
 0xa24   : > { %v4204_v34 = vmul.f32 %v4180_v40, %v7241_v12 }
 0xa26   : > { %v4212_v59 = vadd.f32 %v4204_v34, %v4164_v57 }
 0xa27   : > { %v3201_v46 = vpop.permute.xlu1 %3200  ;;  %v3469_v38 = vpop.permute.xlu0 %3468 }
 0xa28   : > { %4232 = vrot.lane.b32.xlu0 %v4212_v59, %s5236_s15  ;;  %5060 = vmatpush3.xpose.msk.msra.mxu1 %vm561_vm0, %v3201_v46 }
 0xa29   : > { %5061 = vmatprep.subr.mxu1 %v7810_v4 }
 0xa2b   : > { %v4176_v42 = vpop.permute.xlu1 %4175  ;;  %v3727_v10 = vpop.permute.xlu0 %3726 }
 0xa2c   : > { %v4203_v23 = vmul.f32 %v4176_v42, %v7241_v12 }
 0xa2e   : > { %v4211_v8 = vadd.f32 %v4203_v23, %v4163_v0 }
 0xa2f   : > { %v2941_v26 = vpop.permute.xlu1 %2940  ;;  %v3725_v63 = vpop.permute.xlu0 %3724 }
 0xa30   : > { %4230 = vrot.lane.b32.xlu0 %v4211_v8, %s5236_s15  ;;  %5043 = vmatpush3.xpose.msk.msra.mxu0 %vm561_vm0, %v2941_v26 }
 0xa31   : > { %5044 = vmatprep.subr.mxu0 %v7810_v4 }
 0xa33   : > { %v3199_v2 = vpop.permute.xlu1 %3198  ;;  %v3723_v35 = vpop.permute.xlu0 %3722 }
 0xa34   : > { %5062 = vmatpush3.xpose.msk.msra.mxu1 %vm561_vm0, %v3199_v2 }
 0xa35   : > { %5063 = vmatprep.subr.mxu1 %v7810_v4 }
 0xa37   : > { %v4172_v29 = vpop.permute.xlu1 %4171  ;;  %v3721_v62 = vpop.permute.xlu0 %3720 }
 0xa38   : > { %v4202_v49 = vmul.f32 %v4172_v29, %v7241_v12  ;;  %v7585_v53 = vpop.f32.mrf.mxu1  ;;  %5064 = vmatpush3.xpose.msk.msra.mxu1 %vm561_vm0, %v3197_v13 }
 0xa39   : > { %5087 = vmatprep.subr.mxu1 %v7810_v4  ;;  %v4333_v57 = vrot.slane %v7585_v53, 7 }
 0xa3a   : > { %v4210_v11 = vadd.f32 %v4202_v49, %v4162_v37  ;;  %v5029_v31 = vpop.f32.mrf.mxu1 }
 0xa3b   : > { %v2939_v52 = vpop.permute.xlu1 %2938  ;;  %v4353_v13 = vsel %vm2286_vm2, %v7526_v36, %v4333_v57 }
 0xa3c   : > { %4228 = vrot.lane.b32.xlu0 %v4210_v11, %s5236_s15  ;;  %5045 = vmatpush3.xpose.msk.msra.mxu0 %vm561_vm0, %v2939_v52 }
 0xa3d   : > { %5068 = vmatprep.subr.mxu0 %v7810_v4 }
 0xa3f   : > { %v2929_v27 = vpop.permute.xlu1 %2928 }
 0xa40   : > { %4218 = vrot.lane.b32.xlu0 %v2168_v58, %s5236_s15  ;;  %5047 = vmatmul.mubr.msk.f32.vlgmr.msra.gmra.mxu0 %vm561_vm0, %v2929_v27  ;;  %v3719_v58 = vpop.permute.xlu0 %3718 }
 0xa41   : > { %5069 = vmatpush3.xpose.msk.msra.mxu0 %vm561_vm0, %v3469_v38  ;;  %5084 = vmatprep.mubr.msk.f32.mxu0 %vm5240_vm1, %v7810_v4 }
 0xa42   : > { %5070 = vmatprep.subr.mxu0 %v7810_v4 }
 0xa43   : > { %v3187_v12 = vpop.permute.xlu1 %3186 }
 0xa44   : > { %5066 = vmatmul.mubr.msk.f32.vlgmr.msra.gmra.mxu1 %vm561_vm0, %v3187_v12  ;;  %v3717_v24 = vpop.permute.xlu0 %3716 }
 0xa45   : > { %5088 = vmatpush3.xpose.msk.msra.mxu1 %vm561_vm0, %v3727_v10  ;;  %5103 = vmatprep.mubr.msk.f32.mxu1 %vm5240_vm1, %v7810_v4 }
 0xa46   : > { %5089 = vmatprep.subr.mxu1 %v7810_v4 }
 0xa47   : > { %v3467_v50 = vpop.permute.xlu1 %3466 }
 0xa48   : > { %5071 = vmatpush3.xpose.msk.msra.mxu0 %vm561_vm0, %v3467_v50  ;;  %v3715_v20 = vpop.permute.xlu0 %3714 }
 0xa49   : > { %5090 = vmatpush3.xpose.msk.msra.mxu1 %vm561_vm0, %v3725_v63  ;;  %5072 = vmatprep.subr.mxu0 %v7810_v4 }
 0xa4a   : > { %5091 = vmatprep.subr.mxu1 %v7810_v4 }
 0xa4b   : > { %v3465_v5 = vpop.permute.xlu1 %3464 }
 0xa4c   : > { %5073 = vmatpush3.xpose.msk.msra.mxu0 %vm561_vm0, %v3465_v5  ;;  %v3713_v9 = vpop.permute.xlu0 %3712 }
 0xa4d   : > { %5092 = vmatpush3.xpose.msk.msra.mxu1 %vm561_vm0, %v3723_v35  ;;  %5074 = vmatprep.subr.mxu0 %v7810_v4 }
 0xa4e   : > { %5093 = vmatprep.subr.mxu1 %v7810_v4 }
 0xa4f   : > { %v3463_v39 = vpop.permute.xlu1 %3462 }
 0xa50   : > { %5075 = vmatpush3.xpose.msk.msra.mxu0 %vm561_vm0, %v3463_v39  ;;  %v3985_v22 = vpop.permute.xlu0 %3984 }
 0xa51   : > { %5094 = vmatpush3.xpose.msk.msra.mxu1 %vm561_vm0, %v3721_v62  ;;  %5076 = vmatprep.subr.mxu0 %v7810_v4 }
 0xa52   : > { %5095 = vmatprep.subr.mxu1 %v7810_v4 }
 0xa53   : > { %v3461_v7 = vpop.permute.xlu1 %3460 }
 0xa54   : > { %5077 = vmatpush3.xpose.msk.msra.mxu0 %vm561_vm0, %v3461_v7  ;;  %v5226_v7 = vld [vmem:[%s5711_s28] sm:$0xff] }
 0xa55   : > { %5096 = vmatpush3.xpose.msk.msra.mxu1 %vm561_vm0, %v3719_v58  ;;  %5078 = vmatprep.subr.mxu0 %v7810_v4 }
 0xa56   : > { %5097 = vmatprep.subr.mxu1 %v7810_v4 }
 0xa57   : > { %v3459_v25 = vpop.permute.xlu1 %3458 }
 0xa58   : > { %5079 = vmatpush3.xpose.msk.msra.mxu0 %vm561_vm0, %v3459_v25 }
 0xa59   : > { %5098 = vmatpush3.xpose.msk.msra.mxu1 %vm561_vm0, %v3717_v24  ;;  %5080 = vmatprep.subr.mxu0 %v7810_v4 }
 0xa5a   : > { %5099 = vmatprep.subr.mxu1 %v7810_v4 }
 0xa5b   : > { %v3457_v48 = vpop.permute.xlu1 %3456 }
 0xa5c   : > { %5081 = vmatpush3.xpose.msk.msra.mxu0 %vm561_vm0, %v3457_v48  ;;  %v4618_v48 = vld [vmem:[%s7729_s11] ss:$0 sm:$0xff] }
 0xa5d   : > { %5100 = vmatpush3.xpose.msk.msra.mxu1 %vm561_vm0, %v3715_v20  ;;  %5082 = vmatprep.subr.mxu0 %v7810_v4  ;;  %v7952_v20 = vld [vmem:[#allocation11_spill] sm:$0xff] }
 0xa5e   : > { %5101 = vmatprep.subr.mxu1 %v7810_v4  ;;  %v2314_v25 = vmul.f32 %v5226_v7, %v7952_v20 }
 0xa5f   : > { %v3455_v54 = vpop.permute.xlu1 %3454  ;;  %2301 = vadd.xlane.f32.xlu0 %v2300_v32 }
 0xa60   : > { %5083 = vmatpush3.xpose.msk.msra.mxu0 %vm561_vm0, %v3455_v54  ;;  %v2321_v32 = vmul.f32 %v4618_v48, %v2314_v25 }
 0xa61   : > { %5102 = vmatpush3.xpose.msk.msra.mxu1 %vm561_vm0, %v3713_v9  ;;  %5106 = vmatprep.subr.mxu0 %v7810_v4 }
 0xa62   : > { %5125 = vmatprep.subr.mxu1 %v7810_v4  ;;  %v2322_v9 = vsel %vm561_vm0, %v2321_v32, 0.0 }
 0xa63   : > { %v3445_v60 = vpop.permute.xlu1 %3444 }
 0xa64   : > { %5085 = vmatmul.mubr.msk.f32.vlgmr.msra.gmra.mxu0 %vm561_vm0, %v3445_v60 }
 0xa65   : > { %5107 = vmatpush3.xpose.msk.msra.mxu0 %vm561_vm0, %v3985_v22  ;;  %5122 = vmatprep.mubr.msk.f32.mxu0 %vm5240_vm1, %v7810_v4 }
 0xa66   : > { %5108 = vmatprep.subr.mxu0 %v7810_v4 }
 0xa67   : > { %v3703_v56 = vpop.permute.xlu1 %3702  ;;  %v4243_v6 = vpop.permute.xlu0 %4242 }
 0xa68   : > { %5104 = vmatmul.mubr.msk.f32.vlgmr.msra.gmra.mxu1 %vm561_vm0, %v3703_v56 }
 0xa69   : > { %5126 = vmatpush3.xpose.msk.msra.mxu1 %vm561_vm0, %v4243_v6  ;;  %5141 = vmatprep.mubr.msk.f32.mxu1 %vm5240_vm1, %v7810_v4 }
 0xa6a   : > { %5127 = vmatprep.subr.mxu1 %v7810_v4 }
 0xa6b   : > { %v3983_v17 = vpop.permute.xlu1 %3982  ;;  %v4241_v61 = vpop.permute.xlu0 %4240 }
 0xa6c   : > { %5109 = vmatpush3.xpose.msk.msra.mxu0 %vm561_vm0, %v3983_v17 }
 0xa6d   : > { %5128 = vmatpush3.xpose.msk.msra.mxu1 %vm561_vm0, %v4241_v61  ;;  %5110 = vmatprep.subr.mxu0 %v7810_v4 }
 0xa6e   : > { %5129 = vmatprep.subr.mxu1 %v7810_v4 }
 0xa6f   : > { %v3981_v3 = vpop.permute.xlu1 %3980  ;;  %v4239_v51 = vpop.permute.xlu0 %4238 }
 0xa70   : > { %5111 = vmatpush3.xpose.msk.msra.mxu0 %vm561_vm0, %v3981_v3 }
 0xa71   : > { %5130 = vmatpush3.xpose.msk.msra.mxu1 %vm561_vm0, %v4239_v51  ;;  %5112 = vmatprep.subr.mxu0 %v7810_v4 }
 0xa72   : > { %5131 = vmatprep.subr.mxu1 %v7810_v4 }
 0xa73   : > { %v3979_v44 = vpop.permute.xlu1 %3978  ;;  %v4237_v47 = vpop.permute.xlu0 %4236 }
 0xa74   : > { %5113 = vmatpush3.xpose.msk.msra.mxu0 %vm561_vm0, %v3979_v44 }
 0xa75   : > { %5132 = vmatpush3.xpose.msk.msra.mxu1 %vm561_vm0, %v4237_v47  ;;  %5114 = vmatprep.subr.mxu0 %v7810_v4 }
 0xa76   : > { %5133 = vmatprep.subr.mxu1 %v7810_v4 }
 0xa77   : > { %v3977_v43 = vpop.permute.xlu1 %3976 }
 0xa78   : > { %5115 = vmatpush3.xpose.msk.msra.mxu0 %vm561_vm0, %v3977_v43 }
 0xa79   : > { %5116 = vmatprep.subr.mxu0 %v7810_v4 }
 0xa7b   : > { %v3975_v1 = vpop.permute.xlu1 %3974 }
 0xa7c   : > { %5117 = vmatpush3.xpose.msk.msra.mxu0 %vm561_vm0, %v3975_v1 }
 0xa7d   : > { %5118 = vmatprep.subr.mxu0 %v7810_v4 }
 0xa7f   : > { %v3973_v33 = vpop.permute.xlu1 %3972 }
 0xa80   : > { %5119 = vmatpush3.xpose.msk.msra.mxu0 %vm561_vm0, %v3973_v33  ;;  %v4691_v33 = vld [vmem:[%s7727_s9] ss:$0 sm:$0xff] }
 0xa81   : > { %5120 = vmatprep.subr.mxu0 %v7810_v4 }
 0xa83   : > { %v3971_v21 = vpop.permute.xlu1 %3970 }
 0xa84   : > { %5121 = vmatpush3.xpose.msk.msra.mxu0 %vm561_vm0, %v3971_v21 }
 0xa87   : > { %v3961_v41 = vpop.permute.xlu1 %3960 }
 0xa88   : > { %5123 = vmatmul.mubr.msk.f32.vlgmr.msra.gmra.mxu0 %vm561_vm0, %v3961_v41  ;;  %v516_v41 = vld [vmem:[%s496_s16] sm:$0xff] }
 0xa8e   : > { %v4235_v19 = vpop.permute.xlu0 %4234 }
 0xa8f   : > { %5134 = vmatpush3.xpose.msk.msra.mxu1 %vm561_vm0, %v4235_v19 }
 0xa90   : > { %5135 = vmatprep.subr.mxu1 %v7810_v4 }
 0xa9a   : > { %v4233_v18 = vpop.permute.xlu0 %4232 }
 0xa9b   : > { %5136 = vmatpush3.xpose.msk.msra.mxu1 %vm561_vm0, %v4233_v18 }
 0xa9c   : > { %5137 = vmatprep.subr.mxu1 %v7810_v4 }
 0xaa2   : > { %v4231_v45 = vpop.permute.xlu0 %4230 }
 0xaa3   : > { %5138 = vmatpush3.xpose.msk.msra.mxu1 %vm561_vm0, %v4231_v45  ;;  %v4692_v45 = vld [vmem:[%s7728_s10] ss:$0 sm:$0xff] }
 0xaa4   : > { %5139 = vmatprep.subr.mxu1 %v7810_v4 }
 0xaae   : > { %v4229_v16 = vpop.permute.xlu0 %4228 }
 0xaaf   : > { %5140 = vmatpush3.xpose.msk.msra.mxu1 %vm561_vm0, %v4229_v16 }
 0xab2   : > { %v4219_v40 = vpop.permute.xlu0 %4218 }
 0xab3   : > { %5142 = vmatmul.mubr.msk.f32.vlgmr.msra.gmra.mxu1 %vm561_vm0, %v4219_v40 }
 0xae8   : > { %v2302_v37 = vpop.xlane.xlu0 %2301 }
 0xae9   : > { %v2304_v49 = vmul.f32 0.015625, %v2302_v37 }
 0xaeb   : > { %v2305_v63 = vsub.f32 %v7502_v15, %v2304_v49 }
 0xaed   : > { %v2306_v62 = vmul.f32 %v2305_v63, %v2305_v63 }
 0xaef   : > { %v2307_v50 = vsel %vm561_vm0, %v2306_v62, 0.0 }
 0xb00   : > { %v3038_v34 = vpop.f32.mrf.mxu0 }
 0xb01   : > { %v4336_v59 = vrot.slane %v3038_v34, 6 }
 0xb02   : > { %v5048_v46 = vpop.f32.mrf.mxu0 }
 0xb03   : > { %v4354_v28 = vsel %vm2288_vm3, %v4353_v13, %v4336_v59  ;;  %v534_v13 = vld [vmem:[%s509_s24] sm:$0xff] }
 0xb04   : > { %v3296_v30 = vpop.f32.mrf.mxu1 }
 0xb05   : > { %v4339_v42 = vrot.slane %v3296_v30, 5 }
 0xb06   : > { %v5067_v0 = vpop.f32.mrf.mxu1 }
 0xb07   : > { %v4355_v4 = vsel %vm2290_vm4, %v4354_v28, %v4339_v42 }
 0xb24   : > { %v3554_v23 = vpop.f32.mrf.mxu0 }
 0xb25   : > { %v4342_v38 = vrot.slane %v3554_v23, 4 }
 0xb26   : > { %v5086_v8 = vpop.f32.mrf.mxu0 }
 0xb27   : > { %v4356_v26 = vsel %vm2292_vm5, %v4355_v4, %v4342_v38 }
 0xb28   : > { %v3812_v10 = vpop.f32.mrf.mxu1 }
 0xb29   : > { %v4345_v2 = vrot.slane %v3812_v10, 3 }
 0xb2a   : > { %v5105_v55 = vpop.f32.mrf.mxu1 }
 0xb2b   : > { %v4357_v14 = vsel %vm2294_vm6, %v4356_v26, %v4345_v2 }
 0xb48   : > { %v4070_v29 = vpop.f32.mrf.mxu0 }
 0xb49   : > { %v4348_v53 = vrot.slane %v4070_v29, 2 }
 0xb4a   : > { %v5124_v36 = vpop.f32.mrf.mxu0 }
 0xb4b   : > { %v4358_v35 = vsel %vm2296_vm7, %v4357_v14, %v4348_v53 }
 0xb73   : > { %v4328_v11 = vpop.f32.mrf.mxu1 }
 0xb74   : > { %v4351_v31 = vrot.slane %v4328_v11, 1 }
 0xb75   : > { %v5143_v52 = vpop.f32.mrf.mxu1 }
 0xb76   : > { %v4359_v27 = vsel %vm2298_vm8, %v4358_v35, %v4351_v31 }
 0xb77   : > { %v4360_v12 = vsel %vm561_vm0, %v4359_v27, 0.0 }
 0xb78   : > { %4361 = vadd.xlane.f32.xlu1 %v4360_v12 }
 0xb7c   : > { %2308 = vadd.xlane.f32.xlu1 %v2307_v50 }
 0xb80   : > { %2323 = vadd.xlane.f32.xlu1 %v2322_v9 }
 0xc01   : > { %v4362_v58 = vpop.xlane.xlu1 %4361 }
 0xc02   : > { %v4363_v5 = vmul.f32 0.015625, %v4362_v58 }
 0xc04   : > { %v4364_v39 = vsub.f32 %v4359_v27, %v4363_v5 }
 0xc05   : > { %v2309_v3 = vpop.xlane.xlu1 %2308 }
 0xc06   : > { %v4365_v24 = vmul.f32 %v4364_v39, %v4364_v39  ;;  %v2310_v51 = vmul.f32 0.015625, %v2309_v3 }
 0xc08   : > { %v4366_v15 = vsel %vm561_vm0, %v4365_v24, 0.0  ;;  %v2311_v44 = vadd.f32 0.00064, %v2310_v51 }
 0xc09   : > { %4367 = vadd.xlane.f32.xlu0 %v4366_v15  ;;  %v2324_v47 = vpop.xlane.xlu1 %2323 }
 0xc0a   : > { %v2325_v57 = vmul.f32 %v2324_v47, %v516_v41 }
 0xc1f   : > { %4374 = vrot.lane.b32.xlu0 %v2321_v32, %s5236_s15 }
 0xc92   : > { %v4368_v54 = vpop.xlane.xlu0 %4367 }
 0xc93   : > { %v4369_v22 = vmul.f32 0.015625, %v4368_v54 }
 0xc95   : > { %v4370_v60 = vadd.f32 0.00064, %v4369_v22 }
 0xc96   : > { %v4375_v56 = vpop.permute.xlu0 %4374 }
 0xc97   : > { %5187 = vrsqrt.f32 %v4370_v60  ;;  %v4377_v6 = vsel %vm561_vm0, %v4375_v56, 0.0 }
 0xc98   : > { %4378 = vadd.xlane.f32.xlu1 %v4377_v6  ;;  %5189 = vrsqrt.f32 %v2311_v44 }
 0xca4   : > { %v5188_v17 = vpop.eup %5187 }
 0xca5   : > { %v4372_v61 = vmul.f32 %v5188_v17, %v4364_v39  ;;  %v5190_v43 = vpop.eup %5189 }
 0xca6   : > { %v2313_v21 = vmul.f32 %v5190_v43, %v2305_v63 }
 0xca9   : > { %4382 = vrot.lane.b32.xlu1 %v4372_v61, %s5236_s15 }
 0xd21   : > { %v4379_v1 = vpop.xlane.xlu1 %4378 }
 0xd22   : > { %v4380_v18 = vmul.f32 %v4379_v1, %v516_v41 }
 0xd24   : > { %v4386_v59 = vsel %vm561_vm0, %v2325_v57, %v4380_v18 }
 0xd25   : > { %v4383_v19 = vpop.permute.xlu1 %4382 }
 0xd26   : > { %v4385_v16 = vsel %vm561_vm0, %v2313_v21, %v4383_v19 }
 0xd27   : > { %v4393_v40 = vmul.f32 %v4691_v33, %v4385_v16 }
 0xd29   : > { %v4400_v34 = vadd.f32 %v4692_v45, %v4393_v40 }
 0xd2b   : > { %v4401_v46 = vadd.f32 %v4400_v34, %v4386_v59 }
 0xd2d   : > { %v4402_v28 = vmul.f32 %v4401_v46, %v534_v13 }
 0xd2f   : > { %4403 = vst [vmem:[%s513_s27] sm:$0xff] %v4402_v28 }
 0xd30 PF: > { %s22_s21 = sadd.s32 1, %s5233_s21  }
 0xd31   : > { %p19_p4 = scmp.ge.s32.totalorder %s22_s21, 4  }
 0xd33   :  { %21 = sbr.rel (!%p19_p4) target bundleno = 1 (0x1), region = 116 }

</bundles_post_ra>
